<compile_context>
chip_gen: v6e
topology: v6e:2x2x1
jax: 0.10.0
libtpu: 0.0.40
codegen_flags: <defaults>
</compile_context>

<pallas_src>
import numpy as np
import jax
import jax.numpy as jnp
from jax.experimental import pallas as pl
from jax.experimental.pallas import tpu as pltpu


# ------------------------------- fused Pallas kernel ------------------------------- #

def _make_bottleneck_kernel(h, w, cin, red, depth, stride, has_sc_conv):
    """Kernel body factory (shapes / flags are Python-static)."""
    ho = (h - 1) // stride + 1
    wo = (w - 1) // stride + 1

    def kernel(*refs):
        it = iter(refs)
        x_ref = next(it)
        w1_ref = next(it); bA_ref = next(it); a1_ref = next(it)
        w2_ref = next(it); b3_ref = next(it); a2_ref = next(it)
        w3_ref = next(it); bout_ref = next(it)
        wsc_ref = next(it) if has_sc_conv else None
        o_ref = next(it)
        h1p_ref = next(it)                       # VMEM scratch (h+2, w+2, red) bf16

        # ---------------- BN1 -> 1x1 conv -> BN2 -> PReLU (whole image) ---------------
        xv = x_ref[...].reshape(h, w, cin)                         # f32
        x_flat = xv.reshape(h * w, cin)
        y = jnp.dot(x_flat.astype(jnp.bfloat16), w1_ref[...],
                    preferred_element_type=jnp.float32)
        y = y + bA_ref[...]                                        # folded BN bias (f32)
        h1 = jnp.where(y >= 0.0, y, a1_ref[...] * y)               # PReLU, (h*w, red) f32

        # --------- zero-padded h1 halo in VMEM (bf16 operand for the 3x3 taps) --------
        h1p_ref[...] = jnp.zeros((h + 2, w + 2, red), jnp.bfloat16)
        h1p_ref[1:h + 1, 1:w + 1, :] = h1.reshape(h, w, red).astype(jnp.bfloat16)

        # ----- 3x3 conv (pad 1) -> BN3 -> PReLU as 9 shifted whole-image matmuls ------
        w2v = w2_ref[...]                                          # (3,3,red,red) bf16
        acc = jnp.zeros((h * w, red), jnp.float32)
        for dy in range(3):                                        # static 3x3 unroll
            for dx in range(3):
                tap = h1p_ref[dy:dy + h, dx:dx + w, :].reshape(h * w, red)
                acc = acc + jnp.dot(tap, w2v[dy, dx],
                                    preferred_element_type=jnp.float32)
        z = acc + b3_ref[...]                                      # BN3 (scale in w2f)
        z = jnp.where(z >= 0.0, z, a2_ref[...] * z)                # PReLU, f32

        # ------- output-stride subsampling on VALUES (no strided ref indexing) --------
        if stride == 1:
            zs = z                                                 # (h*w, red)
            xs = x_flat                                            # (h*w, cin) f32
        else:
            # h, w are multiples of `stride` (asserted in the wrapper).
            zs = z.reshape(ho, stride, wo, stride, red)[:, 0, :, 0, :]
            zs = zs.reshape(ho * wo, red)
            xs = xv.reshape(ho, stride, wo, stride, cin)[:, 0, :, 0, :]
            xs = xs.reshape(ho * wo, cin)

        # ------------- strided 1x1 conv -> BN4  +  shortcut  + residual add -----------
        res = jnp.dot(zs.astype(jnp.bfloat16), w3_ref[...],
                      preferred_element_type=jnp.float32)          # (ho*wo, depth)
        if has_sc_conv:
            sc = jnp.dot(xs.astype(jnp.bfloat16), wsc_ref[...],
                         preferred_element_type=jnp.float32)       # conv+BN shortcut
        else:
            sc = xs                                                # identity (cin==depth), f32
        out = res + sc + bout_ref[...]
        o_ref[...] = out.reshape(1, ho, wo, depth)                 # lane-dense store

    return kernel


# ---------------------------- parameters (synthetic, eval BN) ----------------------- #

def init_params(key, in_channel, depth):
    red = depth // 4
    ks = iter(jax.random.split(key, 32))

    def bn(c):
        gamma = 1.0 + 0.1 * jax.random.normal(next(ks), (c,))
        beta = 0.1 * jax.random.normal(next(ks), (c,))
        mean = 0.1 * jax.random.normal(next(ks), (c,))
        var = 0.5 + 0.5 * jnp.abs(jax.random.normal(next(ks), (c,)))
        scale = gamma * jax.lax.rsqrt(var + 1e-5)                  # PyTorch BN eps default
        bias = beta - mean * scale
        return (scale.reshape(1, c).astype(jnp.float32),
                bias.reshape(1, c).astype(jnp.float32))

    p = {}
    p['s1'], p['b1'] = bn(in_channel)                                                  # BatchNorm2d(in_channel)
    p['w1'] = 0.1 * jax.random.normal(next(ks), (in_channel, red), jnp.float32)        # 1x1 conv
    p['s2'], p['b2'] = bn(red)                                                         # BatchNorm2d(red)
    p['a1'] = (0.25 + 0.05 * jax.random.normal(next(ks), (1, red))).astype(jnp.float32)  # PReLU(red)
    p['w2'] = 0.1 * jax.random.normal(next(ks), (3, 3, red, red), jnp.float32)         # 3x3 conv, HWIO
    p['s3'], p['b3'] = bn(red)                                                         # BatchNorm2d(red)
    p['a2'] = (0.25 + 0.05 * jax.random.normal(next(ks), (1, red))).astype(jnp.float32)  # PReLU(red)
    p['w3'] = 0.1 * jax.random.normal(next(ks), (red, depth), jnp.float32)             # strided 1x1 conv
    p['s4'], p['b4'] = bn(depth)                                                       # BatchNorm2d(depth)
    p['wsc'] = 0.1 * jax.random.normal(next(ks), (in_channel, depth), jnp.float32)     # shortcut 1x1 conv
    p['ssc'], p['bsc'] = bn(depth)                                                     # shortcut BatchNorm2d(depth)
    return p


# ----------------------------------- forward pass ----------------------------------- #

def bottleneck_ir_forward_nhwc(x, p, in_channel, depth, stride):
    n, h, w, c = x.shape
    assert c == in_channel
    red = depth // 4
    # Same shortcut rule as the PyTorch spec: Conv+BN iff (in_channel != depth or stride != 1).
    has_sc_conv = (in_channel != depth) or (stride != 1)
    if stride != 1:
        # TODO(synk): odd spatial sizes with stride 2 would need edge handling for the
        #             reshape-based subsampling; IR-SE only downsamples even sizes.
        assert h % stride == 0 and w % stride == 0
    ho = (h - 1) // stride + 1
    wo = (w - 1) // stride + 1

    # ---- fold eval-mode BatchNorms into conv weights / bias vectors (bf16 MXU ops) ----
    w1f = ((p['s1'].T * p['w1']) * p['s2']).astype(jnp.bfloat16)             # (cin, red)
    bA = (p['b2'] + p['s2'] * (p['b1'] @ p['w1'])).astype(jnp.float32)       # (1, red)
    w2f = (p['w2'] * p['s3'].reshape(1, 1, 1, red)).astype(jnp.bfloat16)     # (3,3,red,red)
    w3f = (p['w3'] * p['s4']).astype(jnp.bfloat16)                           # (red, depth)
    if has_sc_conv:
        wscf = (p['wsc'] * p['ssc']).astype(jnp.bfloat16)                    # (cin, depth)
        bout = (p['b4'] + p['bsc']).astype(jnp.float32)                      # (1, depth)
    else:
        wscf = None
        bout = p['b4'].astype(jnp.float32)

    args = [x, w1f, bA, p['a1'], w2f, p['b3'], p['a2'], w3f, bout]
    in_specs = [
        pl.BlockSpec((1, h, w, in_channel), lambda b: (b, 0, 0, 0)),   # whole x image
        pl.BlockSpec((in_channel, red), lambda b: (0, 0)),
        pl.BlockSpec((1, red), lambda b: (0, 0)),
        pl.BlockSpec((1, red), lambda b: (0, 0)),
        pl.BlockSpec((3, 3, red, red), lambda b: (0, 0, 0, 0)),
        pl.BlockSpec((1, red), lambda b: (0, 0)),
        pl.BlockSpec((1, red), lambda b: (0, 0)),
        pl.BlockSpec((red, depth), lambda b: (0, 0)),
        pl.BlockSpec((1, depth), lambda b: (0, 0)),
    ]
    if has_sc_conv:
        args.append(wscf)
        in_specs.append(pl.BlockSpec((in_channel, depth), lambda b: (0, 0)))

    kernel = _make_bottleneck_kernel(h, w, in_channel, red, depth, stride, has_sc_conv)

    return pl.pallas_call(
        kernel,
        out_shape=jax.ShapeDtypeStruct((n, ho, wo, depth), jnp.float32),
        grid=(n,),                                       # one grid step per batch element
        in_specs=in_specs,
        out_specs=pl.BlockSpec((1, ho, wo, depth), lambda b: (b, 0, 0, 0)),
        scratch_shapes=[pltpu.VMEM((h + 2, w + 2, red), jnp.bfloat16)],  # padded-h1 halo
        compiler_params=pltpu.CompilerParams(dimension_semantics=("parallel",)),
    )(*args)


def bottleneck_ir_forward(x_nchw, p, in_channel, depth, stride):
    # Public wrapper keeps PyTorch's NCHW convention; the core is NHWC end-to-end so a
    # full IR-SE network built from bottleneck_ir_forward_nhwc needs no per-block transposes.
    x = jnp.transpose(x_nchw, (0, 2, 3, 1)).astype(jnp.float32)
    out = bottleneck_ir_forward_nhwc(x, p, in_channel, depth, stride)
    return jnp.transpose(out, (0, 3, 1, 2))


# --------------------------------- pure-JAX reference -------------------------------- #

def ref_forward(x_nchw, p, in_channel, depth, stride):
    hi = jax.lax.Precision.HIGHEST
    x = jnp.transpose(x_nchw, (0, 2, 3, 1)).astype(jnp.float32)

    def bn(v, s, b): return v * s + b
    def prelu(v, a): return jnp.where(v >= 0, v, a * v)

    h = bn(x, p['s1'], p['b1'])
    h = jnp.einsum('nhwc,cd->nhwd', h, p['w1'], precision=hi)
    h = prelu(bn(h, p['s2'], p['b2']), p['a1'])
    h = jax.lax.conv_general_dilated(h, p['w2'], (1, 1), 'SAME',
                                     dimension_numbers=('NHWC', 'HWIO', 'NHWC'),
                                     precision=hi)
    h = prelu(bn(h, p['s3'], p['b3']), p['a2'])
    h = h[:, ::stride, ::stride, :]
    h = bn(jnp.einsum('nhwc,cd->nhwd', h, p['w3'], precision=hi), p['s4'], p['b4'])
    xs = x[:, ::stride, ::stride, :]
    if in_channel != depth or stride != 1:
        sc = bn(jnp.einsum('nhwc,cd->nhwd', xs, p['wsc'], precision=hi), p['ssc'], p['bsc'])
    else:
        sc = xs
    return jnp.transpose(h + sc, (0, 3, 1, 2))


# -------------------------------------- main ----------------------------------------- #

if __name__ == "__main__":
    def run_case(case_idx, in_channel, depth, stride, n, hgt, wid):
        key = jax.random.fold_in(jax.random.PRNGKey(0), case_idx)
        kx, kp = jax.random.split(key)
        x = jax.random.normal(kx, (n, in_channel, hgt, wid), jnp.float32)
        params = init_params(kp, in_channel, depth)
        out = jax.block_until_ready(
            bottleneck_ir_forward(x, params, in_channel, depth, stride))
        ref = jax.block_until_ready(ref_forward(x, params, in_channel, depth, stride))
        ho = (hgt - 1) // stride + 1
        wo = (wid - 1) // stride + 1
        assert out.shape == (n, depth, ho, wo), out.shape
        np.testing.assert_allclose(np.asarray(out), np.asarray(ref),
                                   rtol=2e-2, atol=2e-2)

    # downsampling block: Conv+BN shortcut (in_channel != depth, stride 2)
    run_case(0, in_channel=8, depth=32, stride=2, n=2, hgt=16, wid=16)
    # identity-shortcut block (in_channel == depth, stride 1)
    run_case(1, in_channel=32, depth=32, stride=1, n=2, hgt=8, wid=8)
    # conv-shortcut, stride-1 block (in_channel != depth, stride 1)
    run_case(2, in_channel=16, depth=32, stride=1, n=2, hgt=8, wid=8)

    print("KERNEL_OK")
</pallas_src>

<mosaic_0001>
module attributes {stable_mosaic.version = 11 : i64} {
  func.func @kernel(%arg0: i32, %arg1: memref<1x16x16x8xf32, #tpu.memory_space<vmem>>, %arg2: memref<8x8xbf16, #tpu.memory_space<vmem>>, %arg3: memref<1x8xf32, #tpu.memory_space<vmem>>, %arg4: memref<1x8xf32, #tpu.memory_space<vmem>>, %arg5: memref<3x3x8x8xbf16, #tpu.memory_space<vmem>>, %arg6: memref<1x8xf32, #tpu.memory_space<vmem>>, %arg7: memref<1x8xf32, #tpu.memory_space<vmem>>, %arg8: memref<8x32xbf16, #tpu.memory_space<vmem>>, %arg9: memref<1x32xf32, #tpu.memory_space<vmem>>, %arg10: memref<8x32xbf16, #tpu.memory_space<vmem>>, %arg11: memref<1x8x8x32xf32, #tpu.memory_space<vmem>>, %arg12: memref<18x18x8xbf16, #tpu.memory_space<vmem>>) attributes {dimension_semantics = [#tpu.dimension_semantics<parallel>], iteration_bounds = array<i64: 2>, scalar_prefetch = 0 : i64, scratch_operands = 1 : i64, tpu.core_type = #tpu.core_type<tc>, window_params = [{transform_indices = @transform_0, window_bounds = array<i64: 1, 16, 16, 8>}, {pipeline_mode = #tpu.pipeline_mode<synchronous>, transform_indices = @transform_1, window_bounds = array<i64: 8, 8>}, {pipeline_mode = #tpu.pipeline_mode<synchronous>, transform_indices = @transform_2, window_bounds = array<i64: 1, 8>}, {pipeline_mode = #tpu.pipeline_mode<synchronous>, transform_indices = @transform_3, window_bounds = array<i64: 1, 8>}, {pipeline_mode = #tpu.pipeline_mode<synchronous>, transform_indices = @transform_4, window_bounds = array<i64: 3, 3, 8, 8>}, {pipeline_mode = #tpu.pipeline_mode<synchronous>, transform_indices = @transform_5, window_bounds = array<i64: 1, 8>}, {pipeline_mode = #tpu.pipeline_mode<synchronous>, transform_indices = @transform_6, window_bounds = array<i64: 1, 8>}, {pipeline_mode = #tpu.pipeline_mode<synchronous>, transform_indices = @transform_7, window_bounds = array<i64: 8, 32>}, {pipeline_mode = #tpu.pipeline_mode<synchronous>, transform_indices = @transform_8, window_bounds = array<i64: 1, 32>}, {pipeline_mode = #tpu.pipeline_mode<synchronous>, transform_indices = @transform_9, window_bounds = array<i64: 8, 32>}, {transform_indices = @transform_10, window_bounds = array<i64: 1, 8, 8, 32>}]} {
    %c0 = arith.constant 0 : index
    %c0_0 = arith.constant 0 : index
    %c0_1 = arith.constant 0 : index
    %c0_2 = arith.constant 0 : index
    %0 = vector.load %arg1[%c0, %c0_0, %c0_1, %c0_2] : memref<1x16x16x8xf32, #tpu.memory_space<vmem>>, vector<1x16x16x8xf32>
    %1 = vector.shape_cast %0 : vector<1x16x16x8xf32> to vector<16x16x8xf32>
    %2 = vector.shape_cast %1 : vector<16x16x8xf32> to vector<256x8xf32>
    %3 = arith.truncf %2 : vector<256x8xf32> to vector<256x8xbf16>
    %c0_3 = arith.constant 0 : index
    %c0_4 = arith.constant 0 : index
    %4 = vector.load %arg2[%c0_3, %c0_4] : memref<8x8xbf16, #tpu.memory_space<vmem>>, vector<8x8xbf16>
    %cst = arith.constant dense<0.000000e+00> : vector<256x8xf32>
    %5 = tpu.matmul %3, %4, %cst {dimension_numbers = #tpu.dot_dimension_numbers<[1], [0], [0], [1], [0, 0, 1, 1], [], []>} : vector<256x8xbf16>, vector<8x8xbf16>, vector<256x8xf32> -> vector<256x8xf32>
    %c0_5 = arith.constant 0 : index
    %c0_6 = arith.constant 0 : index
    %6 = vector.load %arg3[%c0_5, %c0_6] : memref<1x8xf32, #tpu.memory_space<vmem>>, vector<1x8xf32>
    %7 = vector.broadcast %6 : vector<1x8xf32> to vector<256x8xf32>
    %8 = arith.addf %5, %7 : vector<256x8xf32>
    %cst_7 = arith.constant 0.000000e+00 : f32
    %9 = vector.broadcast %cst_7 : f32 to vector<256x8xf32>
    %10 = arith.cmpf oge, %8, %9 : vector<256x8xf32>
    %c0_8 = arith.constant 0 : index
    %c0_9 = arith.constant 0 : index
    %11 = vector.load %arg4[%c0_8, %c0_9] : memref<1x8xf32, #tpu.memory_space<vmem>>, vector<1x8xf32>
    %12 = vector.broadcast %11 : vector<1x8xf32> to vector<256x8xf32>
    %13 = arith.mulf %12, %8 : vector<256x8xf32>
    %14 = arith.select %10, %8, %13 : vector<256x8xi1>, vector<256x8xf32>
    %cst_10 = arith.constant 0.000000e+00 : bf16
    %15 = vector.broadcast %cst_10 : bf16 to vector<18x18x8xbf16>
    %c0_11 = arith.constant 0 : index
    %c0_12 = arith.constant 0 : index
    %c0_13 = arith.constant 0 : index
    %16 = vector.load %arg12[%c0_11, %c0_12, %c0_13] : memref<18x18x8xbf16, #tpu.memory_space<vmem>>, vector<18x18x8xbf16>
    tpu.vector_store %arg12[%c0_11, %c0_12, %c0_13], %15 {strides = array<i32>} : memref<18x18x8xbf16, #tpu.memory_space<vmem>>, vector<18x18x8xbf16>,
    %17 = vector.shape_cast %14 : vector<256x8xf32> to vector<16x16x8xf32>
    %18 = arith.truncf %17 : vector<16x16x8xf32> to vector<16x16x8xbf16>
    %c1 = arith.constant 1 : index
    %c1_14 = arith.constant 1 : index
    %c0_15 = arith.constant 0 : index
    %19 = vector.load %arg12[%c1, %c1_14, %c0_15] : memref<18x18x8xbf16, #tpu.memory_space<vmem>>, vector<16x16x8xbf16>
    tpu.vector_store %arg12[%c1, %c1_14, %c0_15], %18 {strides = array<i32>} : memref<18x18x8xbf16, #tpu.memory_space<vmem>>, vector<16x16x8xbf16>,
    %c0_16 = arith.constant 0 : index
    %c0_17 = arith.constant 0 : index
    %c0_18 = arith.constant 0 : index
    %c0_19 = arith.constant 0 : index
    %20 = vector.load %arg5[%c0_16, %c0_17, %c0_18, %c0_19] : memref<3x3x8x8xbf16, #tpu.memory_space<vmem>>, vector<3x3x8x8xbf16>
    %cst_20 = arith.constant 0.000000e+00 : f32
    %21 = vector.broadcast %cst_20 : f32 to vector<256x8xf32>
    %c0_21 = arith.constant 0 : index
    %c0_22 = arith.constant 0 : index
    %c0_23 = arith.constant 0 : index
    %22 = vector.load %arg12[%c0_21, %c0_22, %c0_23] : memref<18x18x8xbf16, #tpu.memory_space<vmem>>, vector<16x16x8xbf16>
    %23 = vector.shape_cast %22 : vector<16x16x8xbf16> to vector<256x8xbf16>
    %24 = vector.extract_strided_slice %20 {offsets = [0, 0, 0, 0], sizes = [1, 1, 8, 8], strides = [1, 1, 1, 1]} : vector<3x3x8x8xbf16> to vector<1x1x8x8xbf16>
    %25 = vector.shape_cast %24 : vector<1x1x8x8xbf16> to vector<8x8xbf16>
    %cst_24 = arith.constant dense<0.000000e+00> : vector<256x8xf32>
    %26 = tpu.matmul %23, %25, %cst_24 {dimension_numbers = #tpu.dot_dimension_numbers<[1], [0], [0], [1], [0, 0, 1, 1], [], []>} : vector<256x8xbf16>, vector<8x8xbf16>, vector<256x8xf32> -> vector<256x8xf32>
    %27 = arith.addf %21, %26 : vector<256x8xf32>
    %c0_25 = arith.constant 0 : index
    %c1_26 = arith.constant 1 : index
    %c0_27 = arith.constant 0 : index
    %28 = vector.load %arg12[%c0_25, %c1_26, %c0_27] : memref<18x18x8xbf16, #tpu.memory_space<vmem>>, vector<16x16x8xbf16>
    %29 = vector.shape_cast %28 : vector<16x16x8xbf16> to vector<256x8xbf16>
    %30 = vector.extract_strided_slice %20 {offsets = [0, 1, 0, 0], sizes = [1, 1, 8, 8], strides = [1, 1, 1, 1]} : vector<3x3x8x8xbf16> to vector<1x1x8x8xbf16>
    %31 = vector.shape_cast %30 : vector<1x1x8x8xbf16> to vector<8x8xbf16>
    %cst_28 = arith.constant dense<0.000000e+00> : vector<256x8xf32>
    %32 = tpu.matmul %29, %31, %cst_28 {dimension_numbers = #tpu.dot_dimension_numbers<[1], [0], [0], [1], [0, 0, 1, 1], [], []>} : vector<256x8xbf16>, vector<8x8xbf16>, vector<256x8xf32> -> vector<256x8xf32>
    %33 = arith.addf %27, %32 : vector<256x8xf32>
    %c0_29 = arith.constant 0 : index
    %c2 = arith.constant 2 : index
    %c0_30 = arith.constant 0 : index
    %34 = vector.load %arg12[%c0_29, %c2, %c0_30] : memref<18x18x8xbf16, #tpu.memory_space<vmem>>, vector<16x16x8xbf16>
    %35 = vector.shape_cast %34 : vector<16x16x8xbf16> to vector<256x8xbf16>
    %36 = vector.extract_strided_slice %20 {offsets = [0, 2, 0, 0], sizes = [1, 1, 8, 8], strides = [1, 1, 1, 1]} : vector<3x3x8x8xbf16> to vector<1x1x8x8xbf16>
    %37 = vector.shape_cast %36 : vector<1x1x8x8xbf16> to vector<8x8xbf16>
    %cst_31 = arith.constant dense<0.000000e+00> : vector<256x8xf32>
    %38 = tpu.matmul %35, %37, %cst_31 {dimension_numbers = #tpu.dot_dimension_numbers<[1], [0], [0], [1], [0, 0, 1, 1], [], []>} : vector<256x8xbf16>, vector<8x8xbf16>, vector<256x8xf32> -> vector<256x8xf32>
    %39 = arith.addf %33, %38 : vector<256x8xf32>
    %c1_32 = arith.constant 1 : index
    %c0_33 = arith.constant 0 : index
    %c0_34 = arith.constant 0 : index
    %40 = vector.load %arg12[%c1_32, %c0_33, %c0_34] : memref<18x18x8xbf16, #tpu.memory_space<vmem>>, vector<16x16x8xbf16>
    %41 = vector.shape_cast %40 : vector<16x16x8xbf16> to vector<256x8xbf16>
    %42 = vector.extract_strided_slice %20 {offsets = [1, 0, 0, 0], sizes = [1, 1, 8, 8], strides = [1, 1, 1, 1]} : vector<3x3x8x8xbf16> to vector<1x1x8x8xbf16>
    %43 = vector.shape_cast %42 : vector<1x1x8x8xbf16> to vector<8x8xbf16>
    %cst_35 = arith.constant dense<0.000000e+00> : vector<256x8xf32>
    %44 = tpu.matmul %41, %43, %cst_35 {dimension_numbers = #tpu.dot_dimension_numbers<[1], [0], [0], [1], [0, 0, 1, 1], [], []>} : vector<256x8xbf16>, vector<8x8xbf16>, vector<256x8xf32> -> vector<256x8xf32>
    %45 = arith.addf %39, %44 : vector<256x8xf32>
    %c1_36 = arith.constant 1 : index
    %c1_37 = arith.constant 1 : index
    %c0_38 = arith.constant 0 : index
    %46 = vector.load %arg12[%c1_36, %c1_37, %c0_38] : memref<18x18x8xbf16, #tpu.memory_space<vmem>>, vector<16x16x8xbf16>
    %47 = vector.shape_cast %46 : vector<16x16x8xbf16> to vector<256x8xbf16>
    %48 = vector.extract_strided_slice %20 {offsets = [1, 1, 0, 0], sizes = [1, 1, 8, 8], strides = [1, 1, 1, 1]} : vector<3x3x8x8xbf16> to vector<1x1x8x8xbf16>
    %49 = vector.shape_cast %48 : vector<1x1x8x8xbf16> to vector<8x8xbf16>
    %cst_39 = arith.constant dense<0.000000e+00> : vector<256x8xf32>
    %50 = tpu.matmul %47, %49, %cst_39 {dimension_numbers = #tpu.dot_dimension_numbers<[1], [0], [0], [1], [0, 0, 1, 1], [], []>} : vector<256x8xbf16>, vector<8x8xbf16>, vector<256x8xf32> -> vector<256x8xf32>
    %51 = arith.addf %45, %50 : vector<256x8xf32>
    %c1_40 = arith.constant 1 : index
    %c2_41 = arith.constant 2 : index
    %c0_42 = arith.constant 0 : index
    %52 = vector.load %arg12[%c1_40, %c2_41, %c0_42] : memref<18x18x8xbf16, #tpu.memory_space<vmem>>, vector<16x16x8xbf16>
    %53 = vector.shape_cast %52 : vector<16x16x8xbf16> to vector<256x8xbf16>
    %54 = vector.extract_strided_slice %20 {offsets = [1, 2, 0, 0], sizes = [1, 1, 8, 8], strides = [1, 1, 1, 1]} : vector<3x3x8x8xbf16> to vector<1x1x8x8xbf16>
    %55 = vector.shape_cast %54 : vector<1x1x8x8xbf16> to vector<8x8xbf16>
    %cst_43 = arith.constant dense<0.000000e+00> : vector<256x8xf32>
    %56 = tpu.matmul %53, %55, %cst_43 {dimension_numbers = #tpu.dot_dimension_numbers<[1], [0], [0], [1], [0, 0, 1, 1], [], []>} : vector<256x8xbf16>, vector<8x8xbf16>, vector<256x8xf32> -> vector<256x8xf32>
    %57 = arith.addf %51, %56 : vector<256x8xf32>
    %c2_44 = arith.constant 2 : index
    %c0_45 = arith.constant 0 : index
    %c0_46 = arith.constant 0 : index
    %58 = vector.load %arg12[%c2_44, %c0_45, %c0_46] : memref<18x18x8xbf16, #tpu.memory_space<vmem>>, vector<16x16x8xbf16>
    %59 = vector.shape_cast %58 : vector<16x16x8xbf16> to vector<256x8xbf16>
    %60 = vector.extract_strided_slice %20 {offsets = [2, 0, 0, 0], sizes = [1, 1, 8, 8], strides = [1, 1, 1, 1]} : vector<3x3x8x8xbf16> to vector<1x1x8x8xbf16>
    %61 = vector.shape_cast %60 : vector<1x1x8x8xbf16> to vector<8x8xbf16>
    %cst_47 = arith.constant dense<0.000000e+00> : vector<256x8xf32>
    %62 = tpu.matmul %59, %61, %cst_47 {dimension_numbers = #tpu.dot_dimension_numbers<[1], [0], [0], [1], [0, 0, 1, 1], [], []>} : vector<256x8xbf16>, vector<8x8xbf16>, vector<256x8xf32> -> vector<256x8xf32>
    %63 = arith.addf %57, %62 : vector<256x8xf32>
    %c2_48 = arith.constant 2 : index
    %c1_49 = arith.constant 1 : index
    %c0_50 = arith.constant 0 : index
    %64 = vector.load %arg12[%c2_48, %c1_49, %c0_50] : memref<18x18x8xbf16, #tpu.memory_space<vmem>>, vector<16x16x8xbf16>
    %65 = vector.shape_cast %64 : vector<16x16x8xbf16> to vector<256x8xbf16>
    %66 = vector.extract_strided_slice %20 {offsets = [2, 1, 0, 0], sizes = [1, 1, 8, 8], strides = [1, 1, 1, 1]} : vector<3x3x8x8xbf16> to vector<1x1x8x8xbf16>
    %67 = vector.shape_cast %66 : vector<1x1x8x8xbf16> to vector<8x8xbf16>
    %cst_51 = arith.constant dense<0.000000e+00> : vector<256x8xf32>
    %68 = tpu.matmul %65, %67, %cst_51 {dimension_numbers = #tpu.dot_dimension_numbers<[1], [0], [0], [1], [0, 0, 1, 1], [], []>} : vector<256x8xbf16>, vector<8x8xbf16>, vector<256x8xf32> -> vector<256x8xf32>
    %69 = arith.addf %63, %68 : vector<256x8xf32>
    %c2_52 = arith.constant 2 : index
    %c2_53 = arith.constant 2 : index
    %c0_54 = arith.constant 0 : index
    %70 = vector.load %arg12[%c2_52, %c2_53, %c0_54] : memref<18x18x8xbf16, #tpu.memory_space<vmem>>, vector<16x16x8xbf16>
    %71 = vector.shape_cast %70 : vector<16x16x8xbf16> to vector<256x8xbf16>
    %72 = vector.extract_strided_slice %20 {offsets = [2, 2, 0, 0], sizes = [1, 1, 8, 8], strides = [1, 1, 1, 1]} : vector<3x3x8x8xbf16> to vector<1x1x8x8xbf16>
    %73 = vector.shape_cast %72 : vector<1x1x8x8xbf16> to vector<8x8xbf16>
    %cst_55 = arith.constant dense<0.000000e+00> : vector<256x8xf32>
    %74 = tpu.matmul %71, %73, %cst_55 {dimension_numbers = #tpu.dot_dimension_numbers<[1], [0], [0], [1], [0, 0, 1, 1], [], []>} : vector<256x8xbf16>, vector<8x8xbf16>, vector<256x8xf32> -> vector<256x8xf32>
    %75 = arith.addf %69, %74 : vector<256x8xf32>
    %c0_56 = arith.constant 0 : index
    %c0_57 = arith.constant 0 : index
    %76 = vector.load %arg6[%c0_56, %c0_57] : memref<1x8xf32, #tpu.memory_space<vmem>>, vector<1x8xf32>
    %77 = vector.broadcast %76 : vector<1x8xf32> to vector<256x8xf32>
    %78 = arith.addf %75, %77 : vector<256x8xf32>
    %cst_58 = arith.constant 0.000000e+00 : f32
    %79 = vector.broadcast %cst_58 : f32 to vector<256x8xf32>
    %80 = arith.cmpf oge, %78, %79 : vector<256x8xf32>
    %c0_59 = arith.constant 0 : index
    %c0_60 = arith.constant 0 : index
    %81 = vector.load %arg7[%c0_59, %c0_60] : memref<1x8xf32, #tpu.memory_space<vmem>>, vector<1x8xf32>
    %82 = vector.broadcast %81 : vector<1x8xf32> to vector<256x8xf32>
    %83 = arith.mulf %82, %78 : vector<256x8xf32>
    %84 = arith.select %80, %78, %83 : vector<256x8xi1>, vector<256x8xf32>
    %85 = vector.shape_cast %84 : vector<256x8xf32> to vector<8x2x8x2x8xf32>
    %86 = vector.extract_strided_slice %85 {offsets = [0, 0, 0, 0, 0], sizes = [8, 1, 8, 1, 8], strides = [1, 1, 1, 1, 1]} : vector<8x2x8x2x8xf32> to vector<8x1x8x1x8xf32>
    %87 = vector.shape_cast %86 : vector<8x1x8x1x8xf32> to vector<8x8x8xf32>
    %88 = vector.shape_cast %87 : vector<8x8x8xf32> to vector<64x8xf32>
    %89 = vector.shape_cast %1 : vector<16x16x8xf32> to vector<8x2x8x2x8xf32>
    %90 = vector.extract_strided_slice %89 {offsets = [0, 0, 0, 0, 0], sizes = [8, 1, 8, 1, 8], strides = [1, 1, 1, 1, 1]} : vector<8x2x8x2x8xf32> to vector<8x1x8x1x8xf32>
    %91 = vector.shape_cast %90 : vector<8x1x8x1x8xf32> to vector<8x8x8xf32>
    %92 = vector.shape_cast %91 : vector<8x8x8xf32> to vector<64x8xf32>
    %93 = arith.truncf %88 : vector<64x8xf32> to vector<64x8xbf16>
    %c0_61 = arith.constant 0 : index
    %c0_62 = arith.constant 0 : index
    %94 = vector.load %arg8[%c0_61, %c0_62] : memref<8x32xbf16, #tpu.memory_space<vmem>>, vector<8x32xbf16>
    %cst_63 = arith.constant dense<0.000000e+00> : vector<64x32xf32>
    %95 = tpu.matmul %93, %94, %cst_63 {dimension_numbers = #tpu.dot_dimension_numbers<[1], [0], [0], [1], [0, 0, 1, 1], [], []>} : vector<64x8xbf16>, vector<8x32xbf16>, vector<64x32xf32> -> vector<64x32xf32>
    %96 = arith.truncf %92 : vector<64x8xf32> to vector<64x8xbf16>
    %c0_64 = arith.constant 0 : index
    %c0_65 = arith.constant 0 : index
    %97 = vector.load %arg10[%c0_64, %c0_65] : memref<8x32xbf16, #tpu.memory_space<vmem>>, vector<8x32xbf16>
    %cst_66 = arith.constant dense<0.000000e+00> : vector<64x32xf32>
    %98 = tpu.matmul %96, %97, %cst_66 {dimension_numbers = #tpu.dot_dimension_numbers<[1], [0], [0], [1], [0, 0, 1, 1], [], []>} : vector<64x8xbf16>, vector<8x32xbf16>, vector<64x32xf32> -> vector<64x32xf32>
    %99 = arith.addf %95, %98 : vector<64x32xf32>
    %c0_67 = arith.constant 0 : index
    %c0_68 = arith.constant 0 : index
    %100 = vector.load %arg9[%c0_67, %c0_68] : memref<1x32xf32, #tpu.memory_space<vmem>>, vector<1x32xf32>
    %101 = vector.broadcast %100 : vector<1x32xf32> to vector<64x32xf32>
    %102 = arith.addf %99, %101 : vector<64x32xf32>
    %103 = vector.shape_cast %102 : vector<64x32xf32> to vector<1x8x8x32xf32>
    %c0_69 = arith.constant 0 : index
    %c0_70 = arith.constant 0 : index
    %c0_71 = arith.constant 0 : index
    %c0_72 = arith.constant 0 : index
    %104 = vector.load %arg11[%c0_69, %c0_70, %c0_71, %c0_72] : memref<1x8x8x32xf32, #tpu.memory_space<vmem>>, vector<1x8x8x32xf32>
    tpu.vector_store %arg11[%c0_69, %c0_70, %c0_71, %c0_72], %103 {strides = array<i32>} : memref<1x8x8x32xf32, #tpu.memory_space<vmem>>, vector<1x8x8x32xf32>,
    return
  }
  func.func @transform_0(%arg0: i32) -> (i32, i32, i32, i32) {
    %c0_i32 = arith.constant 0 : i32
    %c0_i32_0 = arith.constant 0 : i32
    %c0_i32_1 = arith.constant 0 : i32
    %c0_i32_2 = arith.constant 0 : i32
    return %arg0, %c0_i32, %c0_i32_0, %c0_i32_1 : i32, i32, i32, i32
  }
  func.func @transform_1(%arg0: i32) -> (i32, i32) {
    %c0_i32 = arith.constant 0 : i32
    %c0_i32_0 = arith.constant 0 : i32
    %c0_i32_1 = arith.constant 0 : i32
    return %c0_i32, %c0_i32_0 : i32, i32
  }
  func.func @transform_2(%arg0: i32) -> (i32, i32) {
    %c0_i32 = arith.constant 0 : i32
    %c0_i32_0 = arith.constant 0 : i32
    %c0_i32_1 = arith.constant 0 : i32
    return %c0_i32, %c0_i32_0 : i32, i32
  }
  func.func @transform_3(%arg0: i32) -> (i32, i32) {
    %c0_i32 = arith.constant 0 : i32
    %c0_i32_0 = arith.constant 0 : i32
    %c0_i32_1 = arith.constant 0 : i32
    return %c0_i32, %c0_i32_0 : i32, i32
  }
  func.func @transform_4(%arg0: i32) -> (i32, i32, i32, i32) {
    %c0_i32 = arith.constant 0 : i32
    %c0_i32_0 = arith.constant 0 : i32
    %c0_i32_1 = arith.constant 0 : i32
    %c0_i32_2 = arith.constant 0 : i32
    %c0_i32_3 = arith.constant 0 : i32
    return %c0_i32, %c0_i32_0, %c0_i32_1, %c0_i32_2 : i32, i32, i32, i32
  }
  func.func @transform_5(%arg0: i32) -> (i32, i32) {
    %c0_i32 = arith.constant 0 : i32
    %c0_i32_0 = arith.constant 0 : i32
    %c0_i32_1 = arith.constant 0 : i32
    return %c0_i32, %c0_i32_0 : i32, i32
  }
  func.func @transform_6(%arg0: i32) -> (i32, i32) {
    %c0_i32 = arith.constant 0 : i32
    %c0_i32_0 = arith.constant 0 : i32
    %c0_i32_1 = arith.constant 0 : i32
    return %c0_i32, %c0_i32_0 : i32, i32
  }
  func.func @transform_7(%arg0: i32) -> (i32, i32) {
    %c0_i32 = arith.constant 0 : i32
    %c0_i32_0 = arith.constant 0 : i32
    %c0_i32_1 = arith.constant 0 : i32
    return %c0_i32, %c0_i32_0 : i32, i32
  }
  func.func @transform_8(%arg0: i32) -> (i32, i32) {
    %c0_i32 = arith.constant 0 : i32
    %c0_i32_0 = arith.constant 0 : i32
    %c0_i32_1 = arith.constant 0 : i32
    return %c0_i32, %c0_i32_0 : i32, i32
  }
  func.func @transform_9(%arg0: i32) -> (i32, i32) {
    %c0_i32 = arith.constant 0 : i32
    %c0_i32_0 = arith.constant 0 : i32
    %c0_i32_1 = arith.constant 0 : i32
    return %c0_i32, %c0_i32_0 : i32, i32
  }
  func.func @transform_10(%arg0: i32) -> (i32, i32, i32, i32) {
    %c0_i32 = arith.constant 0 : i32
    %c0_i32_0 = arith.constant 0 : i32
    %c0_i32_1 = arith.constant 0 : i32
    %c0_i32_2 = arith.constant 0 : i32
    return %arg0, %c0_i32, %c0_i32_0, %c0_i32_1 : i32, i32, i32, i32
  }
}

</mosaic_0001>

<bundles_post_ra>
// kernel: tpu_custom_call.1
= control target key start
LH: loop header
LB: loop body
LE: loop exit
PB: predicated region body
PF: predicated region fallthrough
CT: control target
= control target key end

     0   :  { %15 = vsyncpa [#allocation4], 0  ;;  %s11276_s0 = inlined_call_operand.vmem [shape: f32[2,16,16,8], index: 0, kind: input, shape index: {}]   ;;  %s11277_s1 = inlined_call_operand.vmem [shape: bf16[8,8], index: 1, kind: input, shape index: {}]   ;;  %s11278_s2 = inlined_call_operand.vmem [shape: f32[1,8], index: 2, kind: input, shape index: {}]   ;;  %s11279_s3 = inlined_call_operand.vmem [shape: f32[1,8], index: 3, kind: input, shape index: {}]   ;;  %s11280_s4 = inlined_call_operand.vmem [shape: bf16[3,3,8,8], index: 4, kind: input, shape index: {}]   ;;  %s11281_s5 = inlined_call_operand.vmem [shape: f32[1,8], index: 5, kind: input, shape index: {}]   ;;  %s11282_s6 = inlined_call_operand.vmem [shape: f32[1,8], index: 6, kind: input, shape index: {}]   ;;  %s11283_s7 = inlined_call_operand.vmem [shape: bf16[8,32], index: 7, kind: input, shape index: {}]   ;;  %s11284_s8 = inlined_call_operand.vmem [shape: f32[1,32], index: 8, kind: input, shape index: {}]   ;;  %s11285_s9 = inlined_call_operand.vmem [shape: bf16[8,32], index: 9, kind: input, shape index: {}]   ;;  %s11286_s10 = inlined_call_operand.hbm [shape: f32[2,8,8,32], index: 10, kind: output, shape index: {}]  }
   0x1   :  { %17 = vsyncpa [#allocation4 + $0x1], 0  ;;  %s8528_s13 = smov 0   ;;  %s8530_s14 = smov 0  }
   0x2   :  { %s8532_s15 = smov 0   ;;  %s8534_s16 = smov 0  }
   0x3 LB: > { %s8549_s17 = sadd.s32 4294967295, %s8466_s16   ;;  %s7284_s18 = sadd.s32 4294967294, %s8466_s16   ;;  %s8466_s16 = sphi %s8534_s16, %s11396_s16   ;;  %s8462_s15 = sphi %s8532_s15, %s11395_s15   ;;  %s8458_s14 = sphi %s8530_s14, %s11394_s14   ;;  %s8454_s13 = sphi %s8528_s13, %s11393_s13  }
   0x4   : > { %s8553_s19 = sadd.s32 1, %s8466_s16   ;;  %s245_s20 = sadd.s32 1, %s8462_s15 }
   0x5   : > { %s242_s21 = ssub.s32 %s8466_s16, %s8553_s19  ;;  %p255_p0 = scmp.ne.s32.totalorder %s8462_s15, %s8458_s14 }
   0x6   : > { %p243_p1 = scmp.eq.s32.totalorder %s242_s21, 0  ;;  %p256_p2 = scmp.eq.s32.totalorder %s8549_s17, 1 }
   0x7   : > { %p261_p3 = scmp.ne.s32.totalorder %s8458_s14, %s8454_s13  ;;  %p262_p4 = scmp.eq.s32.totalorder %s7284_s18, 1 }
   0x8   : > { %s8564_s22 = scalar_select %p243_p1, %s8462_s15, %s245_s20  }
   0x9   : > { %p8566_p5 = por %p256_p2, %p255_p0  ;;  %p8570_p6 = por %p262_p4, %p261_p3 }
   0xa   : > { %p7287_p7 = scmp.ge.s32.totalorder %s8466_s16, 1  ;;  %p315_p8 = scmp.lt.s32.totalorder %s8466_s16, 3 }
   0xc   : > { %p316_p9 = pnand %p7287_p7, %p315_p8 }
   0xe   : > { %319 = sbr.rel (%p316_p9) target bundleno = 1124 (0x464), region = 60 }
  0x13   : > { %v407_v0 = vld [vmem:[%s11277_s1] sm:$0xf]  ;;  %vm464_vm0 = vcmask 1043456   ;;  %p353_p10 = scmp.lt.s32.totalorder %s8549_s17, 1  ;;  %v5715_v1 = vlaneseq  ;;  %v8468_v3 = vmov 1983009808  }
  0x14   : > { %8267 = vmatprep.subr.msk.bf16.mxu0 %vm464_vm0, %v407_v0  ;;  %v466_v2 = vsel %vm464_vm0, %v407_v0, 0  ;;  %v5713_v4 = vunpack.c.l.s4 %v8468_v3  ;;  %vm415_vm1 = vcmask 64512   ;;  %vm6658_vm2 = vcmask 1041409   ;;  %s7726_s20 = sshll.u32 %s8549_s17, 10 }
  0x15   : > { %7908 = vmatpush3.bf16.msra.mxu0 %v466_v2  ;;  %s354_s27 = scalar_select %p353_p10, %s8549_s17, 1  ;;  %v5716_v5 = vshrl.u32 %v5715_v1, 7  ;;  %vm6661_vm3 = vcmask 1042434   ;;  %vm11288_vm4 = vcmask 1043459   ;;  %vm11287_vm5 = vcmask 1044484  }
  0x16   : > { %v5714_v6 = vunpack.c.0.s8 %v5713_v4  ;;  %vm6670_vm6 = vcmask 1045509   ;;  %vm6673_vm7 = vcmask 1046534   ;;  %vm6676_vm8 = vcmask 1047559   ;;  %s11226_s26 = scalar_lea.hbm %s11286_s10, %s7726_s20 }
  0x17   : > { %s7693_s28 = sshll.u32 %s354_s27, 8  ;;  %vm732_vm9 = vcmask 60416   ;;  %vm735_vm10 = vcmask 57344   ;;  %vm1382_vm11 = vsmask.f32 3328 }
  0x18   : > { %s8586_s11 = scalar_lea.vmem %s11276_s0, %s7693_s28  ;;  %v8590_v9 = vsub.s32 %v5714_v6, %v5716_v5  ;;  %vm1383_vm12 = vsmask.f32 7440  ;;  %s350_s28 = sand.u32 1, %s8458_s14  }
  0x19   : > { %v359_v7 = vld [vmem:[%s8586_s11] sm:$0xff]  ;;  %v360_v8 = vld [vmem:[%s8586_s11 + $0x8] sm:$0xff]  ;;  %v361_v10 = vld [vmem:[%s8586_s11 + $0x10] sm:$0xff]  ;;  %s7288_s29 = sshll.u32 %s350_s28, 6  ;;  %s11236_s17 = scalar_lea.sflag [#allocation4], %s350_s28 }
  0x1a   : > { %11301 = vst [vmem:[#allocation6_spill] sm:$0xff] %v8590_v9  ;;  %v391_v11 = vpack.c.bf16 %v360_v8, %v359_v7  ;;  %v6063_v12 = vcombine.high %v359_v7, %v359_v7  ;;  %v362_v13 = vld [vmem:[%s8586_s11 + $0x18] sm:$0xff]  ;;  %v363_v14 = vld [vmem:[%s8586_s11 + $0x20] sm:$0xff]  ;;  %v364_v15 = vld [vmem:[%s8586_s11 + $0x28] sm:$0xff]  ;;  %v6070_v16 = vrot.slane %v359_v7, %v8590_v9  ;;  %v8598_v17 = vrot.slane %v360_v8, %v8590_v9  ;;  %s11207_s18 = scalar_lea.vmem [#allocation3], %s7288_s29  ;;  %s8470_s29 = smov [#allocation3]  }
  0x1b   : > { %v392_v18 = vpack.c.bf16 %v362_v13, %v361_v10  ;;  %v393_v19 = vpack.c.bf16 %v364_v15, %v363_v14  ;;  %v365_v39 = vld [vmem:[%s8586_s11 + $0x30] sm:$0xff]  ;;  %v366_v40 = vld [vmem:[%s8586_s11 + $0x38] sm:$0xff]  ;;  %v367_v42 = vld [vmem:[%s8586_s11 + $0x40] sm:$0xff]  ;;  %s7222_s21 = sshll.u32 %s11207_s18, 4  ;;  %s8410_s30 = sshll.u32 %s8470_s29, 4  ;;  %s11228_s21 = int_to_ptr.vmem [resolvable:$true] %s7222_s21  ;;  %s8411_s30 = int_to_ptr.vmem [resolvable:$false] %s8410_s30 }
  0x1c   : > { %11302 = vst [vmem:[#allocation7_spill] sm:$0xff] %v8598_v17  ;;  %7909 = vmatprep.mubr.msk.bf16.mxu0 %vm415_vm1, %v391_v11  ;;  %v6077_v20 = vrot.slane %v6063_v12, %v8590_v9  ;;  %v6078_v21 = vcombine.high %v6070_v16, %v6070_v16  ;;  %v6464_v22 = vpack.c.bf16 %v6070_v16, %v6070_v16  ;;  %v368_v43 = vld [vmem:[%s8586_s11 + $0x48] sm:$0xff]  ;;  %v369_v46 = vld [vmem:[%s8586_s11 + $0x50] sm:$0xff]  ;;  %v370_v49 = vld [vmem:[%s8586_s11 + $0x58] sm:$0xff]  ;;  %s8406_s27 = scalar_lea.vmem %s11228_s21, 1024  ;;  %s8412_s12 = scalar_lea.vmem %s8411_s30, 2048 }
  0x1d   : > { %v6468_v23 = vpack.c.bf16 %v8598_v17, %v8598_v17  ;;  %7910 = vmatmul.mubr.msk.bf16.vlgmr.msra.gmra.mxu0 %vm415_vm1, %v392_v18  ;;  %v394_v45 = vpack.c.bf16 %v366_v40, %v365_v39  ;;  %v395_v47 = vpack.c.bf16 %v368_v43, %v367_v42  ;;  %v6131_v48 = vcombine.high %v367_v42, %v367_v42  ;;  %v371_v50 = vld [vmem:[%s8586_s11 + $0x60] sm:$0xff]  ;;  %v372_v51 = vld [vmem:[%s8586_s11 + $0x68] sm:$0xff]  ;;  %vm8771_vm13 = vmor %vm1382_vm11, %vm1383_vm12  ;;  %p8407_p11 = scmp.ne.s32.totalorder %s11228_s21, %s8406_s27  ;;  %p8413_p0 = scmp.lt.s32.totalorder %s11228_s21, %s8411_s30 }
  0x1e   : > { %v6079_v24 = vcombine.high %v6077_v20, %v6077_v20  ;;  %v6466_v25 = vpack.c.bf16 %v6077_v20, %v6077_v20  ;;  %7913 = vmatprep.mubr.msk.bf16.mxu0 %vm415_vm1, %v393_v19  ;;  %v6465_v26 = vpack.c.bf16 %v6078_v21, %v6078_v21  ;;  %v6593_v30 = vunpack.c.l.b16 %v6464_v22  ;;  %p8414_p1 = scmp.lt.s32.totalorder %s8412_s12, %s8406_s27 }
  0x1f   : > { %v6597_v29 = vunpack.c.l.b16 %v6468_v23  ;;  %v6138_v52 = vrot.slane %v367_v42, %v8590_v9  ;;  %v6145_v53 = vrot.slane %v6131_v48, %v8590_v9  ;;  %v6148_v54 = vcombine.high %v368_v43, %v368_v43  ;;  %p8408_p12 = pnand %p8407_p11, %p8566_p5 }
  0x20   : > { %v6467_v27 = vpack.c.bf16 %v6079_v24, %v6079_v24  ;;  %v6595_v28 = vunpack.c.l.b16 %v6466_v25  ;;  %v6594_v31 = vunpack.c.l.b16 %v6465_v26  ;;  %v6155_v55 = vrot.slane %v368_v43, %v8590_v9  ;;  %p8415_p2 = por %p8414_p1, %p8413_p0 }
  0x21   : > { %v6666_v36 = vrot.slane %v6597_v29, 4  ;;  %v6146_v56 = vcombine.high %v6138_v52, %v6138_v52  ;;  %v6480_v57 = vpack.c.bf16 %v6138_v52, %v6138_v52  ;;  %v396_v58 = vpack.c.bf16 %v370_v49, %v369_v46  ;;  %v374_v52 = vld [vmem:[%s8586_s11 + $0x78] sm:$0xff]  ;;  %p8409_p13 = pneg %p8408_p12 }
  0x22   : > { %v6596_v32 = vunpack.c.l.b16 %v6467_v27  ;;  %v6660_v33 = vrot.slane %v6595_v28, 6  ;;  %v6657_v34 = vrot.slane %v6594_v31, 7  ;;  %v397_v59 = vpack.c.bf16 %v372_v51, %v371_v50 }
  0x23   : > { %v6147_v60 = vcombine.high %v6145_v53, %v6145_v53  ;;  %v6162_v61 = vrot.slane %v6148_v54, %v8590_v9  ;;  %v6163_v62 = vcombine.high %v6155_v55, %v6155_v55  ;;  %v6482_v63 = vpack.c.bf16 %v6145_v53, %v6145_v53  ;;  %p8416_p3 = pnand %p8415_p2, %p8409_p13 }
  0x24   : > { %v6663_v35 = vrot.slane %v6596_v32, 5  ;;  %v6659_v37 = vsel %vm6658_vm2, %v6657_v34, %v6593_v30  ;;  %v6481_v0 = vpack.c.bf16 %v6146_v56, %v6146_v56  ;;  %v6484_v1 = vpack.c.bf16 %v6155_v55, %v6155_v55 }
  0x25   : > { %v6662_v38 = vsel %vm6661_vm3, %v6660_v33, %v6659_v37  ;;  %7914 = vmatmul.mubr.msk.bf16.gmra.mxu0 %vm415_vm1, %v394_v45  ;;  %v6609_v2 = vunpack.c.l.b16 %v6480_v57  ;;  %v6165_v3 = vcombine.high %v371_v50, %v371_v50  ;;  %v6164_v4 = vcombine.high %v6162_v61, %v6162_v61  ;;  %v375_v57 = vld [vmem:[%s8586_s11 + $0x80] sm:$0xff] }
  0x26   : > { %v6665_v41 = vsel %vm11288_vm4, %v6663_v35, %v6662_v38  ;;  %7917 = vmatprep.mubr.msk.bf16.mxu0 %vm415_vm1, %v395_v47  ;;  %v6483_v5 = vpack.c.bf16 %v6147_v60, %v6147_v60  ;;  %v6485_v6 = vpack.c.bf16 %v6163_v62, %v6163_v62  ;;  %v6486_v7 = vpack.c.bf16 %v6162_v61, %v6162_v61 }
  0x27   : > { %v8614_v44 = vsel %vm11287_vm5, %v6666_v36, %v6665_v41  ;;  %v6610_v8 = vunpack.c.l.b16 %v6481_v0  ;;  %v6611_v10 = vunpack.c.l.b16 %v6482_v63  ;;  %v6613_v11 = vunpack.c.l.b16 %v6484_v1 }
  0x28   : > { %11303 = vst [vmem:[#allocation8_spill] sm:$0xff] %v8614_v44  ;;  %v6172_v12 = vrot.slane %v371_v50, %v8590_v9  ;;  %v6487_v13 = vpack.c.bf16 %v6164_v4, %v6164_v4  ;;  %v6612_v14 = vunpack.c.l.b16 %v6483_v5  ;;  %v6614_v15 = vunpack.c.l.b16 %v6485_v6 }
  0x29   : > { %v6615_v16 = vunpack.c.l.b16 %v6486_v7  ;;  %v6692_v18 = vrot.slane %v6610_v8, 7  ;;  %v6694_v19 = vrot.slane %v6611_v10, 6  ;;  %v6698_v20 = vrot.slane %v6613_v11, 4  ;;  %v377_v11 = vld [vmem:[%s8586_s11 + $0x90] sm:$0xff] }
  0x2a   : > { %v6179_v21 = vrot.slane %v6165_v3, %v8590_v9  ;;  %v6616_v22 = vunpack.c.l.b16 %v6487_v13  ;;  %v6696_v23 = vrot.slane %v6612_v14, 5  ;;  %v6700_v24 = vrot.slane %v6614_v15, 3 }
  0x2b   : > { %v6702_v25 = vrot.slane %v6615_v16, 2  ;;  %v6693_v26 = vsel %vm6658_vm2, %v6692_v18, %v6609_v2  ;;  %v6180_v27 = vcombine.high %v6172_v12, %v6172_v12  ;;  %v6182_v29 = vcombine.high %v372_v51, %v372_v51  ;;  %v379_v18 = vld [vmem:[%s8586_s11 + $0xa0] sm:$0xff] }
  0x2c   : > { %v6181_v28 = vcombine.high %v6179_v21, %v6179_v21  ;;  %v6695_v30 = vsel %vm6661_vm3, %v6694_v19, %v6693_v26  ;;  %v6704_v31 = vrot.slane %v6616_v22, 1  ;;  %v6189_v32 = vrot.slane %v372_v51, %v8590_v9  ;;  %v373_v51 = vld [vmem:[%s8586_s11 + $0x70] sm:$0xff]  ;;  %v380_v19 = vld [vmem:[%s8586_s11 + $0xa8] sm:$0xff] }
  0x2d   : > { %7918 = vmatmul.mubr.msk.bf16.gmra.mxu0 %vm415_vm1, %v396_v58  ;;  %v6488_v33 = vpack.c.bf16 %v6172_v12, %v6172_v12  ;;  %v6697_v34 = vsel %vm11288_vm4, %v6696_v23, %v6695_v30  ;;  %v6196_v35 = vrot.slane %v6182_v29, %v8590_v9  ;;  %v6489_v36 = vpack.c.bf16 %v6180_v27, %v6180_v27  ;;  %v376_v58 = vld [vmem:[%s8586_s11 + $0x88] sm:$0xff]  ;;  %v378_v12 = vld [vmem:[%s8586_s11 + $0x98] sm:$0xff]  ;;  %v381_v23 = vld [vmem:[%s8586_s11 + $0xb0] sm:$0xff] }
  0x2e   : > { %7921 = vmatprep.mubr.msk.bf16.mxu0 %vm415_vm1, %v397_v59  ;;  %v6490_v37 = vpack.c.bf16 %v6179_v21, %v6179_v21  ;;  %v6699_v38 = vsel %vm11287_vm5, %v6698_v20, %v6697_v34  ;;  %v6197_v39 = vcombine.high %v6189_v32, %v6189_v32  ;;  %v6491_v40 = vpack.c.bf16 %v6181_v28, %v6181_v28  ;;  %v384_v26 = vld [vmem:[%s8586_s11 + $0xc8] sm:$0xff] }
  0x2f   : > { %v6492_v41 = vpack.c.bf16 %v6189_v32, %v6189_v32  ;;  %v6701_v42 = vsel %vm6670_vm6, %v6700_v24, %v6699_v38  ;;  %v6198_v43 = vcombine.high %v6196_v35, %v6196_v35  ;;  %v6494_v45 = vpack.c.bf16 %v6196_v35, %v6196_v35  ;;  %v382_v24 = vld [vmem:[%s8586_s11 + $0xb8] sm:$0xff]  ;;  %v385_v38 = vld [vmem:[%s8586_s11 + $0xd0] sm:$0xff] }
  0x30   : > { %v6617_v46 = vunpack.c.l.b16 %v6488_v33  ;;  %v6703_v47 = vsel %vm6673_vm7, %v6702_v25, %v6701_v42  ;;  %v6493_v48 = vpack.c.bf16 %v6197_v39, %v6197_v39  ;;  %v6618_v49 = vunpack.c.l.b16 %v6489_v36  ;;  %v383_v25 = vld [vmem:[%s8586_s11 + $0xc0] sm:$0xff]  ;;  %v386_v39 = vld [vmem:[%s8586_s11 + $0xd8] sm:$0xff] }
  0x31   : > { %v6619_v50 = vunpack.c.l.b16 %v6490_v37  ;;  %v8641_v53 = vsel %vm6676_vm8, %v6704_v31, %v6703_v47  ;;  %v6495_v54 = vpack.c.bf16 %v6198_v43, %v6198_v43  ;;  %v6620_v55 = vunpack.c.l.b16 %v6491_v40  ;;  %v388_v47 = vld [vmem:[%s8586_s11 + $0xe8] sm:$0xff] }
  0x32   : > { %11304 = vst [vmem:[#allocation9_spill] sm:$0xff] %v8641_v53  ;;  %v6621_v56 = vunpack.c.l.b16 %v6492_v41  ;;  %v6622_v59 = vunpack.c.l.b16 %v6493_v48  ;;  %v6623_v60 = vunpack.c.l.b16 %v6494_v45  ;;  %v6706_v61 = vrot.slane %v6618_v49, 7 }
  0x33   : > { %v6708_v62 = vrot.slane %v6619_v50, 6  ;;  %v6624_v63 = vunpack.c.l.b16 %v6495_v54  ;;  %v6710_v0 = vrot.slane %v6620_v55, 5  ;;  %v398_v2 = vpack.c.bf16 %v374_v52, %v373_v51 }
  0x34   : > { %v6712_v1 = vrot.slane %v6621_v56, 4  ;;  %v6707_v3 = vsel %vm6658_vm2, %v6706_v61, %v6617_v46  ;;  %v6714_v4 = vrot.slane %v6622_v59, 3  ;;  %v399_v5 = vpack.c.bf16 %v376_v58, %v375_v57  ;;  %v387_v46 = vld [vmem:[%s8586_s11 + $0xe0] sm:$0xff]  ;;  %v389_v59 = vld [vmem:[%s8586_s11 + $0xf0] sm:$0xff] }
  0x35   : > { %v6709_v6 = vsel %vm6661_vm3, %v6708_v62, %v6707_v3  ;;  %v6716_v7 = vrot.slane %v6623_v60, 2  ;;  %7922 = vmatmul.mubr.msk.bf16.gmra.mxu0 %vm415_vm1, %v398_v2  ;;  %v6718_v10 = vrot.slane %v6624_v63, 1  ;;  %v400_v16 = vpack.c.bf16 %v378_v12, %v377_v11  ;;  %v390_v60 = vld [vmem:[%s8586_s11 + $0xf8] sm:$0xff] }
  0x36   : > { %v6711_v8 = vsel %vm11288_vm4, %v6710_v0, %v6709_v6  ;;  %7925 = vmatprep.mubr.msk.bf16.mxu0 %vm415_vm1, %v399_v5  ;;  %v401_v22 = vpack.c.bf16 %v380_v19, %v379_v18  ;;  %v402_v27 = vpack.c.bf16 %v382_v24, %v381_v23  ;;  %v403_v28 = vpack.c.bf16 %v384_v26, %v383_v25 }
  0x37   : > { %v6713_v13 = vsel %vm11287_vm5, %v6712_v1, %v6711_v8  ;;  %v6267_v29 = vcombine.high %v383_v25, %v383_v25  ;;  %v6274_v30 = vrot.slane %v383_v25, %v8590_v9  ;;  %v8673_v33 = vrot.slane %v384_v26, %v8590_v9 }
  0x38   : > { %v6715_v14 = vsel %vm6670_vm6, %v6714_v4, %v6713_v13  ;;  %v404_v49 = vpack.c.bf16 %v386_v39, %v385_v38  ;;  %v405_v55 = vpack.c.bf16 %v388_v47, %v387_v46  ;;  %v6301_v58 = vcombine.high %v387_v46, %v387_v46 }
  0x39   : > { %v6717_v15 = vsel %vm6673_vm7, %v6716_v7, %v6715_v14  ;;  %v6281_v31 = vrot.slane %v6267_v29, %v8590_v9  ;;  %v6282_v32 = vcombine.high %v6274_v30, %v6274_v30  ;;  %11306 = vst [vmem:[#allocation11_spill] sm:$0xff] %v8673_v33  ;;  %v6512_v34 = vpack.c.bf16 %v6274_v30, %v6274_v30  ;;  %v1325_v29 = vld [vmem:[%s11280_s4] sm:$0xf] }
  0x3a   : > { %v8658_v20 = vsel %vm6676_vm8, %v6718_v10, %v6717_v15  ;;  %v6516_v40 = vpack.c.bf16 %v8673_v33, %v8673_v33  ;;  %v6308_v62 = vrot.slane %v387_v46, %v8590_v9  ;;  %v8689_v63 = vrot.slane %v388_v47, %v8590_v9  ;;  %8269 = vmatprep.subr.msk.bf16.mxu0 %vm464_vm0, %v1325_v29 }
  0x3b   : > { %11305 = vst [vmem:[#allocation10_spill] sm:$0xff] %v8658_v20  ;;  %v6283_v35 = vcombine.high %v6281_v31, %v6281_v31  ;;  %v6513_v36 = vpack.c.bf16 %v6282_v32, %v6282_v32  ;;  %v6514_v37 = vpack.c.bf16 %v6281_v31, %v6281_v31  ;;  %v6641_v42 = vunpack.c.l.b16 %v6512_v34 }
  0x3c   : > { %v6645_v48 = vunpack.c.l.b16 %v6516_v40  ;;  %11307 = vst [vmem:[#allocation12_spill] sm:$0xff] %v8689_v63  ;;  %v6315_v1 = vrot.slane %v6301_v58, %v8590_v9  ;;  %v6316_v3 = vcombine.high %v6308_v62, %v6308_v62  ;;  %v406_v4 = vpack.c.bf16 %v390_v60, %v389_v59  ;;  %v8785_v58 = vld [vmem:[%s11280_s4 + $0x8] sm:$0xf]  ;;  %v8792_v59 = vld [vmem:[%s11278_s2] ss:$0 sm:$0xff] }
  0x3d   : > { %7926 = vmatmul.mubr.msk.bf16.gmra.mxu0 %vm415_vm1, %v400_v16  ;;  %v6515_v41 = vpack.c.bf16 %v6283_v35, %v6283_v35  ;;  %v6642_v43 = vunpack.c.l.b16 %v6513_v36  ;;  %v6643_v45 = vunpack.c.l.b16 %v6514_v37  ;;  %v6520_v6 = vpack.c.bf16 %v6308_v62, %v6308_v62 }
  0x3e   : > { %7929 = vmatprep.mubr.msk.bf16.mxu0 %vm415_vm1, %v401_v22  ;;  %v6754_v54 = vrot.slane %v6645_v48, 4  ;;  %v6317_v5 = vcombine.high %v6315_v1, %v6315_v1  ;;  %v6522_v7 = vpack.c.bf16 %v6315_v1, %v6315_v1  ;;  %v6524_v8 = vpack.c.bf16 %v8689_v63, %v8689_v63 }
  0x3f   : > { %v6644_v50 = vunpack.c.l.b16 %v6515_v41  ;;  %v6748_v51 = vrot.slane %v6642_v43, 7  ;;  %v6750_v52 = vrot.slane %v6643_v45, 6  ;;  %v6521_v10 = vpack.c.bf16 %v6316_v3, %v6316_v3 }
  0x40   : > { %v6523_v11 = vpack.c.bf16 %v6317_v5, %v6317_v5  ;;  %v6651_v12 = vunpack.c.l.b16 %v6522_v7  ;;  %v6653_v13 = vunpack.c.l.b16 %v6524_v8  ;;  %v6649_v14 = vunpack.c.l.b16 %v6520_v6 }
  0x41   : > { %v6749_v56 = vsel %vm6658_vm2, %v6748_v51, %v6641_v42  ;;  %v6752_v57 = vrot.slane %v6644_v50, 5  ;;  %v6650_v15 = vunpack.c.l.b16 %v6521_v10  ;;  %v8469_v25 = vmov 0   ;;  %v1326_v51 = vld [vmem:[%s11280_s4 + $0x4] sm:$0xf] }
  0x42   : > { %v6751_v61 = vsel %vm6661_vm3, %v6750_v52, %v6749_v56  ;;  %v6652_v16 = vunpack.c.l.b16 %v6523_v11  ;;  %v6764_v18 = vrot.slane %v6651_v12, 6  ;;  %v6768_v23 = vrot.slane %v6653_v13, 4  ;;  %740 = vst.msk [vmem:[#allocation2 + $0x18] sm:$0xf] %vm732_vm9, %v8469_v25  ;;  %733 = vst.msk [vmem:[#allocation2] sm:$0xf] %vm732_vm9, %v8469_v25  ;;  %8268 = vmatprep.subr.msk.bf16.mxu1 %vm464_vm0, %v1326_v51 }
  0x43   : > { %v6753_v0 = vsel %vm11288_vm4, %v6752_v57, %v6751_v61  ;;  %v6762_v19 = vrot.slane %v6650_v15, 7  ;;  %734 = vst.msk [vmem:[#allocation2 + $0x4] sm:$0xf] %vm732_vm9, %v8469_v25  ;;  %737 = vst.msk [vmem:[#allocation2 + $0xc] sm:$0xf] %vm732_vm9, %v8469_v25  ;;  %v2142_v30 = vsel %vm464_vm0, %v1325_v29, 0 }
  0x44   : > { %v8694_v2 = vsel %vm11287_vm5, %v6754_v54, %v6753_v0  ;;  %v6766_v22 = vrot.slane %v6652_v16, 5  ;;  %738 = vst.msk [vmem:[#allocation2 + $0x10] sm:$0xf] %vm732_vm9, %v8469_v25  ;;  %741 = vst.msk [vmem:[#allocation2 + $0x1c] sm:$0xf] %vm732_vm9, %v8469_v25  ;;  %7976 = vmatpush3.bf16.msra.mxu0 %v2142_v30  ;;  %v1866_v54 = vsel %vm464_vm0, %v1326_v51, 0 }
  0x45   : > { %7930 = vmatmul.mubr.msk.bf16.gmra.mxu0 %vm415_vm1, %v402_v27  ;;  %11308 = vst [vmem:[#allocation13_spill] sm:$0xff] %v8694_v2  ;;  %v6763_v24 = vsel %vm6658_vm2, %v6762_v19, %v6649_v14  ;;  %743 = vst.msk [vmem:[#allocation2 + $0x24] sm:$0xf] %vm732_vm9, %v8469_v25  ;;  %7942 = vmatpush3.bf16.msra.mxu1 %v1866_v54  ;;  %v8797_v61 = vld [vmem:[%s11279_s3] ss:$0 sm:$0xff] }
  0x46   : > { %7933 = vmatprep.mubr.msk.bf16.mxu0 %vm415_vm1, %v403_v28  ;;  %744 = vst.msk [vmem:[#allocation2 + $0x28] sm:$0xf] %vm732_vm9, %v8469_v25  ;;  %746 = vst.msk [vmem:[#allocation2 + $0x30] sm:$0xf] %vm732_vm9, %v8469_v25  ;;  %v6765_v26 = vsel %vm6661_vm3, %v6764_v18, %v6763_v24  ;;  %8270 = vmatprep.subr.msk.bf16.mxu1 %vm464_vm0, %v8785_v58  ;;  %vm1209_vm12 = vsmask.f32 7938 }
  0x47   : > { %747 = vst.msk [vmem:[#allocation2 + $0x34] sm:$0xf] %vm732_vm9, %v8469_v25  ;;  %749 = vst.msk [vmem:[#allocation2 + $0x3c] sm:$0xf] %vm732_vm9, %v8469_v25  ;;  %v6767_v27 = vsel %vm11288_vm4, %v6766_v22, %v6765_v26  ;;  %vm885_vm4 = vsmask.f32 4368 }
  0x48   : > { %750 = vst.msk [vmem:[#allocation2 + $0x40] sm:$0xf] %vm732_vm9, %v8469_v25  ;;  %752 = vst.msk [vmem:[#allocation2 + $0x48] sm:$0xf] %vm732_vm9, %v8469_v25  ;;  %v8739_v28 = vsel %vm11287_vm5, %v6768_v23, %v6767_v27 }
  0x49   : > { %753 = vst.msk [vmem:[#allocation2 + $0x4c] sm:$0xf] %vm732_vm9, %v8469_v25  ;;  %755 = vst.msk [vmem:[#allocation2 + $0x54] sm:$0xf] %vm732_vm9, %v8469_v25  ;;  %v1334_v31 = vld [vmem:[#allocation2] sm:$0xf] }
  0x4a   : > { %756 = vst.msk [vmem:[#allocation2 + $0x58] sm:$0xf] %vm732_vm9, %v8469_v25  ;;  %758 = vst.msk [vmem:[#allocation2 + $0x60] sm:$0xf] %vm732_vm9, %v8469_v25  ;;  %v1335_v32 = vld [vmem:[#allocation2 + $0x4] sm:$0xf] }
  0x4b   : > { %759 = vst.msk [vmem:[#allocation2 + $0x64] sm:$0xf] %vm732_vm9, %v8469_v25  ;;  %761 = vst.msk [vmem:[#allocation2 + $0x6c] sm:$0xf] %vm732_vm9, %v8469_v25  ;;  %v7373_v34 = vcombine.low %v1334_v31, %v1335_v32  ;;  %v1386_v35 = vshrl.u32 %v1334_v31, 16  ;;  %v1389_v36 = vshll.u32 %v1334_v31, 16 }
  0x4c   : > { %762 = vst.msk [vmem:[#allocation2 + $0x70] sm:$0xf] %vm732_vm9, %v8469_v25  ;;  %764 = vst.msk [vmem:[#allocation2 + $0x78] sm:$0xf] %vm732_vm9, %v8469_v25  ;;  %v1395_v37 = vshll.u32 %v1335_v32, 16  ;;  %v1399_v38 = vshrl.u32 %v1335_v32, 16 }
  0x4d   : > { %7934 = vmatmul.mubr.msk.bf16.gmra.mxu0 %vm415_vm1, %v404_v49  ;;  %765 = vst.msk [vmem:[#allocation2 + $0x7c] sm:$0xf] %vm732_vm9, %v8469_v25  ;;  %767 = vst.msk [vmem:[#allocation2 + $0x84] sm:$0xf] %vm732_vm9, %v8469_v25  ;;  %v1388_v39 = vrot.slane %v1386_v35, 4  ;;  %v1391_v40 = vrot.slane %v1389_v36, 5 }
  0x4e   : > { %7937 = vmatprep.mubr.msk.bf16.mxu0 %vm415_vm1, %v405_v55  ;;  %768 = vst.msk [vmem:[#allocation2 + $0x88] sm:$0xf] %vm732_vm9, %v8469_v25  ;;  %770 = vst.msk [vmem:[#allocation2 + $0x90] sm:$0xf] %vm732_vm9, %v8469_v25  ;;  %v1397_v41 = vrot.slane %v1395_v37, 5  ;;  %v1401_v42 = vrot.slane %v1399_v38, 4 }
  0x4f   : > { %771 = vst.msk [vmem:[#allocation2 + $0x94] sm:$0xf] %vm732_vm9, %v8469_v25  ;;  %773 = vst.msk [vmem:[#allocation2 + $0x9c] sm:$0xf] %vm732_vm9, %v8469_v25  ;;  %v1392_v45 = vor.u32 %v1391_v40, %v1388_v39  ;;  %v1220_v26 = vld [vmem:[#allocation2 + $0x18] sm:$0xf] }
  0x50   : > { %774 = vst.msk [vmem:[#allocation2 + $0xa0] sm:$0xf] %vm732_vm9, %v8469_v25  ;;  %776 = vst.msk [vmem:[#allocation2 + $0xa8] sm:$0xf] %vm732_vm9, %v8469_v25  ;;  %v1402_v46 = vor.u32 %v1401_v42, %v1397_v41 }
  0x51   : > { %777 = vst.msk [vmem:[#allocation2 + $0xac] sm:$0xf] %vm732_vm9, %v8469_v25  ;;  %779 = vst.msk [vmem:[#allocation2 + $0xb4] sm:$0xf] %vm732_vm9, %v8469_v25  ;;  %v1393_v48 = vrot.slane %v1392_v45, 4 }
  0x52   : > { %780 = vst.msk [vmem:[#allocation2 + $0xb8] sm:$0xf] %vm732_vm9, %v8469_v25  ;;  %782 = vst.msk [vmem:[#allocation2 + $0xc0] sm:$0xf] %vm732_vm9, %v8469_v25  ;;  %v1403_v49 = vrot.slane %v1402_v46, 4 }
  0x53   : > { %783 = vst.msk [vmem:[#allocation2 + $0xc4] sm:$0xf] %vm732_vm9, %v8469_v25  ;;  %785 = vst.msk [vmem:[#allocation2 + $0xcc] sm:$0xf] %vm732_vm9, %v8469_v25  ;;  %v1398_v55 = vsel %vm8771_vm13, %v1393_v48, %v1397_v41 }
  0x54   : > { %786 = vst.msk [vmem:[#allocation2 + $0xd0] sm:$0xf] %vm732_vm9, %v8469_v25  ;;  %11309 = vst [vmem:[#allocation14_spill] sm:$0xff] %v8739_v28 }
  0x55   : > { %7938 = vmatmul.mubr.msk.bf16.gmra.mxu0 %vm415_vm1, %v406_v4  ;;  %742 = vst.msk [vmem:[#allocation2 + $0x20] sm:$0x1] %vm735_vm10, %v8469_v25  ;;  %736 = vst.msk [vmem:[#allocation2 + $0x8] sm:$0x1] %vm735_vm10, %v8469_v25 }
  0x56   : > { %739 = vst.msk [vmem:[#allocation2 + $0x14] sm:$0x1] %vm735_vm10, %v8469_v25  ;;  %745 = vst.msk [vmem:[#allocation2 + $0x2c] sm:$0x1] %vm735_vm10, %v8469_v25  ;;  %7977 = vmatprep.mubr.msk.bf16.mxu0 %vm415_vm1, %v7373_v34  ;;  %v1211_v34 = vld [vmem:[#allocation2 + $0xc] sm:$0xf] }
  0x57   : > { %748 = vst.msk [vmem:[#allocation2 + $0x38] sm:$0x1] %vm735_vm10, %v8469_v25  ;;  %751 = vst.msk [vmem:[#allocation2 + $0x44] sm:$0x1] %vm735_vm10, %v8469_v25 }
  0x58   : > { %754 = vst.msk [vmem:[#allocation2 + $0x50] sm:$0x1] %vm735_vm10, %v8469_v25  ;;  %757 = vst.msk [vmem:[#allocation2 + $0x5c] sm:$0x1] %vm735_vm10, %v8469_v25 }
  0x59   : > { %760 = vst.msk [vmem:[#allocation2 + $0x68] sm:$0x1] %vm735_vm10, %v8469_v25  ;;  %763 = vst.msk [vmem:[#allocation2 + $0x74] sm:$0x1] %vm735_vm10, %v8469_v25 }
  0x5a   : > { %766 = vst.msk [vmem:[#allocation2 + $0x80] sm:$0x1] %vm735_vm10, %v8469_v25  ;;  %769 = vst.msk [vmem:[#allocation2 + $0x8c] sm:$0x1] %vm735_vm10, %v8469_v25 }
  0x5b   : > { %772 = vst.msk [vmem:[#allocation2 + $0x98] sm:$0x1] %vm735_vm10, %v8469_v25  ;;  %775 = vst.msk [vmem:[#allocation2 + $0xa4] sm:$0x1] %vm735_vm10, %v8469_v25 }
  0x5c   : > { %778 = vst.msk [vmem:[#allocation2 + $0xb0] sm:$0x1] %vm735_vm10, %v8469_v25  ;;  %781 = vst.msk [vmem:[#allocation2 + $0xbc] sm:$0x1] %vm735_vm10, %v8469_v25  ;;  %v8765_v43 = vld [vmem:[#allocation2 + $0x8] sm:$0x1] }
  0x5d   : > { %784 = vst.msk [vmem:[#allocation2 + $0xc8] sm:$0x1] %vm735_vm10, %v8469_v25  ;;  %787 = vst.msk [vmem:[#allocation2 + $0xd4] sm:$0x1] %vm735_vm10, %v8469_v25  ;;  %v1405_v47 = vshll.u32 %v8765_v43, 16 }
  0x5e   : > { %v1224_v46 = vld [vmem:[#allocation2 + $0x20] sm:$0x1] }
  0x5f   : > { %v1407_v50 = vrot.slane %v1405_v47, 5 }
  0x61   : > { %v1408_v56 = vsel %vm8771_vm13, %v1403_v49, %v1407_v50 }
  0x62   : > { %v7341_v57 = vcombine.low %v1398_v55, %v1408_v56 }
  0x64   : > { %7943 = vmatprep.mubr.msk.bf16.mxu1 %vm415_vm1, %v7341_v57 }
  0xdd   : > { %v7911_v60 = vpop.f32.mrf.mxu0 }
  0xde   : > { %v511_v62 = vadd.f32 %v7911_v60, %v8792_v59 }
  0xdf   : > { %v502_v0 = vpop.f32.mrf.mxu0 }
  0xe0   : > { %vm631_vm14 = vcmp.ge.f32.partialorder %v511_v62, 0.0  ;;  %v670_v1 = vmul.f32 %v8797_v61, %v511_v62  ;;  %v503_v3 = vadd.f32 %v8792_v59, %v502_v0 }
  0xe1   : > { %v7912_v4 = vpop.f32.mrf.mxu0 }
  0xe2   : > { %v702_v5 = vsel %vm631_vm14, %v511_v62, %v670_v1  ;;  %vm629_vm15 = vcmp.ge.f32.partialorder %v503_v3, 0.0  ;;  %v668_v6 = vmul.f32 %v8797_v61, %v503_v3  ;;  %v514_v7 = vadd.f32 %v7912_v4, %v8792_v59  ;;  %vm8808_vm14 = vmand %vm732_vm9, %vm1209_vm12 }
  0xe3   : > { %v7696_v8 = vpack.c.bf16 %v702_v5, %v702_v5  ;;  %v505_v10 = vpop.f32.mrf.mxu0 }
  0xe4   : > { %v700_v11 = vsel %vm629_vm15, %v503_v3, %v668_v6  ;;  %vm632_vm11 = vcmp.ge.f32.partialorder %v514_v7, 0.0  ;;  %v671_v12 = vmul.f32 %v8797_v61, %v514_v7  ;;  %v506_v13 = vadd.f32 %v8792_v59, %v505_v10  ;;  %v1217_v3 = vld [vmem:[#allocation2 + $0x14] sm:$0x1] }
  0xe5   : > { %v905_v14 = vshrl.u32 %v7696_v8, 16  ;;  %v7694_v15 = vpack.c.bf16 %v700_v11, %v700_v11  ;;  %v908_v22 = vshll.u32 %v7696_v8, 16  ;;  %vm884_vm15 = vsmask.f32 256  ;;  %v7915_v41 = vpop.f32.mrf.mxu0 }
  0xe6   : > { %v703_v16 = vsel %vm632_vm11, %v514_v7, %v671_v12  ;;  %vm630_vm5 = vcmp.ge.f32.partialorder %v506_v13, 0.0  ;;  %v669_v18 = vmul.f32 %v8797_v61, %v506_v13  ;;  %vm8815_vm11 = vmor %vm884_vm15, %vm885_vm4  ;;  %v527_v48 = vadd.f32 %v7915_v41, %v8792_v59 }
  0xe7   : > { %v907_v19 = vrot.slane %v905_v14, 7  ;;  %v888_v23 = vshrl.u32 %v7694_v15, 16  ;;  %v7697_v24 = vpack.c.bf16 %v703_v16, %v703_v16  ;;  %v891_v31 = vshll.u32 %v7694_v15, 16  ;;  %v518_v55 = vpop.f32.mrf.mxu0 }
  0xe8   : > { %v701_v27 = vsel %vm630_vm5, %v506_v13, %v669_v18  ;;  %vm8821_vm5 = vmand %vm735_vm10, %vm884_vm15  ;;  %vm635_vm4 = vcmp.ge.f32.partialorder %v527_v48, 0.0  ;;  %v674_v57 = vmul.f32 %v8797_v61, %v527_v48  ;;  %v519_v60 = vadd.f32 %v8792_v59, %v518_v55 }
  0xe9   : > { %v910_v29 = vor.u32 %v908_v22, %v907_v19  ;;  %v890_v30 = vrot.slane %v888_v23, 7  ;;  %v913_v32 = vshrl.u32 %v7697_v24, 16  ;;  %v7695_v35 = vpack.c.bf16 %v701_v27, %v701_v27  ;;  %v7916_v4 = vpop.f32.mrf.mxu0 }
  0xea   : > { %v916_v40 = vshll.u32 %v7697_v24, 16  ;;  %v911_v42 = vrot.slane %v907_v19, 4  ;;  %v706_v7 = vsel %vm635_vm4, %v527_v48, %v674_v57  ;;  %vm633_vm10 = vcmp.ge.f32.partialorder %v519_v60, 0.0 }
  0xeb   : > { %v1221_v36 = vsel %vm8808_vm14, %v910_v29, %v1220_v26  ;;  %v893_v37 = vor.u32 %v891_v31, %v890_v30  ;;  %v915_v39 = vrot.slane %v913_v32, 7  ;;  %v896_v47 = vshrl.u32 %v7695_v35, 16  ;;  %v521_v12 = vpop.f32.mrf.mxu0 }
  0xec   : > { %1222 = vst [vmem:[#allocation2 + $0x18] sm:$0xf] %v1221_v36  ;;  %v899_v54 = vshll.u32 %v7695_v35, 16  ;;  %v894_v62 = vrot.slane %v890_v30, 4  ;;  %v7700_v8 = vpack.c.bf16 %v706_v7, %v706_v7  ;;  %v672_v10 = vmul.f32 %v8797_v61, %v519_v60  ;;  %v1234_v36 = vld [vmem:[#allocation2 + $0x30] sm:$0xf] }
  0xed   : > { %v1212_v49 = vsel %vm8808_vm14, %v893_v37, %v1211_v34  ;;  %v918_v50 = vor.u32 %v916_v40, %v915_v39  ;;  %v920_v51 = vrot.slane %v915_v39, 4  ;;  %v898_v56 = vrot.slane %v896_v47, 7  ;;  %v7919_v24 = vpop.f32.mrf.mxu0 }
  0xee   : > { %1213 = vst [vmem:[#allocation2 + $0xc] sm:$0xf] %v1212_v49  ;;  %v530_v11 = vadd.f32 %v7916_v4, %v8792_v59  ;;  %v522_v16 = vadd.f32 %v8792_v59, %v521_v12  ;;  %v8845_v18 = vsel %vm464_vm0, %v8785_v58, 0  ;;  %v939_v19 = vshrl.u32 %v7700_v8, 16  ;;  %v1231_v12 = vld [vmem:[#allocation2 + $0x2c] sm:$0x1] }
  0xef   : > { %v919_v0 = vsel %vm8815_vm11, %v911_v42, %v918_v50  ;;  %v1225_v1 = vsel %vm8821_vm5, %v920_v51, %v1224_v46  ;;  %v901_v5 = vor.u32 %v899_v54, %v898_v56  ;;  %v903_v6 = vrot.slane %v898_v56, 4  ;;  %v534_v32 = vpop.f32.mrf.mxu0  ;;  %v1227_v56 = vld [vmem:[#allocation2 + $0x24] sm:$0xf] }
  0xf0   : > { %1223 = vst.msk [vmem:[#allocation2 + $0x1c] sm:$0xf] %vm732_vm9, %v919_v0  ;;  %1226 = vst [vmem:[#allocation2 + $0x20] sm:$0x1] %v1225_v1  ;;  %v942_v22 = vshll.u32 %v7700_v8, 16  ;;  %v704_v23 = vsel %vm633_vm10, %v519_v60, %v672_v10  ;;  %vm636_vm12 = vcmp.ge.f32.partialorder %v530_v11, 0.0  ;;  %v675_v29 = vmul.f32 %v8797_v61, %v530_v11 }
  0xf1   : > { %v902_v14 = vsel %vm8815_vm11, %v894_v62, %v901_v5  ;;  %v1218_v15 = vsel %vm8821_vm5, %v903_v6, %v1217_v3  ;;  %v7698_v27 = vpack.c.bf16 %v704_v23, %v704_v23  ;;  %vm634_vm15 = vcmp.ge.f32.partialorder %v522_v16, 0.0  ;;  %v7920_v49 = vpop.f32.mrf.mxu0 }
  0xf2   : > { %1214 = vst.msk [vmem:[#allocation2 + $0x10] sm:$0xf] %vm732_vm9, %v902_v14  ;;  %1219 = vst [vmem:[#allocation2 + $0x14] sm:$0x1] %v1218_v15  ;;  %v673_v30 = vmul.f32 %v8797_v61, %v522_v16  ;;  %v941_v31 = vrot.slane %v939_v19, 7  ;;  %v543_v58 = vadd.f32 %v7919_v24, %v8792_v59  ;;  %v707_v40 = vsel %vm636_vm12, %v530_v11, %v675_v29 }
  0xf3   : > { %v8848_v26 = vld [vmem:[#allocation2 + $0x18] sm:$0xf]  ;;  %v922_v37 = vshrl.u32 %v7698_v27, 16  ;;  %v925_v39 = vshll.u32 %v7698_v27, 16  ;;  %v7701_v47 = vpack.c.bf16 %v707_v40, %v707_v40  ;;  %v535_v54 = vadd.f32 %v8792_v59, %v534_v32  ;;  %v537_v0 = vpop.f32.mrf.mxu0 }
  0xf4   : > { %v1434_v34 = vshrl.u32 %v8848_v26, 16  ;;  %v1437_v35 = vshll.u32 %v8848_v26, 16  ;;  %v705_v41 = vsel %vm634_vm15, %v522_v16, %v673_v30  ;;  %v944_v42 = vor.u32 %v942_v22, %v941_v31  ;;  %v1238_v11 = vld [vmem:[#allocation2 + $0x38] sm:$0x1] }
  0xf5   : > { %v945_v46 = vrot.slane %v941_v31, 4  ;;  %v7699_v48 = vpack.c.bf16 %v705_v41, %v705_v41  ;;  %v924_v50 = vrot.slane %v922_v37, 7  ;;  %vm639_vm4 = vcmp.ge.f32.partialorder %v543_v58, 0.0 }
  0xf6   : > { %v678_v51 = vmul.f32 %v8797_v61, %v543_v58  ;;  %v1235_v55 = vsel %vm8808_vm14, %v944_v42, %v1234_v36  ;;  %v947_v57 = vshrl.u32 %v7701_v47, 16  ;;  %v950_v60 = vshll.u32 %v7701_v47, 16  ;;  %v1248_v47 = vld [vmem:[#allocation2 + $0x48] sm:$0xf] }
  0xf7   : > { %v930_v62 = vshrl.u32 %v7699_v48, 16  ;;  %1236 = vst [vmem:[#allocation2 + $0x30] sm:$0xf] %v1235_v55  ;;  %v927_v1 = vor.u32 %v925_v39, %v924_v50  ;;  %v928_v3 = vrot.slane %v924_v50, 4  ;;  %v933_v4 = vshll.u32 %v7699_v48, 16  ;;  %v7923_v39 = vpop.f32.mrf.mxu0  ;;  %v8355_v13 = vld [vmem:[#allocation2 + $0x18] sm:$0xff]  }
  0xf8   : > { %v710_v5 = vsel %vm639_vm4, %v543_v58, %v678_v51  ;;  %v949_v6 = vrot.slane %v947_v57, 7  ;;  %vm637_vm10 = vcmp.ge.f32.partialorder %v535_v54, 0.0  ;;  %v676_v14 = vmul.f32 %v8797_v61, %v535_v54 }
  0xf9   : > { %v932_v7 = vrot.slane %v930_v62, 7  ;;  %v7704_v8 = vpack.c.bf16 %v710_v5, %v710_v5  ;;  %v1228_v10 = vsel %vm8808_vm14, %v927_v1, %v1227_v56  ;;  %v546_v15 = vadd.f32 %v7920_v49, %v8792_v59  ;;  %v8864_v31 = vld [vmem:[#allocation2 + $0x10] sm:$0xf]  ;;  %v550_v50 = vpop.f32.mrf.mxu0 }
  0xfa   : > { %v538_v16 = vadd.f32 %v8792_v59, %v537_v0  ;;  %1229 = vst [vmem:[#allocation2 + $0x24] sm:$0xf] %v1228_v10  ;;  %v952_v19 = vor.u32 %v950_v60, %v949_v6  ;;  %v954_v22 = vrot.slane %v949_v6, 4  ;;  %v708_v30 = vsel %vm637_vm10, %v535_v54, %v676_v14 }
  0xfb   : > { %v935_v23 = vor.u32 %v933_v4, %v932_v7  ;;  %v937_v24 = vrot.slane %v932_v7, 4  ;;  %v973_v27 = vshrl.u32 %v7704_v8, 16  ;;  %v976_v29 = vshll.u32 %v7704_v8, 16  ;;  %v1241_v7 = vld [vmem:[#allocation2 + $0x3c] sm:$0xf] }
  0xfc   : > { %vm640_vm12 = vcmp.ge.f32.partialorder %v546_v15, 0.0  ;;  %v953_v58 = vsel %vm8815_vm11, %v945_v46, %v952_v19  ;;  %v1239_v32 = vsel %vm8821_vm5, %v954_v22, %v1238_v11  ;;  %v7702_v41 = vpack.c.bf16 %v708_v30, %v708_v30  ;;  %v8879_v46 = vld [vmem:[#allocation2 + $0xc] sm:$0xf] }
  0xfd   : > { %v936_v36 = vsel %vm8815_vm11, %v928_v3, %v935_v23  ;;  %v1232_v37 = vsel %vm8821_vm5, %v937_v24, %v1231_v12  ;;  %1237 = vst.msk [vmem:[#allocation2 + $0x34] sm:$0xf] %vm732_vm9, %v953_v58  ;;  %1240 = vst [vmem:[#allocation2 + $0x38] sm:$0x1] %v1239_v32  ;;  %v8876_v40 = vrot.slane %v973_v27, 7  ;;  %v679_v42 = vmul.f32 %v8797_v61, %v546_v15  ;;  %v7924_v3 = vpop.f32.mrf.mxu0 }
  0xfe   : > { %1230 = vst.msk [vmem:[#allocation2 + $0x28] sm:$0xf] %vm732_vm9, %v936_v36  ;;  %1233 = vst [vmem:[#allocation2 + $0x2c] sm:$0x1] %v1232_v37  ;;  %vm638_vm15 = vcmp.ge.f32.partialorder %v538_v16, 0.0  ;;  %v677_v48 = vmul.f32 %v8797_v61, %v538_v16  ;;  %v559_v49 = vadd.f32 %v7923_v39, %v8792_v59  ;;  %v7374_v51 = vcombine.low %v8879_v46, %v8864_v31 }
  0xff   : > { %v8887_v54 = vrot.slane %v1434_v34, 4  ;;  %v978_v55 = vor.u32 %v976_v29, %v8876_v40  ;;  %v979_v56 = vrot.slane %v8876_v40, 4  ;;  %v956_v57 = vshrl.u32 %v7702_v41, 16  ;;  %v553_v12 = vpop.f32.mrf.mxu0  ;;  %v1252_v32 = vld [vmem:[#allocation2 + $0x50] sm:$0x1] }
 0x100   : > { %v959_v60 = vshll.u32 %v7702_v41, 16  ;;  %v711_v62 = vsel %vm640_vm12, %v546_v15, %v679_v42  ;;  %v709_v0 = vsel %vm638_vm15, %v538_v16, %v677_v48  ;;  %vm643_vm4 = vcmp.ge.f32.partialorder %v559_v49, 0.0  ;;  %7978 = vmatmul.mubr.msk.bf16.vlgmr.msra.gmra.mxu0 %vm415_vm1, %v7374_v51  ;;  %v1245_v37 = vld [vmem:[#allocation2 + $0x44] sm:$0x1] }
 0x101   : > { %v682_v1 = vmul.f32 %v8797_v61, %v559_v49  ;;  %v1249_v4 = vsel %vm8808_vm14, %v978_v55, %v1248_v47  ;;  %v958_v34 = vrot.slane %v956_v57, 7  ;;  %v7705_v5 = vpack.c.bf16 %v711_v62, %v711_v62  ;;  %v7927_v29 = vpop.f32.mrf.mxu0 }
 0x102   : > { %v7703_v6 = vpack.c.bf16 %v709_v0, %v709_v0  ;;  %1250 = vst [vmem:[#allocation2 + $0x48] sm:$0xf] %v1249_v4  ;;  %v551_v10 = vadd.f32 %v8792_v59, %v550_v50  ;;  %v562_v11 = vadd.f32 %v7924_v3, %v8792_v59  ;;  %v8900_v14 = vrot.slane %v1437_v35, 5  ;;  %v1328_v50 = vld [vmem:[%s11280_s4 + $0xc] sm:$0xf] }
 0x103   : > { %v714_v8 = vsel %vm643_vm4, %v559_v49, %v682_v1  ;;  %v961_v15 = vor.u32 %v959_v60, %v958_v34  ;;  %v962_v16 = vrot.slane %v958_v34, 4  ;;  %v981_v19 = vshrl.u32 %v7705_v5, 16  ;;  %v1262_v60 = vld [vmem:[#allocation2 + $0x60] sm:$0xf]  ;;  %v566_v0 = vpop.f32.mrf.mxu0  ;;  %8271 = vmatprep.subr.msk.bf16.mxu0 %vm464_vm0, %v1328_v50  ;;  %v8916_v34 = vld [vmem:[#allocation2 + $0x1c] sm:$0xf] }
 0x104   : > { %v984_v22 = vshll.u32 %v7705_v5, 16  ;;  %v964_v23 = vshrl.u32 %v7703_v6, 16  ;;  %v967_v24 = vshll.u32 %v7703_v6, 16  ;;  %v7708_v27 = vpack.c.bf16 %v714_v8, %v714_v8 }
 0x105   : > { %vm641_vm10 = vcmp.ge.f32.partialorder %v551_v10, 0.0  ;;  %v1242_v30 = vsel %vm8808_vm14, %v961_v15, %v1241_v7  ;;  %v983_v58 = vrot.slane %v981_v19, 7  ;;  %v680_v36 = vmul.f32 %v8797_v61, %v551_v10 }
 0x106   : > { %vm644_vm12 = vcmp.ge.f32.partialorder %v562_v11, 0.0  ;;  %1243 = vst [vmem:[#allocation2 + $0x3c] sm:$0xf] %v1242_v30  ;;  %v966_v35 = vrot.slane %v964_v23, 7  ;;  %v1007_v39 = vshrl.u32 %v7708_v27, 16  ;;  %v1010_v40 = vshll.u32 %v7708_v27, 16  ;;  %v7928_v23 = vpop.f32.mrf.mxu0 }
 0x107   : > { %v683_v41 = vmul.f32 %v8797_v61, %v562_v11  ;;  %v986_v42 = vor.u32 %v984_v22, %v983_v58  ;;  %v988_v47 = vrot.slane %v983_v58, 4  ;;  %v712_v48 = vsel %vm641_vm10, %v551_v10, %v680_v36  ;;  %v1255_v27 = vld [vmem:[#allocation2 + $0x54] sm:$0xf] }
 0x108   : > { %v554_v49 = vadd.f32 %v8792_v59, %v553_v12  ;;  %v969_v51 = vor.u32 %v967_v24, %v966_v35  ;;  %v971_v55 = vrot.slane %v966_v35, 4  ;;  %v1009_v57 = vrot.slane %v1007_v39, 7 }
 0x109   : > { %v7706_v62 = vpack.c.bf16 %v712_v48, %v712_v48  ;;  %v987_v1 = vsel %vm8815_vm11, %v979_v56, %v986_v42  ;;  %v1253_v3 = vsel %vm8821_vm5, %v988_v47, %v1252_v32  ;;  %v715_v4 = vsel %vm644_vm12, %v562_v11, %v683_v41  ;;  %v1266_v41 = vld [vmem:[#allocation2 + $0x68] sm:$0x1] }
 0x10a   : > { %vm642_vm15 = vcmp.ge.f32.partialorder %v554_v49, 0.0  ;;  %1251 = vst.msk [vmem:[#allocation2 + $0x4c] sm:$0xf] %vm732_vm9, %v987_v1  ;;  %1254 = vst [vmem:[#allocation2 + $0x50] sm:$0x1] %v1253_v3  ;;  %v970_v5 = vsel %vm8815_vm11, %v962_v16, %v969_v51  ;;  %v1246_v6 = vsel %vm8821_vm5, %v971_v55, %v1245_v37  ;;  %v1012_v7 = vor.u32 %v1010_v40, %v1009_v57  ;;  %v569_v1 = vpop.f32.mrf.mxu0 }
 0x10b   : > { %v1013_v8 = vrot.slane %v1009_v57, 4  ;;  %1244 = vst.msk [vmem:[#allocation2 + $0x40] sm:$0xf] %vm732_vm9, %v970_v5  ;;  %1247 = vst [vmem:[#allocation2 + $0x44] sm:$0x1] %v1246_v6  ;;  %v990_v56 = vshrl.u32 %v7706_v62, 16  ;;  %v7709_v11 = vpack.c.bf16 %v715_v4, %v715_v4  ;;  %v681_v12 = vmul.f32 %v8797_v61, %v554_v49 }
 0x10c   : > { %v993_v10 = vshll.u32 %v7706_v62, 16  ;;  %v1263_v15 = vsel %vm8808_vm14, %v1012_v7, %v1262_v60  ;;  %v575_v19 = vadd.f32 %v7927_v29, %v8792_v59  ;;  %v1447_v16 = vshrl.u32 %v8916_v34, 16  ;;  %v1259_v60 = vld [vmem:[#allocation2 + $0x5c] sm:$0x1]  ;;  %v1340_v7 = vld [vmem:[#allocation2 + $0x24] sm:$0xf] }
 0x10d   : > { %v7375_v22 = vcombine.low %v8848_v26, %v8916_v34  ;;  %1264 = vst [vmem:[#allocation2 + $0x60] sm:$0xf] %v1263_v15  ;;  %v992_v24 = vrot.slane %v990_v56, 7  ;;  %v1015_v30 = vshrl.u32 %v7709_v11, 16  ;;  %v1018_v58 = vshll.u32 %v7709_v11, 16 }
 0x10e   : > { %v713_v32 = vsel %vm642_vm15, %v554_v49, %v681_v12  ;;  %vm647_vm4 = vcmp.ge.f32.partialorder %v575_v19, 0.0  ;;  %v686_v35 = vmul.f32 %v8797_v61, %v575_v19  ;;  %v567_v29 = vadd.f32 %v8792_v59, %v566_v0 }
 0x10f   : > { %v7707_v36 = vpack.c.bf16 %v713_v32, %v713_v32  ;;  %7981 = vmatprep.mubr.msk.bf16.mxu0 %vm415_vm1, %v7375_v22  ;;  %v995_v37 = vor.u32 %v993_v10, %v992_v24  ;;  %v996_v39 = vrot.slane %v992_v24, 4  ;;  %v1017_v40 = vrot.slane %v1015_v30, 7  ;;  %v8951_v30 = vld [vmem:[#allocation2 + $0x28] sm:$0xf] }
 0x110   : > { %v578_v26 = vadd.f32 %v7928_v23, %v8792_v59  ;;  %v718_v48 = vsel %vm647_vm4, %v575_v19, %v686_v35  ;;  %vm645_vm10 = vcmp.ge.f32.partialorder %v567_v29, 0.0  ;;  %v684_v62 = vmul.f32 %v8797_v61, %v567_v29 }
 0x111   : > { %v998_v42 = vshrl.u32 %v7707_v36, 16  ;;  %v1001_v47 = vshll.u32 %v7707_v36, 16  ;;  %v1256_v49 = vsel %vm8808_vm14, %v995_v37, %v1255_v27  ;;  %v1020_v50 = vor.u32 %v1018_v58, %v1017_v40  ;;  %v1276_v27 = vld [vmem:[#allocation2 + $0x78] sm:$0xf] }
 0x112   : > { %v1022_v51 = vrot.slane %v1017_v40, 4  ;;  %v7712_v55 = vpack.c.bf16 %v718_v48, %v718_v48  ;;  %1257 = vst [vmem:[#allocation2 + $0x54] sm:$0xf] %v1256_v49  ;;  %vm648_vm12 = vcmp.ge.f32.partialorder %v578_v26, 0.0  ;;  %v687_v0 = vmul.f32 %v8797_v61, %v578_v26 }
 0x113   : > { %v1000_v57 = vrot.slane %v998_v42, 7  ;;  %v1021_v3 = vsel %vm8815_vm11, %v1013_v8, %v1020_v50  ;;  %v716_v11 = vsel %vm645_vm10, %v567_v29, %v684_v62  ;;  %v570_v23 = vadd.f32 %v8792_v59, %v569_v1  ;;  %v1269_v50 = vld [vmem:[#allocation2 + $0x6c] sm:$0xf]  ;;  %v1280_v1 = vld [vmem:[#allocation2 + $0x80] sm:$0x1] }
 0x114   : > { %v1267_v4 = vsel %vm8821_vm5, %v1022_v51, %v1266_v41  ;;  %v1041_v5 = vshrl.u32 %v7712_v55, 16  ;;  %v1044_v6 = vshll.u32 %v7712_v55, 16  ;;  %1265 = vst.msk [vmem:[#allocation2 + $0x64] sm:$0xf] %vm732_vm9, %v1021_v3  ;;  %v719_v12 = vsel %vm648_vm12, %v578_v26, %v687_v0  ;;  %v7931_v41 = vpop.f32.mrf.mxu0 }
 0x115   : > { %1268 = vst [vmem:[#allocation2 + $0x68] sm:$0x1] %v1267_v4  ;;  %v1003_v56 = vor.u32 %v1001_v47, %v1000_v57  ;;  %v1005_v10 = vrot.slane %v1000_v57, 4  ;;  %v7710_v19 = vpack.c.bf16 %v716_v11, %v716_v11  ;;  %v7713_v22 = vpack.c.bf16 %v719_v12, %v719_v12 }
 0x116   : > { %v1043_v15 = vrot.slane %v1041_v5, 7  ;;  %v1458_v58 = vshrl.u32 %v1340_v7, 16  ;;  %v1461_v32 = vshll.u32 %v1340_v7, 16  ;;  %vm646_vm15 = vcmp.ge.f32.partialorder %v570_v23, 0.0  ;;  %v8964_v5 = vld [vmem:[#allocation2 + $0x14] sm:$0x1] }
 0x117   : > { %v1004_v8 = vsel %vm8815_vm11, %v996_v39, %v1003_v56  ;;  %v1260_v24 = vsel %vm8821_vm5, %v1005_v10, %v1259_v60  ;;  %v1024_v29 = vshrl.u32 %v7710_v19, 16  ;;  %v1027_v37 = vshll.u32 %v7710_v19, 16  ;;  %v1342_v19 = vld [vmem:[#allocation2 + $0x30] sm:$0xf] }
 0x118   : > { %1258 = vst.msk [vmem:[#allocation2 + $0x58] sm:$0xf] %vm732_vm9, %v1004_v8  ;;  %1261 = vst [vmem:[#allocation2 + $0x5c] sm:$0x1] %v1260_v24  ;;  %v1046_v36 = vor.u32 %v1044_v6, %v1043_v15  ;;  %v1047_v35 = vrot.slane %v1043_v15, 4  ;;  %v1049_v40 = vshrl.u32 %v7713_v22, 16  ;;  %v685_v39 = vmul.f32 %v8797_v61, %v570_v23 }
 0x119   : > { %v1052_v26 = vshll.u32 %v7713_v22, 16  ;;  %v1026_v47 = vrot.slane %v1024_v29, 7  ;;  %v8957_v48 = vrot.slane %v1458_v58, 4  ;;  %v8959_v49 = vrot.slane %v1461_v32, 5 }
 0x11a   : > { %v1277_v42 = vsel %vm8808_vm14, %v1046_v36, %v1276_v27  ;;  %v1051_v51 = vrot.slane %v1049_v40, 7  ;;  %v717_v55 = vsel %vm646_vm15, %v570_v23, %v685_v39  ;;  %v1471_v57 = vshrl.u32 %v8951_v30, 16  ;;  %v1273_v36 = vld [vmem:[#allocation2 + $0x74] sm:$0x1] }
 0x11b   : > { %1278 = vst [vmem:[#allocation2 + $0x78] sm:$0xf] %v1277_v42  ;;  %v7376_v60 = vcombine.low %v1340_v7, %v8951_v30  ;;  %v1029_v62 = vor.u32 %v1027_v37, %v1026_v47  ;;  %v1030_v0 = vrot.slane %v1026_v47, 4  ;;  %v7711_v3 = vpack.c.bf16 %v717_v55, %v717_v55 }
 0x11c   : > { %v591_v4 = vadd.f32 %v7931_v41, %v8792_v59  ;;  %v1054_v6 = vor.u32 %v1052_v26, %v1051_v51  ;;  %v1056_v56 = vrot.slane %v1051_v51, 4  ;;  %v1410_v10 = vshrl.u32 %v8879_v46, 16  ;;  %v582_v26 = vpop.f32.mrf.mxu0 }
 0x11d   : > { %7982 = vmatmul.mubr.msk.bf16.gmra.mxu0 %vm415_vm1, %v7376_v60  ;;  %v1413_v11 = vshll.u32 %v8879_v46, 16  ;;  %v1270_v12 = vsel %vm8808_vm14, %v1029_v62, %v1269_v50  ;;  %v1032_v7 = vshrl.u32 %v7711_v3, 16  ;;  %v1035_v15 = vshll.u32 %v7711_v3, 16  ;;  %v8981_v50 = vld [vmem:[#allocation2 + $0x34] sm:$0xf] }
 0x11e   : > { %vm651_vm4 = vcmp.ge.f32.partialorder %v591_v4, 0.0  ;;  %1271 = vst [vmem:[#allocation2 + $0x6c] sm:$0xf] %v1270_v12  ;;  %v1055_v22 = vsel %vm8815_vm11, %v1047_v35, %v1054_v6  ;;  %v1281_v23 = vsel %vm8821_vm5, %v1056_v56, %v1280_v1  ;;  %v690_v8 = vmul.f32 %v8797_v61, %v591_v4  ;;  %v7932_v12 = vpop.f32.mrf.mxu0 }
 0x11f   : > { %v1412_v24 = vrot.slane %v1410_v10, 4  ;;  %1279 = vst.msk [vmem:[#allocation2 + $0x7c] sm:$0xf] %vm732_vm9, %v1055_v22  ;;  %1282 = vst [vmem:[#allocation2 + $0x80] sm:$0x1] %v1281_v23  ;;  %v1034_v46 = vrot.slane %v1032_v7, 7 }
 0x120   : > { %v1415_v27 = vrot.slane %v1413_v11, 5  ;;  %v1419_v58 = vshll.u32 %v8864_v31, 16  ;;  %v1423_v32 = vshrl.u32 %v8864_v31, 16  ;;  %v722_v29 = vsel %vm651_vm4, %v591_v4, %v690_v8  ;;  %v1368_v22 = vld [vmem:[#allocation2 + $0x20] sm:$0x1] }
 0x121   : > { %v1429_v37 = vshll.u32 %v8964_v5, 16  ;;  %v1482_v40 = vshrl.u32 %v1342_v19, 16  ;;  %v1037_v39 = vor.u32 %v1035_v15, %v1034_v46  ;;  %v1039_v41 = vrot.slane %v1034_v46, 4  ;;  %v1290_v8 = vld [vmem:[#allocation2 + $0x90] sm:$0xf] }
 0x122   : > { %v7716_v42 = vpack.c.bf16 %v722_v29, %v722_v29  ;;  %v1416_v47 = vor.u32 %v1415_v27, %v1412_v24  ;;  %v1421_v51 = vrot.slane %v1419_v58, 5  ;;  %v1425_v55 = vrot.slane %v1423_v32, 4 }
 0x123   : > { %v1431_v60 = vrot.slane %v1429_v37, 5  ;;  %v8983_v62 = vrot.slane %v1482_v40, 4  ;;  %v1038_v31 = vsel %vm8815_vm11, %v1030_v0, %v1037_v39  ;;  %v1274_v1 = vsel %vm8821_vm5, %v1039_v41, %v1273_v36  ;;  %v585_v39 = vpop.f32.mrf.mxu0  ;;  %v1344_v41 = vld [vmem:[#allocation2 + $0x3c] sm:$0xf] }
 0x124   : > { %v1075_v3 = vshrl.u32 %v7716_v42, 16  ;;  %v1078_v4 = vshll.u32 %v7716_v42, 16  ;;  %1272 = vst.msk [vmem:[#allocation2 + $0x70] sm:$0xf] %vm732_vm9, %v1038_v31  ;;  %1275 = vst [vmem:[#allocation2 + $0x74] sm:$0x1] %v1274_v1  ;;  %v1426_v56 = vor.u32 %v1425_v55, %v1421_v51  ;;  %v7377_v15 = vcombine.low %v1342_v19, %v8981_v50 }
 0x125   : > { %v1417_v6 = vrot.slane %v1416_v47, 4  ;;  %v1485_v10 = vshll.u32 %v1342_v19, 16  ;;  %v1495_v11 = vshrl.u32 %v8981_v50, 16  ;;  %v1440_v0 = vor.u32 %v8900_v14, %v8887_v54 }
 0x126   : > { %v8991_v7 = vrot.slane %v1075_v3, 7  ;;  %v1443_v23 = vshll.u32 %v8916_v34, 16  ;;  %v1427_v46 = vrot.slane %v1426_v56, 4  ;;  %v1449_v58 = vrot.slane %v1447_v16, 4  ;;  %7985 = vmatprep.mubr.msk.bf16.mxu0 %vm415_vm1, %v7377_v15  ;;  %v7935_v15 = vpop.f32.mrf.mxu0 }
 0x127   : > { %v1422_v24 = vsel %vm8771_vm13, %v1417_v6, %v1421_v51  ;;  %v8999_v27 = vrot.slane %v1485_v10, 5  ;;  %v1441_v36 = vrot.slane %v1440_v0, 4  ;;  %v1453_v29 = vshll.u32 %v1368_v22, 16  ;;  %v9014_v51 = vld [vmem:[#allocation2 + $0x40] sm:$0xf] }
 0x128   : > { %v1080_v32 = vor.u32 %v1078_v4, %v8991_v7  ;;  %v1081_v19 = vrot.slane %v8991_v7, 4  ;;  %v1445_v54 = vrot.slane %v1443_v23, 5  ;;  %v1432_v14 = vsel %vm8771_vm13, %v1427_v46, %v1431_v60 }
 0x129   : > { %v583_v37 = vadd.f32 %v8792_v59, %v582_v26  ;;  %v594_v40 = vadd.f32 %v7932_v12, %v8792_v59  ;;  %v7342_v16 = vcombine.low %v1422_v24, %v1432_v14  ;;  %v1455_v55 = vrot.slane %v1453_v29, 5  ;;  %v9020_v26 = vld [vmem:[%s11280_s4 + $0x10] sm:$0xf]  ;;  %v1283_v14 = vld [vmem:[#allocation2 + $0x84] sm:$0xf] }
 0x12a   : > { %v1291_v34 = vsel %vm8808_vm14, %v1080_v32, %v1290_v8  ;;  %v1446_v42 = vsel %vm8771_vm13, %v1441_v36, %v1445_v54  ;;  %v1450_v47 = vor.u32 %v1449_v58, %v1445_v54  ;;  %v586_v3 = vadd.f32 %v8792_v59, %v585_v39 }
 0x12b   : > { %1292 = vst [vmem:[#allocation2 + $0x90] sm:$0xf] %v1291_v34  ;;  %vm649_vm10 = vcmp.ge.f32.partialorder %v583_v37, 0.0  ;;  %v688_v60 = vmul.f32 %v8797_v61, %v583_v37  ;;  %vm652_vm12 = vcmp.ge.f32.partialorder %v594_v40, 0.0  ;;  %7944 = vmatmul.mubr.msk.bf16.vlgmr.msra.gmra.mxu1 %vm415_vm1, %v7342_v16  ;;  %v691_v1 = vmul.f32 %v8797_v61, %v594_v40  ;;  %v1294_v34 = vld [vmem:[#allocation2 + $0x98] sm:$0x1] }
 0x12c   : > { %v1451_v31 = vrot.slane %v1450_v47, 4  ;;  %v1506_v4 = vshrl.u32 %v1344_v41, 16  ;;  %8010 = vmatpush3.bf16.msra.mxu1 %v8845_v18  ;;  %v1509_v56 = vshll.u32 %v1344_v41, 16  ;;  %v1519_v10 = vshrl.u32 %v9014_v51, 16 }
 0x12d   : > { %v720_v6 = vsel %vm649_vm10, %v583_v37, %v688_v60  ;;  %v7378_v12 = vcombine.low %v1344_v41, %v9014_v51  ;;  %v723_v23 = vsel %vm652_vm12, %v594_v40, %v691_v1  ;;  %vm650_vm15 = vcmp.ge.f32.partialorder %v586_v3, 0.0  ;;  %8272 = vmatprep.subr.msk.bf16.mxu1 %vm464_vm0, %v9020_v26  ;;  %v598_v1 = vpop.f32.mrf.mxu0 }
 0x12e   : > { %v1456_v22 = vsel %vm8771_vm13, %v1451_v31, %v1455_v55  ;;  %v7714_v0 = vpack.c.bf16 %v720_v6, %v720_v6  ;;  %v7717_v24 = vpack.c.bf16 %v723_v23, %v723_v23  ;;  %v689_v18 = vmul.f32 %v8797_v61, %v586_v3  ;;  %v9043_v55 = vld [vmem:[#allocation2 + $0x2c] sm:$0x1] }
 0x12f   : > { %v7343_v8 = vcombine.low %v1446_v42, %v1456_v22  ;;  %v9033_v46 = vrot.slane %v1506_v4, 4  ;;  %7986 = vmatmul.mubr.msk.bf16.gmra.mxu0 %vm415_vm1, %v7378_v12  ;;  %v9036_v36 = vrot.slane %v1509_v56, 5  ;;  %v607_v54 = vadd.f32 %v7935_v15, %v8792_v59 }
 0x130   : > { %v1058_v58 = vshrl.u32 %v7714_v0, 16  ;;  %v1061_v32 = vshll.u32 %v7714_v0, 16  ;;  %v1083_v29 = vshrl.u32 %v7717_v24, 16  ;;  %v1086_v37 = vshll.u32 %v7717_v24, 16  ;;  %v1287_v24 = vld [vmem:[#allocation2 + $0x8c] sm:$0x1] }
 0x131   : > { %7947 = vmatprep.mubr.msk.bf16.mxu1 %vm415_vm1, %v7343_v8  ;;  %v721_v40 = vsel %vm650_vm15, %v586_v3, %v689_v18  ;;  %v1464_v39 = vor.u32 %v8959_v49, %v8957_v48  ;;  %vm655_vm4 = vcmp.ge.f32.partialorder %v607_v54, 0.0  ;;  %v694_v42 = vmul.f32 %v8797_v61, %v607_v54  ;;  %v1346_v49 = vld [vmem:[#allocation2 + $0x48] sm:$0xf] }
 0x132   : > { %v1060_v41 = vrot.slane %v1058_v58, 7  ;;  %v7715_v16 = vpack.c.bf16 %v721_v40, %v721_v40  ;;  %v1085_v47 = vrot.slane %v1083_v29, 7  ;;  %v1467_v59 = vshll.u32 %v8951_v30, 16 }
 0x133   : > { %v1465_v60 = vrot.slane %v1464_v39, 4  ;;  %v1473_v31 = vrot.slane %v1471_v57, 4  ;;  %v726_v15 = vsel %vm655_vm4, %v607_v54, %v694_v42  ;;  %v1477_v8 = vshll.u32 %v9043_v55, 16  ;;  %v7936_v54 = vpop.f32.mrf.mxu0 }
 0x134   : > { %v1063_v3 = vor.u32 %v1061_v32, %v1060_v41  ;;  %v1064_v4 = vrot.slane %v1060_v41, 4  ;;  %v1066_v6 = vshrl.u32 %v7715_v16, 16  ;;  %v1069_v48 = vshll.u32 %v7715_v16, 16  ;;  %v9059_v32 = vld [vmem:[#allocation2 + $0x4c] sm:$0xf] }
 0x135   : > { %v1088_v56 = vor.u32 %v1086_v37, %v1085_v47  ;;  %v1090_v12 = vrot.slane %v1085_v47, 4  ;;  %v1469_v22 = vrot.slane %v1467_v59, 5  ;;  %v7720_v23 = vpack.c.bf16 %v726_v15, %v726_v15  ;;  %v1304_v59 = vld [vmem:[#allocation2 + $0xa8] sm:$0xf] }
 0x136   : > { %v1284_v61 = vsel %vm8808_vm14, %v1063_v3, %v1283_v14  ;;  %v1068_v0 = vrot.slane %v1066_v6, 7  ;;  %v1530_v39 = vshrl.u32 %v1346_v49, 16  ;;  %v1533_v41 = vshll.u32 %v1346_v49, 16 }
 0x137   : > { %1285 = vst [vmem:[#allocation2 + $0x84] sm:$0xf] %v1284_v61  ;;  %v1089_v30 = vsel %vm8815_vm11, %v1081_v19, %v1088_v56  ;;  %v1295_v57 = vsel %vm8821_vm5, %v1090_v12, %v1294_v34  ;;  %v1470_v18 = vsel %vm8771_vm13, %v1465_v60, %v1469_v22  ;;  %v1474_v58 = vor.u32 %v1473_v31, %v1469_v22  ;;  %v9069_v60 = vld [vmem:[#allocation2 + $0x38] sm:$0x1] }
 0x138   : > { %1293 = vst.msk [vmem:[#allocation2 + $0x94] sm:$0xf] %vm732_vm9, %v1089_v30  ;;  %1296 = vst [vmem:[#allocation2 + $0x98] sm:$0x1] %v1295_v57  ;;  %v1071_v14 = vor.u32 %v1069_v48, %v1068_v0  ;;  %v1073_v29 = vrot.slane %v1068_v0, 4  ;;  %v1109_v7 = vshrl.u32 %v7720_v23, 16  ;;  %v601_v48 = vpop.f32.mrf.mxu0  ;;  %v1488_v22 = vor.u32 %v8999_v27, %v8983_v62 }
 0x139   : > { %v1112_v37 = vshll.u32 %v7720_v23, 16  ;;  %v1475_v40 = vrot.slane %v1474_v58, 4  ;;  %v1479_v19 = vrot.slane %v1477_v8, 5  ;;  %v1543_v47 = vshrl.u32 %v9059_v32, 16 }
 0x13a   : > { %v1072_v34 = vsel %vm8815_vm11, %v1064_v4, %v1071_v14  ;;  %v1288_v16 = vsel %vm8821_vm5, %v1073_v29, %v1287_v24  ;;  %v9066_v42 = vrot.slane %v1109_v7, 7  ;;  %v9074_v3 = vrot.slane %v1530_v39, 4 }
 0x13b   : > { %1286 = vst.msk [vmem:[#allocation2 + $0x88] sm:$0xf] %vm732_vm9, %v1072_v34  ;;  %1289 = vst [vmem:[#allocation2 + $0x8c] sm:$0x1] %v1288_v16  ;;  %v1480_v31 = vsel %vm8771_vm13, %v1475_v40, %v1479_v19  ;;  %v9076_v6 = vrot.slane %v1533_v41, 5  ;;  %v7379_v4 = vcombine.low %v1346_v49, %v9059_v32  ;;  %v1491_v61 = vshll.u32 %v8981_v50, 16 }
 0x13c   : > { %v1114_v56 = vor.u32 %v1112_v37, %v9066_v42  ;;  %v1115_v12 = vrot.slane %v9066_v42, 4  ;;  %v7344_v15 = vcombine.low %v1470_v18, %v1480_v31  ;;  %v1497_v0 = vrot.slane %v1495_v11, 4  ;;  %v9091_v49 = vld [vmem:[%s11278_s2] ss:$0 sm:$0xff]  ;;  %v1348_v11 = vld [vmem:[#allocation2 + $0x54] sm:$0xf] }
 0x13d   : > { %7989 = vmatprep.mubr.msk.bf16.mxu0 %vm415_vm1, %v7379_v4  ;;  %v1501_v23 = vshll.u32 %v9069_v60, 16  ;;  %v599_v8 = vadd.f32 %v9091_v49, %v598_v1  ;;  %v1489_v62 = vrot.slane %v1488_v22, 4  ;;  %v610_v27 = vadd.f32 %v9091_v49, %v7936_v54  ;;  %v9102_v18 = vld [vmem:[%s11279_s3] ss:$0 sm:$0xff]  ;;  %v9109_v37 = vld [vmem:[#allocation2 + $0x58] sm:$0xf] }
 0x13e   : > { %v1305_v30 = vsel %vm8808_vm14, %v1114_v56, %v1304_v59  ;;  %7948 = vmatmul.mubr.msk.bf16.gmra.mxu1 %vm415_vm1, %v7344_v15  ;;  %v602_v50 = vadd.f32 %v9091_v49, %v601_v48  ;;  %v1493_v57 = vrot.slane %v1491_v61, 5  ;;  %v1554_v40 = vshrl.u32 %v1348_v11, 16  ;;  %v7939_v48 = vpop.f32.mrf.mxu0  ;;  %v4516_v53 = vld [vmem:[#allocation2 + $0x84] sm:$0xf] }
 0x13f   : > { %1306 = vst [vmem:[#allocation2 + $0xa8] sm:$0xf] %v1305_v30  ;;  %v1503_v24 = vrot.slane %v1501_v23, 5  ;;  %vm653_vm10 = vcmp.ge.f32.partialorder %v599_v8, 0.0  ;;  %v692_v1 = vmul.f32 %v9102_v18, %v599_v8  ;;  %vm656_vm12 = vcmp.ge.f32.partialorder %v610_v27, 0.0 }
 0x140   : > { %v695_v58 = vmul.f32 %v9102_v18, %v610_v27  ;;  %vm654_vm15 = vcmp.ge.f32.partialorder %v602_v50, 0.0  ;;  %v693_v54 = vmul.f32 %v9102_v18, %v602_v50  ;;  %v1494_v14 = vsel %vm8771_vm13, %v1489_v62, %v1493_v57 }
 0x141   : > { %v1498_v29 = vor.u32 %v1497_v0, %v1493_v57  ;;  %v724_v7 = vsel %vm653_vm10, %v599_v8, %v692_v1  ;;  %v1557_v34 = vshll.u32 %v1348_v11, 16  ;;  %v9111_v4 = vrot.slane %v1554_v40, 4  ;;  %v1297_v1 = vld [vmem:[#allocation2 + $0x9c] sm:$0xf] }
 0x142   : > { %v7718_v19 = vpack.c.bf16 %v724_v7, %v724_v7  ;;  %v727_v39 = vsel %vm656_vm12, %v610_v27, %v695_v58  ;;  %v725_v41 = vsel %vm654_vm15, %v602_v50, %v693_v54  ;;  %v1567_v61 = vshrl.u32 %v9109_v37, 16  ;;  %v1308_v54 = vld [vmem:[#allocation2 + $0xb0] sm:$0x1] }
 0x143   : > { %v1499_v16 = vrot.slane %v1498_v29, 4  ;;  %v7721_v59 = vpack.c.bf16 %v727_v39, %v727_v39  ;;  %v7719_v31 = vpack.c.bf16 %v725_v41, %v725_v41  ;;  %v9113_v22 = vrot.slane %v1557_v34, 5  ;;  %v1301_v41 = vld [vmem:[#allocation2 + $0xa4] sm:$0x1] }
 0x144   : > { %v1092_v56 = vshrl.u32 %v7718_v19, 16  ;;  %v1095_v15 = vshll.u32 %v7718_v19, 16  ;;  %v7380_v57 = vcombine.low %v1348_v11, %v9109_v37  ;;  %v623_v7 = vadd.f32 %v9091_v49, %v7939_v48  ;;  %v614_v19 = vpop.f32.mrf.mxu0  ;;  %v9127_v48 = vld [vmem:[#allocation2 + $0x44] sm:$0x1] }
 0x145   : > { %v1504_v0 = vsel %vm8771_vm13, %v1499_v16, %v1503_v24  ;;  %v1117_v23 = vshrl.u32 %v7721_v59, 16  ;;  %v1120_v8 = vshll.u32 %v7721_v59, 16  ;;  %v1100_v30 = vshrl.u32 %v7719_v31, 16 }
 0x146   : > { %v7345_v62 = vcombine.low %v1494_v14, %v1504_v0  ;;  %v1094_v27 = vrot.slane %v1092_v56, 7  ;;  %v1103_v50 = vshll.u32 %v7719_v31, 16  ;;  %v1512_v40 = vor.u32 %v9036_v36, %v9033_v46  ;;  %7990 = vmatmul.mubr.msk.bf16.gmra.mxu0 %vm415_vm1, %v7380_v57  ;;  %v1350_v46 = vld [vmem:[#allocation2 + $0x60] sm:$0xf]  ;;  %v9132_v0 = vld [vmem:[#allocation2 + $0x64] sm:$0xf] }
 0x147   : > { %v1119_v58 = vrot.slane %v1117_v23, 7  ;;  %v1102_v29 = vrot.slane %v1100_v30, 7  ;;  %v1515_v14 = vshll.u32 %v9014_v51, 16  ;;  %v1521_v11 = vrot.slane %v1519_v10, 4  ;;  %v7940_v30 = vpop.f32.mrf.mxu0 }
 0x148   : > { %7951 = vmatprep.mubr.msk.bf16.mxu1 %vm415_vm1, %v7345_v62  ;;  %v1097_v24 = vor.u32 %v1095_v15, %v1094_v27  ;;  %v1098_v39 = vrot.slane %v1094_v27, 4  ;;  %vm659_vm4 = vcmp.ge.f32.partialorder %v623_v7, 0.0  ;;  %v698_v56 = vmul.f32 %v9102_v18, %v623_v7 }
 0x149   : > { %v1122_v34 = vor.u32 %v1120_v8, %v1119_v58  ;;  %v1124_v16 = vrot.slane %v1119_v58, 4  ;;  %v1105_v59 = vor.u32 %v1103_v50, %v1102_v29  ;;  %v1107_v31 = vrot.slane %v1102_v29, 4 }
 0x14a   : > { %v1298_v36 = vsel %vm8808_vm14, %v1097_v24, %v1297_v1  ;;  %v1513_v15 = vrot.slane %v1512_v40, 4  ;;  %v730_v42 = vsel %vm659_vm4, %v623_v7, %v698_v56  ;;  %v1517_v62 = vrot.slane %v1515_v14, 5 }
 0x14b   : > { %1299 = vst [vmem:[#allocation2 + $0x9c] sm:$0xf] %v1298_v36  ;;  %v1123_v51 = vsel %vm8815_vm11, %v1115_v12, %v1122_v34  ;;  %v1309_v10 = vsel %vm8821_vm5, %v1124_v16, %v1308_v54  ;;  %v1106_v23 = vsel %vm8815_vm11, %v1098_v39, %v1105_v59  ;;  %v1302_v8 = vsel %vm8821_vm5, %v1107_v31, %v1301_v41  ;;  %v9149_v54 = vld [vmem:[#allocation2 + $0x50] sm:$0x1]  ;;  %v617_v16 = vpop.f32.mrf.mxu0 }
 0x14c   : > { %1307 = vst.msk [vmem:[#allocation2 + $0xac] sm:$0xf] %vm732_vm9, %v1123_v51  ;;  %1310 = vst [vmem:[#allocation2 + $0xb0] sm:$0x1] %v1309_v10  ;;  %v1525_v12 = vshll.u32 %v9127_v48, 16  ;;  %v1578_v27 = vshrl.u32 %v1350_v46, 16  ;;  %v7724_v50 = vpack.c.bf16 %v730_v42, %v730_v42  ;;  %v7381_v58 = vcombine.low %v1350_v46, %v9132_v0 }
 0x14d   : > { %1300 = vst.msk [vmem:[#allocation2 + $0xa0] sm:$0xf] %vm732_vm9, %v1106_v23  ;;  %1303 = vst [vmem:[#allocation2 + $0xa4] sm:$0x1] %v1302_v8  ;;  %v1581_v57 = vshll.u32 %v1350_v46, 16  ;;  %v1591_v1 = vshrl.u32 %v9132_v0, 16  ;;  %v1518_v29 = vsel %vm8771_vm13, %v1513_v15, %v1517_v62  ;;  %v1522_v40 = vor.u32 %v1521_v11, %v1517_v62 }
 0x14e   : > { %v1527_v24 = vrot.slane %v1525_v12, 5  ;;  %v9153_v39 = vrot.slane %v1578_v27, 4  ;;  %v1143_v7 = vshrl.u32 %v7724_v50, 16  ;;  %v1146_v41 = vshll.u32 %v7724_v50, 16  ;;  %7993 = vmatprep.mubr.msk.bf16.mxu0 %vm415_vm1, %v7381_v58  ;;  %v1318_v10 = vld [vmem:[#allocation2 + $0xc0] sm:$0xf] }
 0x14f   : > { %v9155_v14 = vrot.slane %v1581_v57, 5  ;;  %v1536_v34 = vor.u32 %v9076_v6, %v9074_v3  ;;  %v1523_v59 = vrot.slane %v1522_v40, 4  ;;  %v1539_v31 = vshll.u32 %v9059_v32, 16  ;;  %v1352_v12 = vld [vmem:[#allocation2 + $0x6c] sm:$0xf] }
 0x150   : > { %v1545_v46 = vrot.slane %v1543_v47, 4  ;;  %v1549_v11 = vshll.u32 %v9149_v54, 16  ;;  %v9164_v36 = vrot.slane %v1143_v7, 7  ;;  %v615_v15 = vadd.f32 %v9091_v49, %v614_v19  ;;  %v9176_v50 = vld [vmem:[#allocation2 + $0x70] sm:$0xf] }
 0x151   : > { %v1537_v56 = vrot.slane %v1536_v34, 4  ;;  %v626_v51 = vadd.f32 %v9091_v49, %v7940_v30  ;;  %v1528_v3 = vsel %vm8771_vm13, %v1523_v59, %v1527_v24  ;;  %v1541_v6 = vrot.slane %v1539_v31, 5 }
 0x152   : > { %v1551_v23 = vrot.slane %v1549_v11, 5  ;;  %v618_v8 = vadd.f32 %v9091_v49, %v617_v16  ;;  %v1148_v42 = vor.u32 %v1146_v41, %v9164_v36  ;;  %v1149_v47 = vrot.slane %v9164_v36, 4  ;;  %v4522_v33 = vld [vmem:[#allocation2 + $0x9c] sm:$0xf] }
 0x153   : > { %v7346_v62 = vcombine.low %v1518_v29, %v1528_v3  ;;  %vm657_vm10 = vcmp.ge.f32.partialorder %v615_v15, 0.0  ;;  %v1542_v19 = vsel %vm8771_vm13, %v1537_v56, %v1541_v6  ;;  %v1546_v27 = vor.u32 %v1545_v46, %v1541_v6 }
 0x154   : > { %v696_v30 = vmul.f32 %v9102_v18, %v615_v15  ;;  %vm660_vm12 = vcmp.ge.f32.partialorder %v626_v51, 0.0  ;;  %v1319_v57 = vsel %vm8808_vm14, %v1148_v42, %v1318_v10  ;;  %v699_v49 = vmul.f32 %v9102_v18, %v626_v51  ;;  %v1311_v42 = vld [vmem:[#allocation2 + $0xb4] sm:$0xf] }
 0x155   : > { %7952 = vmatmul.mubr.msk.bf16.gmra.mxu1 %vm415_vm1, %v7346_v62  ;;  %vm658_vm15 = vcmp.ge.f32.partialorder %v618_v8, 0.0  ;;  %v697_v58 = vmul.f32 %v9102_v18, %v618_v8  ;;  %1320 = vst [vmem:[#allocation2 + $0xc0] sm:$0xf] %v1319_v57  ;;  %v1547_v29 = vrot.slane %v1546_v27, 4  ;;  %v1602_v24 = vshrl.u32 %v1352_v12, 16 }
 0x156   : > { %v728_v40 = vsel %vm657_vm10, %v615_v15, %v696_v30  ;;  %v1605_v7 = vshll.u32 %v1352_v12, 16  ;;  %v731_v34 = vsel %vm660_vm12, %v626_v51, %v699_v49  ;;  %v1615_v59 = vshrl.u32 %v9176_v50, 16  ;;  %v9190_v15 = vld [vmem:[#allocation2 + $0x5c] sm:$0x1] }
 0x157   : > { %v7722_v41 = vpack.c.bf16 %v728_v40, %v728_v40  ;;  %v729_v16 = vsel %vm658_vm15, %v618_v8, %v697_v58  ;;  %v1552_v31 = vsel %vm8771_vm13, %v1547_v29, %v1551_v23  ;;  %v7725_v46 = vpack.c.bf16 %v731_v34, %v731_v34  ;;  %v1322_v23 = vld [vmem:[#allocation2 + $0xc8] sm:$0x1]  ;;  %v1315_v57 = vld [vmem:[#allocation2 + $0xbc] sm:$0x1] }
 0x158   : > { %v7723_v11 = vpack.c.bf16 %v729_v16, %v729_v16  ;;  %v9186_v56 = vrot.slane %v1602_v24, 4  ;;  %v7347_v10 = vcombine.low %v1542_v19, %v1552_v31  ;;  %v9188_v6 = vrot.slane %v1605_v7, 5 }
 0x159   : > { %v1126_v3 = vshrl.u32 %v7722_v41, 16  ;;  %v1129_v18 = vshll.u32 %v7722_v41, 16  ;;  %v1151_v62 = vshrl.u32 %v7725_v46, 16  ;;  %v1154_v51 = vshll.u32 %v7725_v46, 16  ;;  %v1354_v41 = vld [vmem:[#allocation2 + $0x78] sm:$0xf] }
 0x15a   : > { %v1134_v8 = vshrl.u32 %v7723_v11, 16  ;;  %v1137_v27 = vshll.u32 %v7723_v11, 16  ;;  %7955 = vmatprep.mubr.msk.bf16.mxu1 %vm415_vm1, %v7347_v10  ;;  %v7382_v49 = vcombine.low %v1352_v12, %v9176_v50  ;;  %v1560_v19 = vor.u32 %v9113_v22, %v9111_v4  ;;  %v9201_v22 = vld [vmem:[#allocation2 + $0x7c] sm:$0xf] }
 0x15b   : > { %v1128_v30 = vrot.slane %v1126_v3, 7  ;;  %v1563_v58 = vshll.u32 %v9109_v37, 16  ;;  %v1153_v29 = vrot.slane %v1151_v62, 7  ;;  %v1569_v24 = vrot.slane %v1567_v61, 4 }
 0x15c   : > { %v1136_v40 = vrot.slane %v1134_v8, 7  ;;  %v1573_v7 = vshll.u32 %v9190_v15, 16  ;;  %7994 = vmatmul.mubr.msk.bf16.gmra.mxu0 %vm415_vm1, %v7382_v49  ;;  %v1561_v31 = vrot.slane %v1560_v19, 4  ;;  %v1639_v49 = vshrl.u32 %v9201_v22, 16 }
 0x15d   : > { %v1131_v34 = vor.u32 %v1129_v18, %v1128_v30  ;;  %v1132_v16 = vrot.slane %v1128_v30, 4  ;;  %v1565_v46 = vrot.slane %v1563_v58, 5  ;;  %v1156_v12 = vor.u32 %v1154_v51, %v1153_v29  ;;  %v9228_v58 = vld [vmem:[#allocation2 + $0x88] sm:$0xf] }
 0x15e   : > { %v1158_v11 = vrot.slane %v1153_v29, 4  ;;  %v1139_v10 = vor.u32 %v1137_v27, %v1136_v40  ;;  %v1141_v4 = vrot.slane %v1136_v40, 4  ;;  %v1575_v8 = vrot.slane %v1573_v7, 5 }
 0x15f   : > { %v1312_v3 = vsel %vm8808_vm14, %v1131_v34, %v1311_v42  ;;  %v1566_v61 = vsel %vm8771_vm13, %v1561_v31, %v1565_v46  ;;  %v1570_v62 = vor.u32 %v1569_v24, %v1565_v46  ;;  %v1157_v18 = vsel %vm8815_vm11, %v1149_v47, %v1156_v12  ;;  %v9217_v42 = vld [vmem:[#allocation2 + $0x68] sm:$0x1] }
 0x160   : > { %1313 = vst [vmem:[#allocation2 + $0xb4] sm:$0xf] %v1312_v3  ;;  %v1323_v51 = vsel %vm8821_vm5, %v1158_v11, %v1322_v23  ;;  %v1140_v27 = vsel %vm8815_vm11, %v1132_v16, %v1139_v10  ;;  %v1316_v25 = vsel %vm8821_vm5, %v1141_v4, %v1315_v57  ;;  %1321 = vst.msk [vmem:[#allocation2 + $0xc4] sm:$0xf] %vm732_vm9, %v1157_v18  ;;  %v1626_v30 = vshrl.u32 %v1354_v41, 16 }
 0x161   : > { %1324 = vst [vmem:[#allocation2 + $0xc8] sm:$0x1] %v1323_v51  ;;  %1314 = vst.msk [vmem:[#allocation2 + $0xb8] sm:$0xf] %vm732_vm9, %v1140_v27  ;;  %v1571_v36 = vrot.slane %v1570_v62, 4  ;;  %v1629_v47 = vshll.u32 %v1354_v41, 16  ;;  %v7383_v38 = vcombine.low %v1354_v41, %v9201_v22  ;;  %v1584_v45 = vor.u32 %v9155_v14, %v9153_v39 }
 0x162   : > { %1317 = vst [vmem:[#allocation2 + $0xbc] sm:$0x1] %v1316_v25  ;;  %v1356_v23 = vld [vmem:[#allocation2 + $0x84] sm:$0xf]  ;;  %v1587_v57 = vshll.u32 %v9132_v0, 16  ;;  %v1593_v19 = vrot.slane %v1591_v1, 4 }
 0x163   : > { %v1576_v29 = vsel %vm8771_vm13, %v1571_v36, %v1575_v8  ;;  %v1628_v40 = vrot.slane %v1626_v30, 4  ;;  %v1631_v24 = vrot.slane %v1629_v47, 5  ;;  %v1597_v7 = vshll.u32 %v9217_v42, 16  ;;  %7997 = vmatprep.mubr.msk.bf16.mxu0 %vm415_vm1, %v7383_v38  ;;  %v9234_v14 = vld [vmem:[#allocation2 + $0x74] sm:$0x1] }
 0x164   : > { %v7348_v34 = vcombine.low %v1566_v61, %v1576_v29  ;;  %v1585_v41 = vrot.slane %v1584_v45, 4  ;;  %v1589_v16 = vrot.slane %v1587_v57, 5  ;;  %v1650_v39 = vshrl.u32 %v1356_v23, 16  ;;  %v1358_v11 = vld [vmem:[#allocation2 + $0x90] sm:$0xf] }
 0x165   : > { %v1599_v31 = vrot.slane %v1597_v7, 5  ;;  %v1653_v46 = vshll.u32 %v1356_v23, 16  ;;  %v1663_v1 = vshrl.u32 %v9228_v58, 16  ;;  %v7384_v12 = vcombine.low %v1356_v23, %v9228_v58  ;;  %v9243_v62 = vld [vmem:[#allocation2 + $0x94] sm:$0xf] }
 0x166   : > { %7956 = vmatmul.mubr.msk.bf16.gmra.mxu1 %vm415_vm1, %v7348_v34  ;;  %v1590_v10 = vsel %vm8771_vm13, %v1585_v41, %v1589_v16  ;;  %v1594_v4 = vor.u32 %v1593_v19, %v1589_v16  ;;  %v1652_v3 = vrot.slane %v1650_v39, 4  ;;  %v1608_v61 = vor.u32 %v9188_v6, %v9186_v56  ;;  %v9250_v25 = vld [vmem:[#allocation2 + $0x80] sm:$0x1]  ;;  %v1360_v38 = vld [vmem:[#allocation2 + $0x9c] sm:$0xf] }
 0x167   : > { %v1655_v8 = vrot.slane %v1653_v46, 5  ;;  %7998 = vmatmul.mubr.msk.bf16.gmra.mxu0 %vm415_vm1, %v7384_v12  ;;  %v1611_v18 = vshll.u32 %v9176_v50, 16  ;;  %v1617_v51 = vrot.slane %v1615_v59, 4  ;;  %v1621_v27 = vshll.u32 %v9234_v14, 16  ;;  %v9254_v19 = vld [vmem:[#allocation2 + $0xa0] sm:$0xf] }
 0x168   : > { %v1595_v36 = vrot.slane %v1594_v4, 4  ;;  %v1609_v30 = vrot.slane %v1608_v61, 4  ;;  %v1674_v47 = vshrl.u32 %v1358_v11, 16  ;;  %v1677_v23 = vshll.u32 %v1358_v11, 16 }
 0x169   : > { %v1613_v56 = vrot.slane %v1611_v18, 5  ;;  %v1623_v6 = vrot.slane %v1621_v27, 5  ;;  %v1687_v45 = vshrl.u32 %v9243_v62, 16  ;;  %v7385_v57 = vcombine.low %v1358_v11, %v9243_v62 }
 0x16a   : > { %v1600_v59 = vsel %vm8771_vm13, %v1595_v36, %v1599_v31  ;;  %v1676_v29 = vrot.slane %v1674_v47, 4  ;;  %v1679_v7 = vrot.slane %v1677_v23, 5  ;;  %v1632_v34 = vor.u32 %v1631_v24, %v1628_v40  ;;  %v9266_v36 = vld [vmem:[#allocation2 + $0x8c] sm:$0x1]  ;;  %v1362_v47 = vld [vmem:[#allocation2 + $0xa8] sm:$0xf] }
 0x16b   : > { %v7349_v41 = vcombine.low %v1590_v10, %v1600_v59  ;;  %v1614_v16 = vsel %vm8771_vm13, %v1609_v30, %v1613_v56  ;;  %v1618_v39 = vor.u32 %v1617_v51, %v1613_v56  ;;  %8001 = vmatprep.mubr.msk.bf16.mxu0 %vm415_vm1, %v7385_v57  ;;  %v1635_v46 = vshll.u32 %v9201_v22, 16  ;;  %v9272_v59 = vld [vmem:[#allocation2 + $0xac] sm:$0xf] }
 0x16c   : > { %v1633_v12 = vrot.slane %v1632_v34, 4  ;;  %v1641_v4 = vrot.slane %v1639_v49, 4  ;;  %v1645_v11 = vshll.u32 %v9250_v25, 16  ;;  %v1698_v61 = vshrl.u32 %v1360_v38, 16 }
 0x16d   : > { %7959 = vmatprep.mubr.msk.bf16.mxu1 %vm415_vm1, %v7349_v41  ;;  %v1619_v31 = vrot.slane %v1618_v39, 4  ;;  %v1637_v18 = vrot.slane %v1635_v46, 5  ;;  %v1701_v27 = vshll.u32 %v1360_v38, 16  ;;  %v1711_v40 = vshrl.u32 %v9254_v19, 16  ;;  %v9276_v46 = vld [vmem:[#allocation2 + $0x98] sm:$0x1] }
 0x16e   : > { %v1647_v24 = vrot.slane %v1645_v11, 5  ;;  %v1700_v10 = vrot.slane %v1698_v61, 4  ;;  %v7386_v51 = vcombine.low %v1360_v38, %v9254_v19  ;;  %v1656_v30 = vor.u32 %v1655_v8, %v1652_v3  ;;  %v1364_v61 = vld [vmem:[#allocation2 + $0xb4] sm:$0xf] }
 0x16f   : > { %v1624_v49 = vsel %vm8771_vm13, %v1619_v31, %v1623_v6  ;;  %v1638_v23 = vsel %vm8771_vm13, %v1633_v12, %v1637_v18  ;;  %v1642_v56 = vor.u32 %v1641_v4, %v1637_v18  ;;  %v1703_v57 = vrot.slane %v1701_v27, 5 }
 0x170   : > { %v7350_v34 = vcombine.low %v1614_v16, %v1624_v49  ;;  %8002 = vmatmul.mubr.msk.bf16.gmra.mxu0 %vm415_vm1, %v7386_v51  ;;  %v1657_v41 = vrot.slane %v1656_v30, 4  ;;  %v1659_v38 = vshll.u32 %v9228_v58, 16  ;;  %v1665_v39 = vrot.slane %v1663_v1, 4  ;;  %v9284_v30 = vld [vmem:[#allocation2 + $0xb8] sm:$0xf] }
 0x171   : > { %v1643_v3 = vrot.slane %v1642_v56, 4  ;;  %v1669_v8 = vshll.u32 %v9266_v36, 16  ;;  %v1722_v6 = vshrl.u32 %v1362_v47, 16  ;;  %v1725_v11 = vshll.u32 %v1362_v47, 16 }
 0x172   : > { %7960 = vmatmul.mubr.msk.bf16.gmra.mxu1 %vm415_vm1, %v7350_v34  ;;  %v1661_v12 = vrot.slane %v1659_v38, 5  ;;  %v1735_v4 = vshrl.u32 %v9272_v59, 16  ;;  %v7387_v16 = vcombine.low %v1362_v47, %v9272_v59  ;;  %v1680_v31 = vor.u32 %v1679_v7, %v1676_v29 }
 0x173   : > { %v1648_v18 = vsel %vm8771_vm13, %v1643_v3, %v1647_v24  ;;  %v1671_v1 = vrot.slane %v1669_v8, 5  ;;  %v1724_v27 = vrot.slane %v1722_v6, 4  ;;  %v1727_v51 = vrot.slane %v1725_v11, 5  ;;  %v9294_v11 = vld [vmem:[#allocation2 + $0xa4] sm:$0x1] }
 0x174   : > { %v7351_v49 = vcombine.low %v1638_v23, %v1648_v18  ;;  %v1662_v56 = vsel %vm8771_vm13, %v1657_v41, %v1661_v12  ;;  %v1666_v21 = vor.u32 %v1665_v39, %v1661_v12  ;;  %8005 = vmatprep.mubr.msk.bf16.mxu0 %vm415_vm1, %v7387_v16  ;;  %v1681_v34 = vrot.slane %v1680_v31, 4 }
 0x175   : > { %v1683_v38 = vshll.u32 %v9243_v62, 16  ;;  %v1689_v47 = vrot.slane %v1687_v45, 4  ;;  %v1693_v29 = vshll.u32 %v9276_v46, 16  ;;  %v1746_v7 = vshrl.u32 %v1364_v61, 16  ;;  %v8354_v45 = vld [vmem:[#allocation2 + $0xc] sm:$0xff]  }
 0x176   : > { %7963 = vmatprep.mubr.msk.bf16.mxu1 %vm415_vm1, %v7351_v49  ;;  %v1667_v24 = vrot.slane %v1666_v21, 4  ;;  %v1749_v3 = vshll.u32 %v1364_v61, 16  ;;  %v1759_v8 = vshrl.u32 %v9284_v30, 16  ;;  %v7388_v23 = vcombine.low %v1364_v61, %v9284_v30  ;;  %v9300_v49 = vld [vmem:[#allocation2 + $0xb0] sm:$0x1] }
 0x177   : > { %vm2337_vm9 = vcmask 1042432   ;;  %vm2338_vm14 = vcmask 1046532   ;;  %v1685_v41 = vrot.slane %v1683_v38, 5  ;;  %v1695_v39 = vrot.slane %v1693_v29, 5 }
 0x178   : > { %v1748_v6 = vrot.slane %v1746_v7, 4  ;;  %v1704_v12 = vor.u32 %v1703_v57, %v1700_v10  ;;  %v1672_v16 = vsel %vm8771_vm13, %v1667_v24, %v1671_v1  ;;  %v1751_v31 = vrot.slane %v1749_v3, 5  ;;  %8006 = vmatmul.mubr.msk.bf16.gmra.mxu0 %vm415_vm1, %v7388_v23  ;;  %vm9337_vm11 = vmor %vm2337_vm9, %vm2338_vm14 }
 0x179   : > { %v1707_v21 = vshll.u32 %v9254_v19, 16  ;;  %v1713_v18 = vrot.slane %v1711_v40, 4  ;;  %v7352_v61 = vcombine.low %v1662_v56, %v1672_v16  ;;  %v1686_v38 = vsel %vm8771_vm13, %v1681_v34, %v1685_v41  ;;  %8045 = vmatprep.mubr.msk.bf16.mxu0 %vm415_vm1, %v8354_v45  ;;  %v9310_v40 = vld [vmem:[%s11280_s4 + $0x14] sm:$0xf]  ;;  %v9320_v45 = vld [vmem:[#allocation2 + $0xbc] sm:$0x1] }
 0x17a   : > { %v1690_v29 = vor.u32 %v1689_v47, %v1685_v41  ;;  %v1705_v7 = vrot.slane %v1704_v12, 4  ;;  %v1717_v57 = vshll.u32 %v9294_v11, 16  ;;  %v1728_v1 = vor.u32 %v1727_v51, %v1724_v27  ;;  %v8388_v47 = vld [vmem:[%s11280_s4 + $0xc] sm:$0xf] }
 0x17b   : > { %v1709_v10 = vrot.slane %v1707_v21, 5  ;;  %v1731_v24 = vshll.u32 %v9272_v59, 16  ;;  %7964 = vmatmul.mubr.msk.bf16.gmra.mxu1 %vm415_vm1, %v7352_v61  ;;  %v1737_v3 = vrot.slane %v1735_v4, 4  ;;  %v1741_v34 = vshll.u32 %v9300_v49, 16 }
 0x17c   : > { %v1691_v56 = vrot.slane %v1690_v29, 4  ;;  %v2873_v23 = vsel %vm464_vm0, %v8388_v47, 0  ;;  %v1719_v41 = vrot.slane %v1717_v57, 5  ;;  %v1729_v12 = vrot.slane %v1728_v1, 4  ;;  %v2289_v29 = vld [vmem:[#allocation2] sm:$0xe] }
 0x17d   : > { %v1710_v27 = vsel %vm8771_vm13, %v1705_v7, %v1709_v10  ;;  %v1714_v51 = vor.u32 %v1713_v18, %v1709_v10  ;;  %8044 = vmatpush3.bf16.msra.mxu0 %v2873_v23  ;;  %v1733_v16 = vrot.slane %v1731_v24, 5  ;;  %v1743_v21 = vrot.slane %v1741_v34, 5  ;;  %v2290_v10 = vld [vmem:[#allocation2 + $0xc] sm:$0xe]  ;;  %v8356_v24 = vld [vmem:[#allocation2 + $0x24] sm:$0xff]  }
 0x17e   : > { %v1696_v4 = vsel %vm8771_vm13, %v1691_v56, %v1695_v39  ;;  %v1752_v61 = vor.u32 %v1751_v31, %v1748_v6  ;;  %8273 = vmatprep.subr.msk.bf16.mxu0 %vm464_vm0, %v9310_v40  ;;  %v1755_v18 = vshll.u32 %v9284_v30, 16  ;;  %v1761_v7 = vrot.slane %v1759_v8, 4  ;;  %v8389_v56 = vld [vmem:[#allocation2 + $0x4] sm:$0xf]  ;;  %v2291_v34 = vld [vmem:[#allocation2 + $0x18] sm:$0xe] }
 0x17f   : > { %v7353_v47 = vcombine.low %v1686_v38, %v1696_v4  ;;  %v1715_v35 = vrot.slane %v1714_v51, 4  ;;  %v1734_v57 = vsel %vm8771_vm13, %v1729_v12, %v1733_v16  ;;  %v1738_v1 = vor.u32 %v1737_v3, %v1733_v16 }
 0x180   : > { %v1753_v23 = vrot.slane %v1752_v61, 4  ;;  %v1765_v39 = vshll.u32 %v9320_v45, 16  ;;  %8046 = vmatmul.mubr.msk.bf16.vlgmr.msra.gmra.mxu0 %vm415_vm1, %v8355_v13  ;;  %v1757_v31 = vrot.slane %v1755_v18, 5  ;;  %v7405_v38 = vrot.slane %v2289_v29, 9  ;;  %v8390_v29 = vld [vmem:[#allocation2 + $0x10] sm:$0xf] }
 0x181   : > { %7967 = vmatprep.mubr.msk.bf16.mxu1 %vm415_vm1, %v7353_v47  ;;  %v1720_v6 = vsel %vm8771_vm13, %v1715_v35, %v1719_v41  ;;  %v2342_v8 = vrot.slane %v8389_v56, 5  ;;  %v1739_v4 = vrot.slane %v1738_v1, 4  ;;  %8049 = vmatprep.mubr.msk.bf16.mxu0 %vm415_vm1, %v8356_v24  ;;  %v7406_v16 = vrot.slane %v2290_v10, 9  ;;  %v2292_v1 = vld [vmem:[#allocation2 + $0x24] sm:$0xe] }
 0x182   : > { %v7354_v51 = vcombine.low %v1710_v27, %v1720_v6  ;;  %v1767_v12 = vrot.slane %v1765_v39, 5  ;;  %v1758_v13 = vsel %vm8771_vm13, %v1753_v23, %v1757_v31  ;;  %v1762_v35 = vor.u32 %v1761_v7, %v1757_v31  ;;  %v8391_v6 = vld [vmem:[#allocation2 + $0x1c] sm:$0xf] }
 0x183   : > { %v2343_v41 = vsel %vm9337_vm11, %v7405_v38, %v2342_v8  ;;  %v2344_v61 = vrot.slane %v2342_v8, 4  ;;  %v1744_v27 = vsel %vm8771_vm13, %v1739_v4, %v1743_v21  ;;  %v2349_v47 = vrot.slane %v8390_v29, 5  ;;  %v8392_v8 = vld [vmem:[#allocation2 + $0x20] sm:$0x1]  ;;  %v8393_v29 = vld [vmem:[#allocation2 + $0x28] sm:$0xf] }
 0x184   : > { %7968 = vmatmul.mubr.msk.bf16.gmra.mxu1 %vm415_vm1, %v7354_v51  ;;  %v9350_v18 = vsel %vm464_vm0, %v9020_v26, 0  ;;  %v7407_v10 = vrot.slane %v2291_v34, 9  ;;  %v7355_v39 = vcombine.low %v1734_v57, %v1744_v27  ;;  %v1763_v23 = vrot.slane %v1762_v35, 4  ;;  %v2293_v51 = vld [vmem:[#allocation2 + $0x30] sm:$0xe]  ;;  %v8358_v27 = vld [vmem:[#allocation2 + $0x3c] sm:$0xff]  }
 0x185   : > { %v11320_v7 = vrot.slane %v8765_v43, 5  ;;  %v2356_v31 = vrot.slane %v8391_v6, 5  ;;  %v9358_v21 = vsel %vm9337_vm11, %v7406_v16, %v2349_v47  ;;  %v2351_v56 = vrot.slane %v2349_v47, 4  ;;  %v8357_v43 = vld [vmem:[#allocation2 + $0x30] sm:$0xff]  }
 0x186   : > { %v2359_v26 = vrot.slane %v8392_v8, 5  ;;  %7971 = vmatprep.mubr.msk.bf16.mxu1 %vm415_vm1, %v7355_v39  ;;  %v1768_v57 = vsel %vm8771_vm13, %v1763_v23, %v1767_v12  ;;  %v7408_v35 = vrot.slane %v2292_v1, 9  ;;  %v11321_v16 = vrot.slane %v8964_v5, 5  ;;  %v2294_v12 = vld [vmem:[#allocation2 + $0x3c] sm:$0xe] }
 0x187   : > { %v2346_v24 = vsel %vm9337_vm11, %v2344_v61, %v11320_v7  ;;  %v9365_v34 = vsel %vm9337_vm11, %v7407_v10, %v2356_v31  ;;  %v2358_v4 = vrot.slane %v2356_v31, 4  ;;  %v2363_v47 = vrot.slane %v8393_v29, 5  ;;  %v8394_v1 = vld [vmem:[#allocation2 + $0x34] sm:$0xf]  ;;  %v2295_v7 = vld [vmem:[#allocation2 + $0x48] sm:$0xe] }
 0x188   : > { %v7421_v38 = vcombine.low %v2343_v41, %v2346_v24  ;;  %v7356_v41 = vcombine.low %v1758_v13, %v1768_v57  ;;  %v9371_v61 = vsel %vm9337_vm11, %v2351_v56, %v11321_v16  ;;  %v2366_v39 = vrot.slane %v9043_v55, 5  ;;  %8050 = vmatmul.mubr.msk.bf16.gmra.mxu0 %vm415_vm1, %v8357_v43 }
 0x189   : > { %v7422_v10 = vcombine.low %v9358_v21, %v9371_v61  ;;  %v9379_v13 = vsel %vm9337_vm11, %v2358_v4, %v2359_v26  ;;  %v7409_v5 = vrot.slane %v2293_v51, 9  ;;  %v2370_v23 = vrot.slane %v8394_v1, 5  ;;  %8053 = vmatprep.mubr.msk.bf16.mxu0 %vm415_vm1, %v8358_v27  ;;  %v8395_v26 = vld [vmem:[#allocation2 + $0x40] sm:$0xf]  ;;  %v2298_v1 = vld [vmem:[#allocation2 + $0x6c] sm:$0xe] }
 0x18a   : > { %v7423_v24 = vcombine.low %v9365_v34, %v9379_v13  ;;  %v9386_v55 = vsel %vm9337_vm11, %v7408_v35, %v2363_v47  ;;  %v2365_v6 = vrot.slane %v2363_v47, 4  ;;  %v2373_v31 = vrot.slane %v9069_v60, 5  ;;  %v2296_v60 = vld [vmem:[#allocation2 + $0x54] sm:$0xe]  ;;  %v2297_v27 = vld [vmem:[#allocation2 + $0x60] sm:$0xe] }
 0x18b   : > { %v9391_v21 = vsel %vm9337_vm11, %v7409_v5, %v2370_v23  ;;  %v2372_v56 = vrot.slane %v2370_v23, 4  ;;  %v7410_v8 = vrot.slane %v2294_v12, 9  ;;  %v2377_v51 = vrot.slane %v8395_v26, 5  ;;  %v8359_v47 = vld [vmem:[#allocation2 + $0x48] sm:$0xff]   ;;  %v8360_v23 = vld [vmem:[#allocation2 + $0x54] sm:$0xff]  }
 0x18c   : > { %7972 = vmatmul.mubr.msk.bf16.gmra.mxu1 %vm415_vm1, %v7356_v41  ;;  %v9396_v57 = vsel %vm9337_vm11, %v2365_v6, %v2366_v39  ;;  %v2380_v43 = vrot.slane %v9127_v48, 5  ;;  %v7411_v34 = vrot.slane %v2295_v7, 9  ;;  %v2384_v4 = vrot.slane %v9059_v32, 5 }
 0x18d   : > { %8011 = vmatprep.mubr.msk.bf16.mxu1 %vm415_vm1, %v7421_v38  ;;  %v7424_v35 = vcombine.low %v9386_v55, %v9396_v57  ;;  %v9405_v16 = vsel %vm9337_vm11, %v2372_v56, %v2373_v31  ;;  %v9409_v41 = vsel %vm9337_vm11, %v7410_v8, %v2377_v51  ;;  %v2379_v61 = vrot.slane %v2377_v51, 4  ;;  %v2299_v56 = vld [vmem:[#allocation2 + $0x78] sm:$0xe] }
 0x18e   : > { %v7425_v48 = vcombine.low %v9391_v21, %v9405_v16  ;;  %v9415_v32 = vsel %vm9337_vm11, %v7411_v34, %v2384_v4  ;;  %v2386_v38 = vrot.slane %v2384_v4, 4  ;;  %v2387_v29 = vrot.slane %v9149_v54, 5  ;;  %v2300_v4 = vld [vmem:[#allocation2 + $0x84] sm:$0xe] }
 0x18f   : > { %v9420_v39 = vsel %vm9337_vm11, %v2379_v61, %v2380_v43  ;;  %v7412_v12 = vrot.slane %v2296_v60, 9  ;;  %v2391_v13 = vrot.slane %v9109_v37, 5  ;;  %v2394_v5 = vrot.slane %v9190_v15, 5 }
 0x190   : > { %v7426_v7 = vcombine.low %v9409_v41, %v9420_v39  ;;  %v9428_v6 = vsel %vm9337_vm11, %v2386_v38, %v2387_v29  ;;  %v7413_v54 = vrot.slane %v2297_v27, 9  ;;  %v2398_v31 = vrot.slane %v9132_v0, 5  ;;  %8054 = vmatmul.mubr.msk.bf16.gmra.mxu0 %vm415_vm1, %v8359_v47  ;;  %v9454_v38 = vld [vmem:[%s11280_s4 + $0x18] sm:$0xf] }
 0x191   : > { %v7427_v37 = vcombine.low %v9415_v32, %v9428_v6  ;;  %v9436_v15 = vsel %vm9337_vm11, %v7412_v12, %v2391_v13  ;;  %v2393_v8 = vrot.slane %v2391_v13, 4  ;;  %v2401_v26 = vrot.slane %v9217_v42, 5  ;;  %8057 = vmatprep.mubr.msk.bf16.mxu0 %vm415_vm1, %v8360_v23  ;;  %v8365_v6 = vld [vmem:[#allocation2 + $0x90] sm:$0xff]  }
 0x192   : > { %v9442_v51 = vsel %vm9337_vm11, %v7413_v54, %v2398_v31  ;;  %v2400_v0 = vrot.slane %v2398_v31, 4  ;;  %v7414_v43 = vrot.slane %v2298_v1, 9  ;;  %v2405_v34 = vrot.slane %v9176_v50, 5  ;;  %v3728_v1 = vld [vmem:[#allocation2 + $0xc] sm:$0xe] }
 0x193   : > { %v9447_v60 = vsel %vm9337_vm11, %v2393_v8, %v2394_v5  ;;  %v2408_v61 = vrot.slane %v9234_v14, 5  ;;  %v7415_v27 = vrot.slane %v2299_v56, 9  ;;  %v2412_v42 = vrot.slane %v9201_v22, 5  ;;  %v2301_v22 = vld [vmem:[#allocation2 + $0x90] sm:$0xe]  ;;  %v8361_v56 = vld [vmem:[#allocation2 + $0x60] sm:$0xff]  }
 0x194   : > { %8012 = vmatmul.mubr.msk.bf16.vlgmr.msra.gmra.mxu1 %vm415_vm1, %v7422_v10  ;;  %v7428_v50 = vcombine.low %v9436_v15, %v9447_v60  ;;  %v9461_v29 = vsel %vm9337_vm11, %v2400_v0, %v2401_v26  ;;  %v9465_v14 = vsel %vm9337_vm11, %v7414_v43, %v2405_v34  ;;  %v2407_v47 = vrot.slane %v2405_v34, 4  ;;  %v2302_v31 = vld [vmem:[#allocation2 + $0x9c] sm:$0xe]  ;;  %v9491_v43 = vld [vmem:[#allocation2 + $0x10] sm:$0xf] }
 0x195   : > { %8078 = vmatpush3.bf16.msra.mxu1 %v9350_v18  ;;  %8015 = vmatprep.mubr.msk.bf16.mxu1 %vm415_vm1, %v7423_v24  ;;  %v9473_v12 = vsel %vm9337_vm11, %v7415_v27, %v2412_v42  ;;  %v2414_v13 = vrot.slane %v2412_v42, 4  ;;  %v2415_v5 = vrot.slane %v9250_v25, 5  ;;  %v7416_v54 = vrot.slane %v2300_v4, 9 }
 0x196   : > { %v9478_v23 = vsel %vm9337_vm11, %v2407_v47, %v2408_v61  ;;  %v2419_v18 = vrot.slane %v9228_v58, 5  ;;  %v2422_v24 = vrot.slane %v9266_v36, 5  ;;  %8274 = vmatprep.subr.msk.bf16.mxu1 %vm464_vm0, %v9454_v38  ;;  %v7417_v26 = vrot.slane %v2301_v22, 9  ;;  %v8362_v58 = vld [vmem:[#allocation2 + $0x6c] sm:$0xff]   ;;  %v9506_v22 = vld [vmem:[#allocation2 + $0x14] sm:$0x1] }
 0x197   : > { %v9488_v25 = vsel %vm9337_vm11, %v2414_v13, %v2415_v5  ;;  %v2426_v0 = vrot.slane %v9243_v62, 5  ;;  %v2429_v61 = vrot.slane %v9276_v46, 5  ;;  %v7418_v42 = vrot.slane %v2302_v31, 9 }
 0x198   : > { %v9497_v34 = vsel %vm9337_vm11, %v7416_v54, %v2419_v18  ;;  %v2421_v4 = vrot.slane %v2419_v18, 4  ;;  %8058 = vmatmul.mubr.msk.bf16.gmra.mxu0 %vm415_vm1, %v8361_v56  ;;  %v2433_v47 = vrot.slane %v9254_v19, 5  ;;  %v2436_v46 = vrot.slane %v9294_v11, 5  ;;  %v2303_v18 = vld [vmem:[#allocation2 + $0xa8] sm:$0xe] }
 0x199   : > { %v9503_v27 = vsel %vm9337_vm11, %v7417_v26, %v2426_v0  ;;  %v2428_v62 = vrot.slane %v2426_v0, 4  ;;  %8061 = vmatprep.mubr.msk.bf16.mxu0 %vm415_vm1, %v8362_v58  ;;  %v7517_v5 = vrot.slane %v3728_v1, 9  ;;  %v3794_v54 = vrot.slane %v9491_v43, 5  ;;  %v3729_v0 = vld [vmem:[#allocation2 + $0x18] sm:$0xe] }
 0x19a   : > { %v9511_v13 = vsel %vm9337_vm11, %v2421_v4, %v2422_v24  ;;  %v9523_v31 = vsel %vm9337_vm11, %v7418_v42, %v2433_v47  ;;  %v2435_v26 = vrot.slane %v2433_v47, 4  ;;  %v9525_v24 = vld [vmem:[#allocation2 + $0x1c] sm:$0xf]  ;;  %v3797_v4 = vrot.slane %v9506_v22, 5  ;;  %v9568_v11 = vld [vmem:[#allocation2 + $0x28] sm:$0xf] }
 0x19b   : > { %v9519_v19 = vsel %vm9337_vm11, %v2428_v62, %v2429_v61  ;;  %v9535_v1 = vsel %vm9337_vm11, %v7517_v5, %v3794_v54  ;;  %v3796_v58 = vrot.slane %v3794_v54, 4  ;;  %v9538_v61 = vld [vmem:[#allocation2 + $0x20] sm:$0x1]  ;;  %v2304_v62 = vld [vmem:[#allocation2 + $0xb4] sm:$0xe]  ;;  %v7419_v57 = vrot.slane %v2303_v18, 9 }
 0x19c   : > { %8016 = vmatmul.mubr.msk.bf16.gmra.mxu1 %vm415_vm1, %v7424_v35  ;;  %v9546_v55 = vsel %vm9337_vm11, %v2435_v26, %v2436_v46  ;;  %v2440_v35 = vrot.slane %v9272_v59, 5  ;;  %v2443_v42 = vrot.slane %v9300_v49, 5  ;;  %v1332_v47 = vld [vmem:[%s11280_s4 + $0x1c] sm:$0xf]  ;;  %v4001_v16 = vsel %vm464_vm0, %v9310_v40, 0 }
 0x19d   : > { %8019 = vmatprep.mubr.msk.bf16.mxu1 %vm415_vm1, %v7425_v48  ;;  %v8363_v5 = vld [vmem:[#allocation2 + $0x78] sm:$0xff]   ;;  %v9557_v21 = vsel %vm9337_vm11, %v3796_v58, %v3797_v4  ;;  %v7518_v48 = vrot.slane %v3729_v0, 9  ;;  %v3730_v46 = vld [vmem:[#allocation2 + $0x24] sm:$0xe]  ;;  %v3036_v59 = vld [vmem:[#allocation2 + $0xc] sm:$0xf]  ;;  %8112 = vmatpush3.bf16.msra.mxu0 %v4001_v16 }
 0x19e   : > { %v9565_v18 = vsel %vm9337_vm11, %v7419_v57, %v2440_v35  ;;  %v2442_v26 = vrot.slane %v2440_v35, 4  ;;  %v3801_v54 = vrot.slane %v9525_v24, 5  ;;  %v9570_v58 = vld [vmem:[#allocation2 + $0x2c] sm:$0x1]  ;;  %v8364_v4 = vld [vmem:[#allocation2 + $0x84] sm:$0xff]   ;;  %v3804_v40 = vrot.slane %v9538_v61, 5  ;;  %8275 = vmatprep.subr.msk.bf16.mxu0 %vm464_vm0, %v1332_v47 }
 0x19f   : > { %v7420_v0 = vrot.slane %v2304_v62, 9  ;;  %v2447_v56 = vrot.slane %v9284_v30, 5  ;;  %v2450_v49 = vrot.slane %v9320_v45, 5  ;;  %v7519_v36 = vrot.slane %v3730_v46, 9  ;;  %v3731_v46 = vld [vmem:[#allocation2 + $0x30] sm:$0xe] }
 0x1a0   : > { %8062 = vmatmul.mubr.msk.bf16.gmra.mxu0 %vm415_vm1, %v8363_v5  ;;  %v9579_v57 = vsel %vm9337_vm11, %v2442_v26, %v2443_v42  ;;  %v9583_v35 = vsel %vm9337_vm11, %v7518_v48, %v3801_v54  ;;  %v3803_v16 = vrot.slane %v3801_v54, 4  ;;  %v3808_v47 = vrot.slane %v9568_v11, 5  ;;  %v8366_v30 = vld [vmem:[#allocation2 + $0x9c] sm:$0xff]  }
 0x1a1   : > { %8065 = vmatprep.mubr.msk.bf16.mxu0 %vm415_vm1, %v8364_v4  ;;  %v9590_v45 = vsel %vm9337_vm11, %v7420_v0, %v2447_v56  ;;  %v2449_v62 = vrot.slane %v2447_v56, 4  ;;  %v3811_v5 = vrot.slane %v9570_v58, 5  ;;  %v3085_v54 = vshrl.u32 %v3036_v59, 16  ;;  %v9612_v0 = vld [vmem:[#allocation2 + $0x34] sm:$0xf] }
 0x1a2   : > { %v9595_v42 = vsel %vm9337_vm11, %v3803_v16, %v3804_v40  ;;  %v3088_v48 = vshll.u32 %v3036_v59, 16  ;;  %v9610_v4 = vsel %vm9337_vm11, %v7519_v36, %v3808_v47  ;;  %v3810_v40 = vrot.slane %v3808_v47, 4  ;;  %v3039_v59 = vld [vmem:[#allocation2 + $0x18] sm:$0xf] }
 0x1a3   : > { %v9606_v56 = vsel %vm9337_vm11, %v2449_v62, %v2450_v49  ;;  %v3087_v39 = vrot.slane %v3085_v54, 4  ;;  %v3094_v49 = vshll.u32 %v9491_v43, 16  ;;  %v9621_v16 = vld [vmem:[#allocation2 + $0x38] sm:$0x1]  ;;  %v3098_v62 = vshrl.u32 %v9491_v43, 16 }
 0x1a4   : > { %8020 = vmatmul.mubr.msk.bf16.gmra.mxu1 %vm415_vm1, %v7426_v7  ;;  %v3090_v7 = vrot.slane %v3088_v48, 5  ;;  %v9625_v36 = vsel %vm9337_vm11, %v3810_v40, %v3811_v5  ;;  %v3104_v47 = vshll.u32 %v9506_v22, 16  ;;  %v7520_v32 = vrot.slane %v3731_v46, 9 }
 0x1a5   : > { %8023 = vmatprep.mubr.msk.bf16.mxu1 %vm415_vm1, %v7427_v37  ;;  %v3096_v54 = vrot.slane %v3094_v49, 5  ;;  %v3815_v48 = vrot.slane %v9612_v0, 5  ;;  %v3100_v26 = vrot.slane %v3098_v62, 4  ;;  %v3818_v10 = vrot.slane %v9621_v16, 5  ;;  %v3732_v37 = vld [vmem:[#allocation2 + $0x3c] sm:$0xe] }
 0x1a6   : > { %v3091_v41 = vor.u32 %v3090_v7, %v3087_v39  ;;  %v3106_v8 = vrot.slane %v3104_v47, 5  ;;  %v3109_v5 = vshrl.u32 %v3039_v59, 16  ;;  %v3112_v40 = vshll.u32 %v3039_v59, 16  ;;  %v9641_v47 = vld [vmem:[#allocation2 + $0x40] sm:$0xf] }
 0x1a7   : > { %v9636_v22 = vsel %vm9337_vm11, %v7520_v32, %v3815_v48  ;;  %v3817_v46 = vrot.slane %v3815_v48, 4  ;;  %v3101_v39 = vor.u32 %v3100_v26, %v3096_v54  ;;  %v3118_v49 = vshll.u32 %v9525_v24, 16  ;;  %v9650_v48 = vld [vmem:[#allocation2 + $0x44] sm:$0x1] }
 0x1a8   : > { %8066 = vmatmul.mubr.msk.bf16.gmra.mxu0 %vm415_vm1, %v8365_v6  ;;  %v3092_v43 = vrot.slane %v3091_v41, 4  ;;  %v3111_v7 = vrot.slane %v3109_v5, 4  ;;  %v3122_v62 = vshrl.u32 %v9525_v24, 16  ;;  %v3114_v6 = vrot.slane %v3112_v40, 5  ;;  %v3042_v40 = vld [vmem:[#allocation2 + $0x24] sm:$0xf] }
 0x1a9   : > { %8069 = vmatprep.mubr.msk.bf16.mxu0 %vm415_vm1, %v8366_v30  ;;  %v9647_v32 = vsel %vm9337_vm11, %v3817_v46, %v3818_v10  ;;  %v3128_v59 = vshll.u32 %v9538_v61, 16  ;;  %v3102_v24 = vrot.slane %v3101_v39, 4  ;;  %v3120_v26 = vrot.slane %v3118_v49, 5  ;;  %v8367_v49 = vld [vmem:[#allocation2 + $0xa8] sm:$0xff]  }
 0x1aa   : > { %v3097_v41 = vsel %vm8771_vm13, %v3092_v43, %v3096_v54  ;;  %v3124_v54 = vrot.slane %v3122_v62, 4  ;;  %v11322_v10 = vcombine.low %v9442_v51, %v9461_v29  ;;  %v3115_v5 = vor.u32 %v3114_v6, %v3111_v7  ;;  %v3733_v62 = vld [vmem:[#allocation2 + $0x48] sm:$0xe]  ;;  %v8368_v6 = vld [vmem:[#allocation2 + $0xb4] sm:$0xff]  }
 0x1ab   : > { %v3130_v61 = vrot.slane %v3128_v59, 5  ;;  %v7521_v43 = vrot.slane %v3732_v37, 9  ;;  %v3822_v46 = vrot.slane %v9641_v47, 5  ;;  %v3107_v15 = vsel %vm8771_vm13, %v3102_v24, %v3106_v8 }
 0x1ac   : > { %8024 = vmatmul.mubr.msk.bf16.gmra.mxu1 %vm415_vm1, %v7428_v50  ;;  %v3125_v60 = vor.u32 %v3124_v54, %v3120_v26  ;;  %v3825_v50 = vrot.slane %v9650_v48, 5  ;;  %v9668_v39 = vsel %vm464_vm0, %v9454_v38, 0  ;;  %v9670_v51 = vcombine.low %v3097_v41, %v3107_v15 }
 0x1ad   : > { %8027 = vmatprep.mubr.msk.bf16.mxu1 %vm415_vm1, %v11322_v10  ;;  %v3116_v29 = vrot.slane %v3115_v5, 4  ;;  %v9674_v37 = vsel %vm9337_vm11, %v7521_v43, %v3822_v46  ;;  %v3824_v7 = vrot.slane %v3822_v46, 4  ;;  %v3133_v8 = vshrl.u32 %v3042_v40, 16  ;;  %v9686_v43 = vld [vmem:[#allocation2 + $0x4c] sm:$0xf] }
 0x1ae   : > { %v3126_v59 = vrot.slane %v3125_v60, 4  ;;  %v3136_v24 = vshll.u32 %v3042_v40, 16  ;;  %v3142_v54 = vshll.u32 %v9568_v11, 16  ;;  %v3146_v10 = vshrl.u32 %v9568_v11, 16  ;;  %v9688_v46 = vld [vmem:[#allocation2 + $0x50] sm:$0x1] }
 0x1af   : > { %v3121_v38 = vsel %vm8771_vm13, %v3116_v29, %v3120_v26  ;;  %v9682_v41 = vsel %vm9337_vm11, %v3824_v7, %v3825_v50  ;;  %v3152_v5 = vshll.u32 %v9570_v58, 16  ;;  %v3135_v15 = vrot.slane %v3133_v8, 4  ;;  %v3045_v50 = vld [vmem:[#allocation2 + $0x30] sm:$0xf]  ;;  %v9737_v26 = vld [vmem:[#allocation2 + $0x64] sm:$0xf] }
 0x1b0   : > { %8070 = vmatmul.mubr.msk.bf16.gmra.mxu0 %vm415_vm1, %v8367_v49  ;;  %v3131_v40 = vsel %vm8771_vm13, %v3126_v59, %v3130_v61  ;;  %v3138_v60 = vrot.slane %v3136_v24, 5  ;;  %v3144_v11 = vrot.slane %v3142_v54, 5  ;;  %v3148_v29 = vrot.slane %v3146_v10, 4 }
 0x1b1   : > { %8073 = vmatprep.mubr.msk.bf16.mxu0 %vm415_vm1, %v8368_v6  ;;  %v9695_v49 = vcombine.low %v3121_v38, %v3131_v40  ;;  %v3154_v58 = vrot.slane %v3152_v5, 5  ;;  %v11323_v7 = vcombine.low %v9465_v14, %v9478_v23  ;;  %v7522_v30 = vrot.slane %v3733_v62, 9  ;;  %v3734_v5 = vld [vmem:[#allocation2 + $0x54] sm:$0xe] }
 0x1b2   : > { %v3139_v6 = vor.u32 %v3138_v60, %v3135_v15  ;;  %v3829_v61 = vrot.slane %v9686_v43, 5  ;;  %v3832_v59 = vrot.slane %v9688_v46, 5  ;;  %v11324_v8 = vcombine.low %v9473_v12, %v9488_v25  ;;  %v9713_v15 = vld [vmem:[#allocation2 + $0x58] sm:$0xf]  ;;  %v8369_v60 = vld [vmem:[#allocation2 + $0xc0] sm:$0xff]  }
 0x1b3   : > { %v3149_v24 = vor.u32 %v3148_v29, %v3144_v11  ;;  %v3157_v54 = vshrl.u32 %v3045_v50, 16  ;;  %v3160_v38 = vshll.u32 %v3045_v50, 16  ;;  %v3166_v10 = vshll.u32 %v9612_v0, 16 }
 0x1b4   : > { %8028 = vmatmul.mubr.msk.bf16.gmra.mxu1 %vm415_vm1, %v11323_v7  ;;  %v3140_v14 = vrot.slane %v3139_v6, 4  ;;  %v9710_v23 = vsel %vm9337_vm11, %v7522_v30, %v3829_v61  ;;  %v3831_v62 = vrot.slane %v3829_v61, 4  ;;  %v3170_v40 = vshrl.u32 %v9612_v0, 16  ;;  %v9722_v61 = vld [vmem:[#allocation2 + $0x5c] sm:$0x1] }
 0x1b5   : > { %8031 = vmatprep.mubr.msk.bf16.mxu1 %vm415_vm1, %v11324_v8  ;;  %v3150_v12 = vrot.slane %v3149_v24, 4  ;;  %v3159_v25 = vrot.slane %v3157_v54, 4  ;;  %v3162_v7 = vrot.slane %v3160_v38, 5  ;;  %v3168_v29 = vrot.slane %v3166_v10, 5  ;;  %v3048_v0 = vld [vmem:[#allocation2 + $0x3c] sm:$0xf] }
 0x1b6   : > { %v3145_v50 = vsel %vm8771_vm13, %v3140_v14, %v3144_v11  ;;  %v9719_v6 = vsel %vm9337_vm11, %v3831_v62, %v3832_v59  ;;  %v3172_v8 = vrot.slane %v3170_v40, 4  ;;  %v3176_v30 = vshll.u32 %v9621_v16, 16 }
 0x1b7   : > { %v3155_v24 = vsel %vm8771_vm13, %v3150_v12, %v3154_v58  ;;  %v7538_v54 = vcombine.low %v9710_v23, %v9719_v6  ;;  %v3163_v38 = vor.u32 %v3162_v7, %v3159_v25  ;;  %v7523_v11 = vrot.slane %v3734_v5, 9 }
 0x1b8   : > { %8074 = vmatmul.mubr.msk.bf16.gmra.mxu0 %vm415_vm1, %v8369_v60  ;;  %v11325_v59 = vcombine.low %v9535_v1, %v9557_v21  ;;  %v9733_v10 = vcombine.low %v3145_v50, %v3155_v24  ;;  %v3173_v16 = vor.u32 %v3172_v8, %v3168_v29  ;;  %v3178_v14 = vrot.slane %v3176_v30, 5  ;;  %v9748_v50 = vld [vmem:[#allocation2 + $0x68] sm:$0x1]  ;;  %v3735_v24 = vld [vmem:[#allocation2 + $0x60] sm:$0xe] }
 0x1b9   : > { %v3836_v62 = vrot.slane %v9713_v15, 5  ;;  %v3164_v40 = vrot.slane %v3163_v38, 4  ;;  %v3839_v60 = vrot.slane %v9722_v61, 5  ;;  %v3181_v58 = vshrl.u32 %v3048_v0, 16 }
 0x1ba   : > { %8113 = vmatprep.mubr.msk.bf16.mxu0 %vm415_vm1, %v11325_v59  ;;  %v3184_v12 = vshll.u32 %v3048_v0, 16  ;;  %v11326_v5 = vcombine.low %v9497_v34, %v9511_v13  ;;  %v3174_v1 = vrot.slane %v3173_v16, 4  ;;  %v3190_v7 = vshll.u32 %v9641_v47, 16 }
 0x1bb   : > { %v9745_v21 = vsel %vm9337_vm11, %v7523_v11, %v3836_v62  ;;  %v3838_v25 = vrot.slane %v3836_v62, 4  ;;  %v11327_v8 = vcombine.low %v9503_v27, %v9519_v19  ;;  %v3169_v34 = vsel %vm8771_vm13, %v3164_v40, %v3168_v29  ;;  %v3051_v19 = vld [vmem:[#allocation2 + $0x48] sm:$0xf] }
 0x1bc   : > { %8032 = vmatmul.mubr.msk.bf16.gmra.mxu1 %vm415_vm1, %v11326_v5  ;;  %v3183_v13 = vrot.slane %v3181_v58, 4  ;;  %v3186_v30 = vrot.slane %v3184_v12, 5  ;;  %v3194_v0 = vshrl.u32 %v9641_v47, 16  ;;  %v3179_v38 = vsel %vm8771_vm13, %v3174_v1, %v3178_v14 }
 0x1bd   : > { %8035 = vmatprep.mubr.msk.bf16.mxu1 %vm415_vm1, %v11327_v8  ;;  %v9761_v11 = vsel %vm9337_vm11, %v3838_v25, %v3839_v60  ;;  %v3192_v59 = vrot.slane %v3190_v7, 5  ;;  %v3200_v27 = vshll.u32 %v9650_v48, 16  ;;  %v9764_v16 = vcombine.low %v3169_v34, %v3179_v38 }
 0x1be   : > { %v7539_v29 = vcombine.low %v9745_v21, %v9761_v11  ;;  %v3187_v62 = vor.u32 %v3186_v30, %v3183_v13  ;;  %v3196_v40 = vrot.slane %v3194_v0, 4  ;;  %v7524_v58 = vrot.slane %v3735_v24, 9  ;;  %v3054_v30 = vld [vmem:[#allocation2 + $0x54] sm:$0xf] }
 0x1bf   : > { %v3202_v47 = vrot.slane %v3200_v27, 5  ;;  %v3843_v12 = vrot.slane %v9737_v26, 5  ;;  %v3846_v14 = vrot.slane %v9748_v50, 5  ;;  %v11328_v60 = vcombine.low %v9583_v35, %v9595_v42  ;;  %v3736_v42 = vld [vmem:[#allocation2 + $0x6c] sm:$0xe] }
 0x1c0   : > { %v3188_v48 = vrot.slane %v3187_v62, 4  ;;  %v3197_v5 = vor.u32 %v3196_v40, %v3192_v59  ;;  %v3205_v1 = vshrl.u32 %v3051_v19, 16  ;;  %v3208_v25 = vshll.u32 %v3051_v19, 16  ;;  %v7979_v0 = vpop.f32.mrf.mxu0 }
 0x1c1   : > { %8114 = vmatmul.mubr.msk.bf16.vlgmr.msra.gmra.mxu0 %vm415_vm1, %v11328_v60  ;;  %v11329_v7 = vcombine.low %v9610_v4, %v9625_v36  ;;  %v9780_v8 = vsel %vm9337_vm11, %v7524_v58, %v3843_v12  ;;  %v3845_v34 = vrot.slane %v3843_v12, 4  ;;  %v3214_v13 = vshll.u32 %v9686_v43, 16  ;;  %v9786_v36 = vld [vmem:[#allocation2 + $0x70] sm:$0xf]  ;;  %v9797_v12 = vld [vmem:[#allocation2 + $0x74] sm:$0x1] }
 0x1c2   : > { %v3218_v35 = vshrl.u32 %v9686_v43, 16  ;;  %v3193_v24 = vsel %vm8771_vm13, %v3188_v48, %v3192_v59  ;;  %v3198_v38 = vrot.slane %v3197_v5, 4  ;;  %v3207_v27 = vrot.slane %v3205_v1, 4  ;;  %v9799_v59 = vpop.f32.mrf.mxu0 }
 0x1c3   : > { %8117 = vmatprep.mubr.msk.bf16.mxu0 %vm415_vm1, %v11329_v7  ;;  %v3210_v4 = vrot.slane %v3208_v25, 5  ;;  %v11330_v19 = vcombine.low %v9523_v31, %v9546_v55  ;;  %v9794_v62 = vsel %vm9337_vm11, %v3845_v34, %v3846_v14  ;;  %v3216_v43 = vrot.slane %v3214_v13, 5 }
 0x1c4   : > { %v3220_v40 = vrot.slane %v3218_v35, 4  ;;  %v3224_v58 = vshll.u32 %v9688_v46, 16  ;;  %v11331_v60 = vcombine.low %v9565_v18, %v9579_v57  ;;  %v3203_v31 = vsel %vm8771_vm13, %v3198_v38, %v3202_v47  ;;  %v7980_v7 = vpop.f32.mrf.mxu0  ;;  %v3737_v35 = vld [vmem:[#allocation2 + $0x78] sm:$0xe] }
 0x1c5   : > { %8036 = vmatmul.mubr.msk.bf16.gmra.mxu1 %vm415_vm1, %v11330_v19  ;;  %v7540_v55 = vcombine.low %v9780_v8, %v9794_v62  ;;  %v3211_v14 = vor.u32 %v3210_v4, %v3207_v27  ;;  %v7525_v48 = vrot.slane %v3736_v42, 9  ;;  %v9809_v5 = vcombine.low %v3193_v24, %v3203_v31  ;;  %v9818_v24 = vld [vmem:[#allocation2 + $0x7c] sm:$0xf] }
 0x1c6   : > { %8039 = vmatprep.mubr.msk.bf16.mxu1 %vm415_vm1, %v11331_v60  ;;  %v3221_v46 = vor.u32 %v3220_v40, %v3216_v43  ;;  %v3226_v1 = vrot.slane %v3224_v58, 5  ;;  %v3850_v25 = vrot.slane %v9786_v36, 5  ;;  %v3853_v18 = vrot.slane %v9797_v12, 5  ;;  %v9827_v58 = vld [vmem:[#allocation2 + $0x80] sm:$0x1] }
 0x1c7   : > { %v3212_v34 = vrot.slane %v3211_v14, 4  ;;  %v3229_v57 = vshrl.u32 %v3054_v30, 16  ;;  %v3232_v13 = vshll.u32 %v3054_v30, 16  ;;  %v3238_v42 = vshll.u32 %v9713_v15, 16  ;;  %v3057_v14 = vld [vmem:[#allocation2 + $0x60] sm:$0xf] }
 0x1c8   : > { %v3222_v0 = vrot.slane %v3221_v46, 4  ;;  %v9815_v47 = vsel %vm9337_vm11, %v7525_v48, %v3850_v25  ;;  %v3852_v38 = vrot.slane %v3850_v25, 4  ;;  %v11332_v27 = vcombine.low %v9636_v22, %v9647_v32  ;;  %v3740_v62 = vld [vmem:[#allocation2 + $0x9c] sm:$0xe] }
 0x1c9   : > { %v3217_v4 = vsel %vm8771_vm13, %v3212_v34, %v3216_v43  ;;  %v3231_v30 = vrot.slane %v3229_v57, 4  ;;  %v3234_v19 = vrot.slane %v3232_v13, 5  ;;  %v3242_v40 = vshrl.u32 %v9713_v15, 16 }
 0x1ca   : > { %8118 = vmatmul.mubr.msk.bf16.gmra.mxu0 %vm415_vm1, %v11332_v27  ;;  %v11333_v60 = vcombine.low %v9674_v37, %v9682_v41  ;;  %v3227_v31 = vsel %vm8771_vm13, %v3222_v0, %v3226_v1  ;;  %v9837_v22 = vsel %vm9337_vm11, %v3852_v38, %v3853_v18  ;;  %v3240_v32 = vrot.slane %v3238_v42, 5  ;;  %v3738_v38 = vld [vmem:[#allocation2 + $0x84] sm:$0xe]  ;;  %v3060_v42 = vld [vmem:[#allocation2 + $0x6c] sm:$0xf] }
 0x1cb   : > { %v3248_v43 = vshll.u32 %v9722_v61, 16  ;;  %v9840_v48 = vcombine.low %v3217_v4, %v3227_v31  ;;  %v7541_v15 = vcombine.low %v9815_v47, %v9837_v22  ;;  %v3235_v46 = vor.u32 %v3234_v19, %v3231_v30  ;;  %v9860_v19 = vld [vmem:[#allocation2 + $0x88] sm:$0xf] }
 0x1cc   : > { %8121 = vmatprep.mubr.msk.bf16.mxu0 %vm415_vm1, %v11333_v60  ;;  %v3244_v37 = vrot.slane %v3242_v40, 4  ;;  %v11334_v41 = vcombine.low %v9590_v45, %v9606_v56  ;;  %v7526_v25 = vrot.slane %v3737_v35, 9  ;;  %v3857_v7 = vrot.slane %v9818_v24, 5 }
 0x1cd   : > { %v3250_v1 = vrot.slane %v3248_v43, 5  ;;  %v3860_v34 = vrot.slane %v9827_v58, 5  ;;  %v3236_v61 = vrot.slane %v3235_v46, 4  ;;  %v3253_v57 = vshrl.u32 %v3057_v14, 16 }
 0x1ce   : > { %8040 = vmatmul.mubr.msk.bf16.gmra.mxu1 %vm415_vm1, %v11334_v41  ;;  %v3245_v18 = vor.u32 %v3244_v37, %v3240_v32  ;;  %v3256_v13 = vshll.u32 %v3057_v14, 16  ;;  %v9854_v0 = vsel %vm9337_vm11, %v7526_v25, %v3857_v7  ;;  %v3859_v45 = vrot.slane %v3857_v7, 4  ;;  %v9867_v14 = vld [vmem:[#allocation2 + $0x8c] sm:$0x1] }
 0x1cf   : > { %8079 = vmatprep.mubr.msk.bf16.mxu1 %vm415_vm1, %v9670_v51  ;;  %v3262_v56 = vshll.u32 %v9737_v26, 16  ;;  %v3266_v35 = vshrl.u32 %v9737_v26, 16  ;;  %v3241_v27 = vsel %vm8771_vm13, %v3236_v61, %v3240_v32  ;;  %v3255_v51 = vrot.slane %v3253_v57, 4  ;;  %v9888_v61 = vld [vmem:[%s11280_s4 + $0x20] sm:$0xf] }
 0x1d0   : > { %v3246_v4 = vrot.slane %v3245_v18, 4  ;;  %v3258_v30 = vrot.slane %v3256_v13, 5  ;;  %v9864_v40 = vsel %vm9337_vm11, %v3859_v45, %v3860_v34  ;;  %v3272_v43 = vshll.u32 %v9748_v50, 16  ;;  %v3739_v34 = vld [vmem:[#allocation2 + $0x90] sm:$0xe] }
 0x1d1   : > { %v3264_v60 = vrot.slane %v3262_v56, 5  ;;  %v3268_v31 = vrot.slane %v3266_v35, 4  ;;  %v7542_v32 = vcombine.low %v9854_v0, %v9864_v40  ;;  %v7527_v37 = vrot.slane %v3738_v38, 9  ;;  %v9897_v57 = vld [vmem:[#allocation2 + $0x94] sm:$0xf] }
 0x1d2   : > { %8122 = vmatmul.mubr.msk.bf16.gmra.mxu0 %vm415_vm1, %v7538_v54  ;;  %v3251_v26 = vsel %vm8771_vm13, %v3246_v4, %v3250_v1  ;;  %v3259_v46 = vor.u32 %v3258_v30, %v3255_v51  ;;  %v3274_v25 = vrot.slane %v3272_v43, 5  ;;  %v3864_v23 = vrot.slane %v9860_v19, 5  ;;  %v9905_v35 = vld [vmem:[#allocation2 + $0x98] sm:$0x1]  ;;  %v3069_v40 = vld [vmem:[#allocation2 + $0x90] sm:$0xf] }
 0x1d3   : > { %8125 = vmatprep.mubr.msk.bf16.mxu0 %vm415_vm1, %v7539_v29  ;;  %v9881_v50 = vcombine.low %v3241_v27, %v3251_v26  ;;  %v3269_v41 = vor.u32 %v3268_v31, %v3264_v60  ;;  %v3867_v54 = vrot.slane %v9867_v14, 5  ;;  %v3277_v1 = vshrl.u32 %v3060_v42, 16 }
 0x1d4   : > { %v3260_v6 = vrot.slane %v3259_v46, 4  ;;  %v3280_v7 = vshll.u32 %v3060_v42, 16  ;;  %v9894_v11 = vsel %vm9337_vm11, %v7527_v37, %v3864_v23  ;;  %v3866_v29 = vrot.slane %v3864_v23, 4 }
 0x1d5   : > { %v3270_v21 = vrot.slane %v3269_v41, 4  ;;  %v3286_v18 = vshll.u32 %v9786_v36, 16  ;;  %v3279_v45 = vrot.slane %v3277_v1, 4  ;;  %v3290_v56 = vshrl.u32 %v9786_v36, 16 }
 0x1d6   : > { %8080 = vmatmul.mubr.msk.bf16.vlgmr.msra.gmra.mxu1 %vm415_vm1, %v9695_v49  ;;  %v3265_v13 = vsel %vm8771_vm13, %v3260_v6, %v3264_v60  ;;  %v3282_v49 = vrot.slane %v3280_v7, 5  ;;  %v9911_v42 = vsel %vm9337_vm11, %v3866_v29, %v3867_v54  ;;  %v3296_v27 = vshll.u32 %v9797_v12, 16  ;;  %v9936_v54 = vpop.f32.mrf.mxu0  ;;  %v9949_v29 = vld [vmem:[#allocation2 + $0xa4] sm:$0x1] }
 0x1d7   : > { %8146 = vmatpush3.bf16.msra.mxu1 %v9668_v39  ;;  %8083 = vmatprep.mubr.msk.bf16.mxu1 %vm415_vm1, %v9733_v10  ;;  %v3275_v38 = vsel %vm8771_vm13, %v3270_v21, %v3274_v25  ;;  %v3288_v39 = vrot.slane %v3286_v18, 5  ;;  %v3063_v10 = vld [vmem:[#allocation2 + $0x78] sm:$0xf]  ;;  %v7543_v36 = vcombine.low %v9894_v11, %v9911_v42  ;;  %v3292_v30 = vrot.slane %v3290_v56, 4 }
 0x1d8   : > { %8276 = vmatprep.subr.msk.bf16.mxu1 %vm464_vm0, %v9888_v61  ;;  %v9916_v4 = vcombine.low %v3265_v13, %v3275_v38  ;;  %v3283_v51 = vor.u32 %v3282_v49, %v3279_v45  ;;  %v3298_v60 = vrot.slane %v3296_v27, 5  ;;  %v7528_v31 = vrot.slane %v3739_v34, 9 }
 0x1d9   : > { %v3871_v43 = vrot.slane %v9897_v57, 5  ;;  %v3874_v26 = vrot.slane %v9905_v35, 5  ;;  %v3293_v46 = vor.u32 %v3292_v30, %v3288_v39  ;;  %v3301_v37 = vshrl.u32 %v3063_v10, 16 }
 0x1da   : > { %8126 = vmatmul.mubr.msk.bf16.gmra.mxu0 %vm415_vm1, %v7540_v55  ;;  %v3284_v12 = vrot.slane %v3283_v51, 4  ;;  %v3304_v41 = vshll.u32 %v3063_v10, 16  ;;  %v3310_v6 = vshll.u32 %v9818_v24, 16  ;;  %v3314_v8 = vshrl.u32 %v9818_v24, 16  ;;  %v3066_v55 = vld [vmem:[#allocation2 + $0x84] sm:$0xf] }
 0x1db   : > { %8129 = vmatprep.mubr.msk.bf16.mxu0 %vm415_vm1, %v7541_v15  ;;  %v9932_v25 = vsel %vm9337_vm11, %v7528_v31, %v3871_v43  ;;  %v3873_v23 = vrot.slane %v3871_v43, 4  ;;  %v3294_v7 = vrot.slane %v3293_v46, 4  ;;  %v3303_v47 = vrot.slane %v3301_v37, 4  ;;  %v9940_v15 = vld [vmem:[#allocation2 + $0xa0] sm:$0xf] }
 0x1dc   : > { %v3289_v1 = vsel %vm8771_vm13, %v3284_v12, %v3288_v39  ;;  %v3306_v22 = vrot.slane %v3304_v41, 5  ;;  %v3312_v24 = vrot.slane %v3310_v6, 5  ;;  %v3316_v21 = vrot.slane %v3314_v8, 4  ;;  %v9961_v51 = vld [vmem:[#allocation2 + $0xac] sm:$0xf] }
 0x1dd   : > { %v9946_v34 = vsel %vm9337_vm11, %v3873_v23, %v3874_v26  ;;  %v3320_v11 = vshll.u32 %v9827_v58, 16  ;;  %v3299_v18 = vsel %vm8771_vm13, %v3294_v7, %v3298_v60  ;;  %v7529_v45 = vrot.slane %v3740_v62, 9  ;;  %v7983_v58 = vpop.f32.mrf.mxu0  ;;  %v9966_v26 = vld [vmem:[#allocation2 + $0xb0] sm:$0x1]  ;;  %v3741_v23 = vld [vmem:[#allocation2 + $0xa8] sm:$0xe] }
 0x1de   : > { %8084 = vmatmul.mubr.msk.bf16.gmra.mxu1 %vm415_vm1, %v9764_v16  ;;  %v7544_v13 = vcombine.low %v9932_v25, %v9946_v34  ;;  %v3307_v16 = vor.u32 %v3306_v22, %v3303_v47  ;;  %v9957_v49 = vcombine.low %v3289_v1, %v3299_v18  ;;  %v3317_v56 = vor.u32 %v3316_v21, %v3312_v24 }
 0x1df   : > { %8087 = vmatprep.mubr.msk.bf16.mxu1 %vm415_vm1, %v9809_v5  ;;  %v3322_v38 = vrot.slane %v3320_v11, 5  ;;  %v3878_v42 = vrot.slane %v9940_v15, 5  ;;  %v3881_v27 = vrot.slane %v9949_v29, 5  ;;  %v3325_v10 = vshrl.u32 %v3066_v55, 16  ;;  %v9968_v12 = vpop.f32.mrf.mxu0 }
 0x1e0   : > { %v3308_v39 = vrot.slane %v3307_v16, 4  ;;  %v3328_v5 = vshll.u32 %v3066_v55, 16  ;;  %v3318_v30 = vrot.slane %v3317_v56, 4  ;;  %v3334_v43 = vshll.u32 %v9860_v19, 16  ;;  %v3742_v56 = vld [vmem:[#allocation2 + $0xb4] sm:$0xe] }
 0x1e1   : > { %v3879_v60 = vsel %vm9337_vm11, %v7529_v45, %v3878_v42  ;;  %v3880_v31 = vrot.slane %v3878_v42, 4  ;;  %v3327_v37 = vrot.slane %v3325_v10, 4  ;;  %v3338_v25 = vshrl.u32 %v9860_v19, 16 }
 0x1e2   : > { %8130 = vmatmul.mubr.msk.bf16.gmra.mxu0 %vm415_vm1, %v7542_v32  ;;  %v3313_v46 = vsel %vm8771_vm13, %v3308_v39, %v3312_v24  ;;  %v3330_v41 = vrot.slane %v3328_v5, 5  ;;  %v3323_v6 = vsel %vm8771_vm13, %v3318_v30, %v3322_v38  ;;  %v3336_v62 = vrot.slane %v3334_v43, 5  ;;  %v7984_v32 = vpop.f32.mrf.mxu0  ;;  %v3072_v38 = vld [vmem:[#allocation2 + $0x9c] sm:$0xf] }
 0x1e3   : > { %8133 = vmatprep.mubr.msk.bf16.mxu0 %vm415_vm1, %v7543_v36  ;;  %v3882_v8 = vsel %vm9337_vm11, %v3880_v31, %v3881_v27  ;;  %v3344_v0 = vshll.u32 %v9867_v14, 16  ;;  %v9983_v55 = vcombine.low %v3313_v46, %v3323_v6  ;;  %v3340_v47 = vrot.slane %v3338_v25, 4  ;;  %v9997_v27 = vld [vmem:[#allocation2 + $0xb8] sm:$0xf]  ;;  %v10002_v31 = vld [vmem:[#allocation2 + $0xbc] sm:$0x1] }
 0x1e4   : > { %v7545_v1 = vcombine.low %v3879_v60, %v3882_v8  ;;  %v3331_v7 = vor.u32 %v3330_v41, %v3327_v37  ;;  %v7530_v36 = vrot.slane %v3741_v23, 9  ;;  %v3885_v22 = vrot.slane %v9961_v51, 5 }
 0x1e5   : > { %v3346_v19 = vrot.slane %v3344_v0, 5  ;;  %v3888_v34 = vrot.slane %v9966_v26, 5  ;;  %v3341_v24 = vor.u32 %v3340_v47, %v3336_v62  ;;  %v3349_v21 = vshrl.u32 %v3069_v40, 16  ;;  %v10015_v47 = vld [vmem:[#allocation2 + $0xc4] sm:$0xf] }
 0x1e6   : > { %8088 = vmatmul.mubr.msk.bf16.gmra.mxu1 %vm415_vm1, %v9840_v48  ;;  %v3332_v14 = vrot.slane %v3331_v7, 4  ;;  %v3352_v11 = vshll.u32 %v3069_v40, 16  ;;  %v3886_v18 = vsel %vm9337_vm11, %v7530_v36, %v3885_v22  ;;  %v3887_v16 = vrot.slane %v3885_v22, 4  ;;  %v3743_v40 = vld [vmem:[#allocation2 + $0xc0] sm:$0xe] }
 0x1e7   : > { %8091 = vmatprep.mubr.msk.bf16.mxu1 %vm415_vm1, %v9881_v50  ;;  %v3358_v45 = vshll.u32 %v9897_v57, 16  ;;  %v3362_v48 = vshrl.u32 %v9897_v57, 16  ;;  %v3342_v58 = vrot.slane %v3341_v24, 4  ;;  %v3351_v39 = vrot.slane %v3349_v21, 4 }
 0x1e8   : > { %v3337_v42 = vsel %vm8771_vm13, %v3332_v14, %v3336_v62  ;;  %v3354_v50 = vrot.slane %v3352_v11, 5  ;;  %v3889_v10 = vsel %vm9337_vm11, %v3887_v16, %v3888_v34  ;;  %v3368_v60 = vshll.u32 %v9905_v35, 16  ;;  %v10024_v14 = vld [vmem:[#allocation2 + $0xc8] sm:$0x1] }
 0x1e9   : > { %v3360_v5 = vrot.slane %v3358_v45, 5  ;;  %v3364_v30 = vrot.slane %v3362_v48, 4  ;;  %v3347_v57 = vsel %vm8771_vm13, %v3342_v58, %v3346_v19  ;;  %v7546_v43 = vcombine.low %v3886_v18, %v3889_v10  ;;  %v10017_v19 = vpop.f32.mrf.mxu0 }
 0x1ea   : > { %8134 = vmatmul.mubr.msk.bf16.gmra.mxu0 %vm415_vm1, %v7544_v13  ;;  %v3355_v46 = vor.u32 %v3354_v50, %v3351_v39  ;;  %v7531_v37 = vrot.slane %v3742_v56, 9  ;;  %v7495_v41 = vcombine.low %v3337_v42, %v3347_v57  ;;  %v3370_v23 = vrot.slane %v3368_v60, 5  ;;  %11335 = vst [vmem:[#allocation15_spill] sm:$0xff] %v10017_v19 }
 0x1eb   : > { %8137 = vmatprep.mubr.msk.bf16.mxu0 %vm415_vm1, %v7545_v1  ;;  %v3365_v25 = vor.u32 %v3364_v30, %v3360_v5  ;;  %v3892_v6 = vrot.slane %v9997_v27, 5  ;;  %v3895_v35 = vrot.slane %v10002_v31, 5  ;;  %v3373_v62 = vshrl.u32 %v3072_v38, 16  ;;  %v7945_v24 = vpop.f32.mrf.mxu1 }
 0x1ec   : > { %v3356_v8 = vrot.slane %v3355_v46, 4  ;;  %v3376_v0 = vshll.u32 %v3072_v38, 16  ;;  %v3382_v1 = vshll.u32 %v9940_v15, 16  ;;  %v3392_v16 = vshll.u32 %v9949_v29, 16  ;;  %v3078_v24 = vld [vmem:[#allocation2 + $0xb4] sm:$0xf] }
 0x1ed   : > { %v3366_v13 = vrot.slane %v3365_v25, 4  ;;  %v3893_v32 = vsel %vm9337_vm11, %v7531_v37, %v3892_v6  ;;  %v3894_v7 = vrot.slane %v3892_v6, 4  ;;  %v3375_v22 = vrot.slane %v3373_v62, 4  ;;  %v10033_v42 = vpop.f32.mrf.mxu1  ;;  %v4489_v6 = vld [vmem:[#allocation2 + $0x18] sm:$0xf] }
 0x1ee   : > { %8092 = vmatmul.mubr.msk.bf16.gmra.mxu1 %vm415_vm1, %v9916_v4  ;;  %v3361_v36 = vsel %vm8771_vm13, %v3356_v8, %v3360_v5  ;;  %v3378_v34 = vrot.slane %v3376_v0, 5  ;;  %v3386_v4 = vshrl.u32 %v9940_v15, 16  ;;  %v3384_v18 = vrot.slane %v3382_v1, 5 }
 0x1ef   : > { %8095 = vmatprep.mubr.msk.bf16.mxu1 %vm415_vm1, %v9957_v49  ;;  %v3371_v21 = vsel %vm8771_vm13, %v3366_v13, %v3370_v23  ;;  %v3896_v11 = vsel %vm9337_vm11, %v3894_v7, %v3895_v35  ;;  %v3075_v49 = vld [vmem:[#allocation2 + $0xa8] sm:$0xf]  ;;  %v3394_v15 = vrot.slane %v3392_v16, 5  ;;  %v7532_v58 = vrot.slane %v3743_v40, 9  ;;  %v7987_v10 = vpop.f32.mrf.mxu0  ;;  %v7946_v57 = vpop.f32.mrf.mxu1 }
 0x1f0   : > { %v10031_v45 = vcombine.low %v3361_v36, %v3371_v21  ;;  %v7547_v48 = vcombine.low %v3893_v32, %v3896_v11  ;;  %v3379_v56 = vor.u32 %v3378_v34, %v3375_v22  ;;  %v3388_v38 = vrot.slane %v3386_v4, 4  ;;  %v10057_v4 = vld [vmem:[#allocation2 + $0x20] sm:$0x1] }
 0x1f1   : > { %v3899_v39 = vrot.slane %v10015_v47, 5  ;;  %v3902_v50 = vrot.slane %v10024_v14, 5  ;;  %v3397_v29 = vshrl.u32 %v3075_v49, 16  ;;  %v3400_v60 = vshll.u32 %v3075_v49, 16  ;;  %v10043_v8 = vpop.f32.mrf.mxu0 }
 0x1f2   : > { %8138 = vmatmul.mubr.msk.bf16.gmra.mxu0 %vm415_vm1, %v7546_v43  ;;  %v3380_v5 = vrot.slane %v3379_v56, 4  ;;  %v3389_v30 = vor.u32 %v3388_v38, %v3384_v18  ;;  %v3406_v25 = vshll.u32 %v9961_v51, 16  ;;  %v3410_v23 = vshrl.u32 %v9961_v51, 16  ;;  %v10052_v51 = vld [vmem:[#allocation2 + $0x1c] sm:$0xf] }
 0x1f3   : > { %8141 = vmatprep.mubr.msk.bf16.mxu0 %vm415_vm1, %v7547_v48  ;;  %v3900_v46 = vsel %vm9337_vm11, %v7532_v58, %v3899_v39  ;;  %v3901_v37 = vrot.slane %v3899_v39, 4  ;;  %v3399_v62 = vrot.slane %v3397_v29, 4  ;;  %v3402_v0 = vrot.slane %v3400_v60, 5  ;;  %v7988_v1 = vpop.f32.mrf.mxu0 }
 0x1f4   : > { %v3385_v43 = vsel %vm8771_vm13, %v3380_v5, %v3384_v18  ;;  %v3390_v35 = vrot.slane %v3389_v30, 4  ;;  %v3408_v13 = vrot.slane %v3406_v25, 5  ;;  %v3412_v32 = vrot.slane %v3410_v23, 4 }
 0x1f5   : > { %v3903_v40 = vsel %vm9337_vm11, %v3901_v37, %v3902_v50  ;;  %v3416_v7 = vshll.u32 %v9966_v26, 16  ;;  %v3403_v34 = vor.u32 %v3402_v0, %v3399_v62  ;;  %v4541_v16 = vshll.u32 %v4489_v6, 16 }
 0x1f6   : > { %8096 = vmatmul.mubr.msk.bf16.gmra.mxu1 %vm415_vm1, %v9983_v55  ;;  %v3395_v36 = vsel %vm8771_vm13, %v3390_v35, %v3394_v15  ;;  %v7548_v22 = vcombine.low %v3900_v46, %v3903_v40  ;;  %v4538_v55 = vshrl.u32 %v4489_v6, 16  ;;  %v3413_v11 = vor.u32 %v3412_v32, %v3408_v13  ;;  %v4492_v46 = vld [vmem:[#allocation2 + $0x24] sm:$0xf]  ;;  %v8396_v40 = vld [vmem:[%s11280_s4 + $0x1c] sm:$0xf] }
 0x1f7   : > { %8099 = vmatprep.mubr.msk.bf16.mxu1 %vm415_vm1, %v7495_v41  ;;  %v7497_v21 = vcombine.low %v3385_v43, %v3395_v36  ;;  %v3418_v18 = vrot.slane %v3416_v7, 5  ;;  %v3404_v49 = vrot.slane %v3403_v34, 4  ;;  %v4547_v48 = vshll.u32 %v10052_v51, 16  ;;  %v10068_v43 = vpop.f32.mrf.mxu1  ;;  %v10078_v32 = vld [vmem:[#allocation2 + $0x28] sm:$0xf] }
 0x1f8   : > { %v4540_v26 = vrot.slane %v4538_v55, 4  ;;  %v4551_v56 = vshrl.u32 %v10052_v51, 16  ;;  %v3414_v41 = vrot.slane %v3413_v11, 4  ;;  %v4543_v38 = vrot.slane %v4541_v16, 5 }
 0x1f9   : > { %v4557_v15 = vshll.u32 %v10057_v4, 16  ;;  %v3421_v58 = vshrl.u32 %v3078_v24, 16  ;;  %v3409_v39 = vsel %vm8771_vm13, %v3404_v49, %v3408_v13  ;;  %v4549_v50 = vrot.slane %v4547_v48, 5 }
 0x1fa   : > { %8142 = vmatmul.mubr.msk.bf16.gmra.mxu0 %vm415_vm1, %v7548_v22  ;;  %v4553_v10 = vrot.slane %v4551_v56, 4  ;;  %v3424_v5 = vshll.u32 %v3078_v24, 16  ;;  %v3419_v30 = vsel %vm8771_vm13, %v3414_v41, %v3418_v18  ;;  %v4544_v29 = vor.u32 %v4543_v38, %v4540_v26  ;;  %v3081_v24 = vld [vmem:[#allocation2 + $0xc0] sm:$0xf] }
 0x1fb   : > { %v4559_v60 = vrot.slane %v4557_v15, 5  ;;  %v3423_v57 = vrot.slane %v3421_v58, 4  ;;  %v7498_v37 = vcombine.low %v3409_v39, %v3419_v30  ;;  %v3430_v6 = vshll.u32 %v9997_v27, 16 }
 0x1fc   : > { %v4554_v25 = vor.u32 %v4553_v10, %v4549_v50  ;;  %v3426_v23 = vrot.slane %v3424_v5, 5  ;;  %v4545_v35 = vrot.slane %v4544_v29, 4  ;;  %v3434_v62 = vshrl.u32 %v9997_v27, 16 }
 0x1fd   : > { %v3440_v0 = vshll.u32 %v10002_v31, 16  ;;  %v5018_v13 = vsel %vm464_vm0, %v8396_v40, 0  ;;  %v3432_v36 = vrot.slane %v3430_v6, 5  ;;  %v4562_v22 = vshrl.u32 %v4492_v46, 16 }
 0x1fe   : > { %8100 = vmatmul.mubr.msk.bf16.gmra.mxu1 %vm415_vm1, %v10031_v45  ;;  %v4555_v7 = vrot.slane %v4554_v25, 4  ;;  %v3427_v1 = vor.u32 %v3426_v23, %v3423_v57  ;;  %8180 = vmatpush3.bf16.msra.mxu0 %v5018_v13  ;;  %v10081_v45 = vld [vmem:[#allocation2 + $0x2c] sm:$0x1]  ;;  %v4550_v27 = vsel %vm8771_vm13, %v4545_v35, %v4549_v50  ;;  %v3436_v31 = vrot.slane %v3434_v62, 4  ;;  %v7949_v49 = vpop.f32.mrf.mxu1  ;;  %v4495_v23 = vld [vmem:[#allocation2 + $0x30] sm:$0xf] }
 0x1ff   : > { %8103 = vmatprep.mubr.msk.bf16.mxu1 %vm415_vm1, %v7497_v21  ;;  %v3442_v34 = vrot.slane %v3440_v0, 5  ;;  %v4565_v55 = vshll.u32 %v4492_v46, 16  ;;  %v4564_v16 = vrot.slane %v4562_v22, 4  ;;  %v4571_v21 = vshll.u32 %v10078_v32, 16  ;;  %v10100_v13 = vld [vmem:[#allocation2 + $0x34] sm:$0xf] }
 0x200   : > { %v4560_v11 = vsel %vm8771_vm13, %v4555_v7, %v4559_v60  ;;  %v3428_v18 = vrot.slane %v3427_v1, 4  ;;  %v3437_v48 = vor.u32 %v3436_v31, %v3432_v36  ;;  %v4575_v41 = vshrl.u32 %v10078_v32, 16  ;;  %v10092_v50 = vpop.f32.mrf.mxu1 }
 0x201   : > { %v7597_v26 = vcombine.low %v4550_v27, %v4560_v11  ;;  %v4567_v56 = vrot.slane %v4565_v55, 5  ;;  %v4573_v15 = vrot.slane %v4571_v21, 5  ;;  %v4581_v58 = vshll.u32 %v10081_v45, 16  ;;  %v10103_v27 = vpop.f32.mrf.mxu0  ;;  %v10107_v55 = vld [vmem:[#allocation2 + $0x38] sm:$0x1] }
 0x202   : > { %v3433_v38 = vsel %vm8771_vm13, %v3428_v18, %v3432_v36  ;;  %v3445_v39 = vshrl.u32 %v3081_v24, 16  ;;  %v3438_v10 = vrot.slane %v3437_v48, 4  ;;  %v4577_v30 = vrot.slane %v4575_v41, 4  ;;  %v7950_v6 = vpop.f32.mrf.mxu1  ;;  %v4498_v21 = vld [vmem:[#allocation2 + $0x3c] sm:$0xf] }
 0x203   : > { %8181 = vmatprep.mubr.msk.bf16.mxu0 %vm415_vm1, %v7597_v26  ;;  %v4568_v5 = vor.u32 %v4567_v56, %v4564_v16  ;;  %v3448_v29 = vshll.u32 %v3081_v24, 16  ;;  %v4583_v60 = vrot.slane %v4581_v58, 5  ;;  %v3454_v46 = vshll.u32 %v10015_v47, 16  ;;  %v10114_v56 = vld [vmem:[#allocation2 + $0x40] sm:$0xf] }
 0x204   : > { %v3447_v57 = vrot.slane %v3445_v39, 4  ;;  %v3458_v25 = vshrl.u32 %v10015_v47, 16  ;;  %v3443_v35 = vsel %vm8771_vm13, %v3438_v10, %v3442_v34  ;;  %v4578_v0 = vor.u32 %v4577_v30, %v4573_v15 }
 0x205   : > { %v4569_v62 = vrot.slane %v4568_v5, 4  ;;  %v3450_v40 = vrot.slane %v3448_v29, 5  ;;  %v7499_v7 = vcombine.low %v3433_v38, %v3443_v35  ;;  %v3456_v1 = vrot.slane %v3454_v46, 5 }
 0x206   : > { %8104 = vmatmul.mubr.msk.bf16.gmra.mxu1 %vm415_vm1, %v7498_v37  ;;  %v3460_v36 = vrot.slane %v3458_v25, 4  ;;  %v3464_v22 = vshll.u32 %v10024_v14, 16  ;;  %v4579_v31 = vrot.slane %v4578_v0, 4  ;;  %v4586_v34 = vshrl.u32 %v4495_v23, 16  ;;  %v7991_v39 = vpop.f32.mrf.mxu0  ;;  %v10125_v0 = vld [vmem:[#allocation2 + $0x44] sm:$0x1] }
 0x207   : > { %v4574_v47 = vsel %vm8771_vm13, %v4569_v62, %v4573_v15  ;;  %v3451_v37 = vor.u32 %v3450_v40, %v3447_v57  ;;  %8107 = vmatprep.mubr.msk.bf16.mxu1 %vm415_vm1, %v7499_v7  ;;  %v4589_v18 = vshll.u32 %v4495_v23, 16  ;;  %v4595_v16 = vshll.u32 %v10100_v13, 16  ;;  %v4501_v23 = vld [vmem:[#allocation2 + $0x48] sm:$0xf]  ;;  %v10127_v7 = vld [vmem:[#allocation2 + $0x4c] sm:$0xf] }
 0x208   : > { %v3461_v24 = vor.u32 %v3460_v36, %v3456_v1  ;;  %v3466_v11 = vrot.slane %v3464_v22, 5  ;;  %v4584_v14 = vsel %vm8771_vm13, %v4579_v31, %v4583_v60  ;;  %v4588_v26 = vrot.slane %v4586_v34, 4  ;;  %v10123_v6 = vpop.f32.mrf.mxu0  ;;  %v8370_v36 = vld [vmem:[#allocation2 + $0x18] sm:$0xff]  }
 0x209   : > { %v3452_v49 = vrot.slane %v3451_v37, 4  ;;  %v4599_v48 = vshrl.u32 %v10100_v13, 16  ;;  %v7598_v41 = vcombine.low %v4574_v47, %v4584_v14  ;;  %v4591_v15 = vrot.slane %v4589_v18, 5 }
 0x20a   : > { %v3462_v38 = vrot.slane %v3461_v24, 4  ;;  %v4597_v58 = vrot.slane %v4595_v16, 5  ;;  %v4605_v30 = vshll.u32 %v10107_v55, 16  ;;  %v4610_v29 = vshrl.u32 %v4498_v21, 16  ;;  %v7992_v37 = vpop.f32.mrf.mxu0 }
 0x20b   : > { %v3457_v10 = vsel %vm8771_vm13, %v3452_v49, %v3456_v1  ;;  %v4601_v5 = vrot.slane %v4599_v48, 4  ;;  %8182 = vmatmul.mubr.msk.bf16.vlgmr.msra.gmra.mxu0 %vm415_vm1, %v7598_v41  ;;  %v4592_v57 = vor.u32 %v4591_v15, %v4588_v26  ;;  %v4613_v46 = vshll.u32 %v4498_v21, 16  ;;  %v10133_v49 = vld [vmem:[#allocation2 + $0x50] sm:$0x1] }
 0x20c   : > { %v3467_v60 = vsel %vm8771_vm13, %v3462_v38, %v3466_v11  ;;  %v4619_v25 = vshll.u32 %v10114_v56, 16  ;;  %v4612_v40 = vrot.slane %v4610_v29, 4  ;;  %v4623_v31 = vshrl.u32 %v10114_v56, 16 }
 0x20d   : > { %v7500_v35 = vcombine.low %v3457_v10, %v3467_v60  ;;  %v4602_v62 = vor.u32 %v4601_v5, %v4597_v58  ;;  %v4593_v1 = vrot.slane %v4592_v57, 4  ;;  %v4615_v22 = vrot.slane %v4613_v46, 5 }
 0x20e   : > { %v4621_v47 = vrot.slane %v4619_v25, 5  ;;  %v4607_v24 = vrot.slane %v4605_v30, 5  ;;  %v4634_v11 = vshrl.u32 %v4501_v23, 16  ;;  %v4637_v18 = vshll.u32 %v4501_v23, 16  ;;  %v4504_v30 = vld [vmem:[#allocation2 + $0x54] sm:$0xf]  ;;  %v10144_v23 = vpop.f32.mrf.mxu1 }
 0x20f   : > { %8108 = vmatmul.mubr.msk.bf16.gmra.mxu1 %vm415_vm1, %v7500_v35  ;;  %v4603_v34 = vrot.slane %v4602_v62, 4  ;;  %v4616_v16 = vor.u32 %v4615_v22, %v4612_v40  ;;  %v4625_v21 = vrot.slane %v4623_v31, 4  ;;  %v4629_v14 = vshll.u32 %v10125_v0, 16  ;;  %v10142_v25 = vld [vmem:[#allocation2 + $0x58] sm:$0xf]  ;;  %11336 = vst [vmem:[#allocation16_spill] sm:$0xff] %v10144_v23 }
 0x210   : > { %8147 = vmatprep.mubr.msk.bf16.mxu1 %vm415_vm1, %v8370_v36  ;;  %v4643_v26 = vshll.u32 %v10127_v7, 16  ;;  %v4598_v48 = vsel %vm8771_vm13, %v4593_v1, %v4597_v58  ;;  %v4636_v38 = vrot.slane %v4634_v11, 4  ;;  %v4639_v15 = vrot.slane %v4637_v18, 5  ;;  %v8371_v40 = vld [vmem:[#allocation2 + $0x24] sm:$0xff]   ;;  %v4507_v36 = vld [vmem:[#allocation2 + $0x60] sm:$0xf] }
 0x211   : > { %v4608_v41 = vsel %vm8771_vm13, %v4603_v34, %v4607_v24  ;;  %v4617_v10 = vrot.slane %v4616_v16, 4  ;;  %v4626_v5 = vor.u32 %v4625_v21, %v4621_v47  ;;  %v4647_v57 = vshrl.u32 %v10127_v7, 16  ;;  %v10151_v34 = vld [vmem:[#allocation2 + $0x5c] sm:$0x1]  ;;  %v8372_v18 = vld [vmem:[#allocation2 + $0x30] sm:$0xff]  }
 0x212   : > { %v7599_v39 = vcombine.low %v4598_v48, %v4608_v41  ;;  %v4640_v29 = vor.u32 %v4639_v15, %v4636_v38  ;;  %v4645_v60 = vrot.slane %v4643_v26, 5  ;;  %v4653_v46 = vshll.u32 %v10133_v49, 16 }
 0x213   : > { %v4622_v58 = vsel %vm8771_vm13, %v4617_v10, %v4621_v47  ;;  %v4627_v35 = vrot.slane %v4626_v5, 4  ;;  %v4631_v62 = vrot.slane %v4629_v14, 5  ;;  %v5454_v1 = vsel %vm464_vm0, %v9888_v61, 0  ;;  %v10157_v14 = vld [vmem:[#allocation2 + $0x64] sm:$0xf] }
 0x214   : > { %8185 = vmatprep.mubr.msk.bf16.mxu0 %vm415_vm1, %v7599_v39  ;;  %v4641_v22 = vrot.slane %v4640_v29, 4  ;;  %v4649_v31 = vrot.slane %v4647_v57, 4  ;;  %v4655_v37 = vrot.slane %v4653_v46, 5  ;;  %v4658_v24 = vshrl.u32 %v4504_v30, 16 }
 0x215   : > { %v4632_v11 = vsel %vm8771_vm13, %v4627_v35, %v4631_v62  ;;  %v4661_v16 = vshll.u32 %v4504_v30, 16  ;;  %v4667_v47 = vshll.u32 %v10142_v25, 16  ;;  %v4671_v21 = vshrl.u32 %v10142_v25, 16  ;;  %v7953_v38 = vpop.f32.mrf.mxu1 }
 0x216   : > { %v7600_v26 = vcombine.low %v4622_v58, %v4632_v11  ;;  %v4646_v61 = vsel %vm8771_vm13, %v4641_v22, %v4645_v60  ;;  %v4650_v48 = vor.u32 %v4649_v31, %v4645_v60  ;;  %v4660_v41 = vrot.slane %v4658_v24, 4 }
 0x217   : > { %8148 = vmatmul.mubr.msk.bf16.vlgmr.msra.gmra.mxu1 %vm415_vm1, %v8371_v40  ;;  %v4663_v15 = vrot.slane %v4661_v16, 5  ;;  %v4669_v39 = vrot.slane %v4667_v47, 5  ;;  %v4673_v10 = vrot.slane %v4671_v21, 4  ;;  %v4677_v5 = vshll.u32 %v10151_v34, 16  ;;  %v10166_v58 = vpop.f32.mrf.mxu1  ;;  %v10168_v40 = vld [vmem:[#allocation2 + $0x68] sm:$0x1] }
 0x218   : > { %8214 = vmatpush3.bf16.msra.mxu1 %v5454_v1  ;;  %8151 = vmatprep.mubr.msk.bf16.mxu1 %vm415_vm1, %v8372_v18  ;;  %v4651_v30 = vrot.slane %v4650_v48, 4  ;;  %v4682_v29 = vshrl.u32 %v4507_v36, 16  ;;  %v4685_v57 = vshll.u32 %v4507_v36, 16  ;;  %v4691_v46 = vshll.u32 %v10157_v14, 16  ;;  %v4510_v18 = vld [vmem:[#allocation2 + $0x6c] sm:$0xf]  ;;  %v10173_v36 = vpop.f32.mrf.mxu0 }
 0x219   : > { %8186 = vmatmul.mubr.msk.bf16.gmra.mxu0 %vm415_vm1, %v7600_v26  ;;  %v4664_v60 = vor.u32 %v4663_v15, %v4660_v41  ;;  %v4674_v35 = vor.u32 %v4673_v10, %v4669_v39  ;;  %v4679_v62 = vrot.slane %v4677_v5, 5  ;;  %v4695_v1 = vshrl.u32 %v10157_v14, 16  ;;  %v7954_v16 = vpop.f32.mrf.mxu1  ;;  %v8373_v41 = vld [vmem:[#allocation2 + $0x3c] sm:$0xff]  }
 0x21a   : > { %v4656_v22 = vsel %vm8771_vm13, %v4651_v30, %v4655_v37  ;;  %v4684_v31 = vrot.slane %v4682_v29, 4  ;;  %v4687_v24 = vrot.slane %v4685_v57, 5  ;;  %v4693_v11 = vrot.slane %v4691_v46, 5  ;;  %v10180_v37 = vld [vmem:[#allocation2 + $0x70] sm:$0xf]  ;;  %v8374_v29 = vld [vmem:[#allocation2 + $0x48] sm:$0xff]  }
 0x21b   : > { %v7601_v47 = vcombine.low %v4646_v61, %v4656_v22  ;;  %v4665_v21 = vrot.slane %v4664_v60, 4  ;;  %v4675_v26 = vrot.slane %v4674_v35, 4  ;;  %v4697_v48 = vrot.slane %v4695_v1, 4  ;;  %v10187_v57 = vld [vmem:[#allocation2 + $0x74] sm:$0x1] }
 0x21c   : > { %v4688_v38 = vor.u32 %v4687_v24, %v4684_v31  ;;  %v4701_v15 = vshll.u32 %v10168_v40, 16  ;;  %v10178_v10 = vadd.f32 %v9968_v12, %v10092_v50  ;;  %v4706_v46 = vshrl.u32 %v4510_v18, 16  ;;  %v4513_v60 = vld [vmem:[#allocation2 + $0x78] sm:$0xf]  ;;  %v7995_v22 = vpop.f32.mrf.mxu0 }
 0x21d   : > { %8189 = vmatprep.mubr.msk.bf16.mxu0 %vm415_vm1, %v7601_v47  ;;  %v4670_v5 = vsel %vm8771_vm13, %v4665_v21, %v4669_v39  ;;  %v4680_v61 = vsel %vm8771_vm13, %v4675_v26, %v4679_v62  ;;  %v4698_v30 = vor.u32 %v4697_v48, %v4693_v11  ;;  %v4709_v1 = vshll.u32 %v4510_v18, 16  ;;  %v10197_v26 = vld [vmem:[#allocation2 + $0x7c] sm:$0xf] }
 0x21e   : > { %v7602_v35 = vcombine.low %v4670_v5, %v4680_v61  ;;  %v4689_v12 = vrot.slane %v4688_v38, 4  ;;  %v4703_v50 = vrot.slane %v4701_v15, 5  ;;  %v4708_v39 = vrot.slane %v4706_v46, 4  ;;  %v10199_v48 = vpop.f32.mrf.mxu0  ;;  %v10203_v5 = vld [vmem:[#allocation2 + $0x80] sm:$0x1] }
 0x21f   : > { %8152 = vmatmul.mubr.msk.bf16.gmra.mxu1 %vm415_vm1, %v8373_v41  ;;  %v4699_v31 = vrot.slane %v4698_v30, 4  ;;  %v4715_v24 = vshll.u32 %v10180_v37, 16  ;;  %v4719_v62 = vshrl.u32 %v10180_v37, 16  ;;  %v4711_v47 = vrot.slane %v4709_v1, 5  ;;  %v1933_v30 = vpop.f32.mrf.mxu1 }
 0x220   : > { %8155 = vmatprep.mubr.msk.bf16.mxu1 %vm415_vm1, %v8374_v29  ;;  %v4694_v16 = vsel %vm8771_vm13, %v4689_v12, %v4693_v11  ;;  %v4725_v21 = vshll.u32 %v10187_v57, 16  ;;  %v4730_v18 = vshrl.u32 %v4513_v60, 16  ;;  %v4733_v61 = vshll.u32 %v4513_v60, 16  ;;  %v7996_v12 = vpop.f32.mrf.mxu0 }
 0x221   : > { %8190 = vmatmul.mubr.msk.bf16.gmra.mxu0 %vm415_vm1, %v7602_v35  ;;  %v4704_v41 = vsel %vm8771_vm13, %v4699_v31, %v4703_v50  ;;  %v4717_v38 = vrot.slane %v4715_v24, 5  ;;  %v4721_v15 = vrot.slane %v4719_v62, 4  ;;  %v4712_v46 = vor.u32 %v4711_v47, %v4708_v39  ;;  %v8375_v31 = vld [vmem:[#allocation2 + $0x54] sm:$0xff]   ;;  %v10216_v62 = vld [vmem:[#allocation2 + $0x88] sm:$0xf] }
 0x222   : > { %v7603_v29 = vcombine.low %v4694_v16, %v4704_v41  ;;  %v4727_v11 = vrot.slane %v4725_v21, 5  ;;  %v4732_v35 = vrot.slane %v4730_v18, 4  ;;  %v4735_v22 = vrot.slane %v4733_v61, 5  ;;  %v10218_v16 = vpop.f32.mrf.mxu0 }
 0x223   : > { %v4722_v1 = vor.u32 %v4721_v15, %v4717_v38  ;;  %v4739_v28 = vshll.u32 %v10197_v26, 16  ;;  %v4743_v2 = vshrl.u32 %v10197_v26, 16  ;;  %v4713_v50 = vrot.slane %v4712_v46, 4  ;;  %11339 = vst [vmem:[#allocation19_spill] sm:$0xff] %v10218_v16  ;;  %v8376_v15 = vld [vmem:[#allocation2 + $0x60] sm:$0xff]  }
 0x224   : > { %8193 = vmatprep.mubr.msk.bf16.mxu0 %vm415_vm1, %v7603_v29  ;;  %v4749_v24 = vshll.u32 %v10203_v5, 16  ;;  %v10211_v60 = vadd.f32 %v10043_v8, %v10166_v58  ;;  %v10214_v39 = vadd.f32 %v10103_v27, %v1933_v30  ;;  %v4736_v21 = vor.u32 %v4735_v22, %v4732_v35  ;;  %v10223_v8 = vld [vmem:[#allocation2 + $0x8c] sm:$0x1]  ;;  %v4519_v35 = vld [vmem:[#allocation2 + $0x90] sm:$0xf] }
 0x225   : > { %v4723_v47 = vrot.slane %v4722_v1, 4  ;;  %v4741_v18 = vrot.slane %v4739_v28, 5  ;;  %v4745_v41 = vrot.slane %v4743_v2, 4  ;;  %v4718_v61 = vsel %vm8771_vm13, %v4713_v50, %v4717_v38 }
 0x226   : > { %11337 = vst [vmem:[#allocation17_spill] sm:$0xff] %v10211_v60  ;;  %11338 = vst [vmem:[#allocation18_spill] sm:$0xff] %v10214_v39  ;;  %v4751_v29 = vrot.slane %v4749_v24, 5  ;;  %v4754_v58 = vshrl.u32 %v4516_v53, 16  ;;  %v4757_v27 = vshll.u32 %v4516_v53, 16  ;;  %v4737_v46 = vrot.slane %v4736_v21, 4  ;;  %v7957_v28 = vpop.f32.mrf.mxu1 }
 0x227   : > { %8156 = vmatmul.mubr.msk.bf16.gmra.mxu1 %vm415_vm1, %v8375_v31  ;;  %v4728_v30 = vsel %vm8771_vm13, %v4723_v47, %v4727_v11  ;;  %v4746_v12 = vor.u32 %v4745_v41, %v4741_v18  ;;  %v4763_v2 = vshll.u32 %v10216_v62, 16  ;;  %v4767_v50 = vshrl.u32 %v10216_v62, 16  ;;  %v10230_v31 = vld [vmem:[#allocation2 + $0x94] sm:$0xf]  ;;  %v7999_v24 = vpop.f32.mrf.mxu0 }
 0x228   : > { %8159 = vmatprep.mubr.msk.bf16.mxu1 %vm415_vm1, %v8376_v15  ;;  %v7604_v1 = vcombine.low %v4718_v61, %v4728_v30  ;;  %v4756_v38 = vrot.slane %v4754_v58, 4  ;;  %v4759_v22 = vrot.slane %v4757_v27, 5  ;;  %v4742_v53 = vsel %vm8771_vm13, %v4737_v46, %v4741_v18  ;;  %v1944_v41 = vpop.f32.mrf.mxu1  ;;  %v10236_v61 = vld [vmem:[#allocation2 + $0x98] sm:$0x1] }
 0x229   : > { %v4747_v11 = vrot.slane %v4746_v12, 4  ;;  %v4765_v47 = vrot.slane %v4763_v2, 5  ;;  %v4773_v21 = vshll.u32 %v10223_v8, 16  ;;  %v4769_v28 = vrot.slane %v4767_v50, 4  ;;  %v10238_v30 = vpop.f32.mrf.mxu0  ;;  %v8378_v50 = vld [vmem:[#allocation2 + $0x78] sm:$0xff]  }
 0x22a   : > { %8194 = vmatmul.mubr.msk.bf16.gmra.mxu0 %vm415_vm1, %v7604_v1  ;;  %v4760_v15 = vor.u32 %v4759_v22, %v4756_v38  ;;  %v4778_v58 = vshrl.u32 %v4519_v35, 16  ;;  %v4781_v27 = vshll.u32 %v4519_v35, 16  ;;  %v4787_v18 = vshll.u32 %v10230_v31, 16  ;;  %v7958_v12 = vpop.f32.mrf.mxu1  ;;  %v8377_v38 = vld [vmem:[#allocation2 + $0x6c] sm:$0xff]  }
 0x22b   : > { %v4752_v24 = vsel %vm8771_vm13, %v4747_v11, %v4751_v29  ;;  %v4775_v20 = vrot.slane %v4773_v21, 5  ;;  %v4791_v46 = vshrl.u32 %v10230_v31, 16  ;;  %v4770_v1 = vor.u32 %v4769_v28, %v4765_v47  ;;  %v8000_v44 = vpop.f32.mrf.mxu0  ;;  %v10245_v11 = vld [vmem:[#allocation2 + $0xa0] sm:$0xf] }
 0x22c   : > { %v7605_v2 = vcombine.low %v4742_v53, %v4752_v24  ;;  %v4761_v63 = vrot.slane %v4760_v15, 4  ;;  %v4780_v22 = vrot.slane %v4778_v58, 4  ;;  %v4783_v35 = vrot.slane %v4781_v27, 5  ;;  %v1947_v29 = vpop.f32.mrf.mxu1 }
 0x22d   : > { %v4789_v17 = vrot.slane %v4787_v18, 5  ;;  %v4793_v9 = vrot.slane %v4791_v46, 4  ;;  %v4797_v16 = vshll.u32 %v10236_v61, 16  ;;  %v4771_v21 = vrot.slane %v4770_v1, 4  ;;  %v10257_v28 = vpop.f32.mrf.mxu0  ;;  %v10260_v18 = vld [vmem:[#allocation2 + $0xa4] sm:$0x1] }
 0x22e   : > { %8197 = vmatprep.mubr.msk.bf16.mxu0 %vm415_vm1, %v7605_v2  ;;  %v4766_v53 = vsel %vm8771_vm13, %v4761_v63, %v4765_v47  ;;  %v10252_v15 = vadd.f32 %v10123_v6, %v1944_v41  ;;  %v10255_v44 = vadd.f32 %v10173_v36, %v1947_v29  ;;  %11342 = vst [vmem:[#allocation22_spill] sm:$0xff] %v10257_v28  ;;  %v4802_v46 = vshrl.u32 %v4522_v33, 16  ;;  %v4525_v36 = vld [vmem:[#allocation2 + $0xa8] sm:$0xf]  ;;  %v10267_v29 = vld [vmem:[#allocation2 + $0xac] sm:$0xf] }
 0x22f   : > { %8160 = vmatmul.mubr.msk.bf16.gmra.mxu1 %vm415_vm1, %v8377_v38  ;;  %v4784_v58 = vor.u32 %v4783_v35, %v4780_v22  ;;  %v4794_v27 = vor.u32 %v4793_v9, %v4789_v17  ;;  %v4799_v24 = vrot.slane %v4797_v16, 5  ;;  %v4776_v63 = vsel %vm8771_vm13, %v4771_v21, %v4775_v20  ;;  %v10274_v21 = vld [vmem:[#allocation2 + $0xb0] sm:$0x1]  ;;  %v4528_v28 = vld [vmem:[#allocation2 + $0xb4] sm:$0xf] }
 0x230   : > { %11340 = vst [vmem:[#allocation20_spill] sm:$0xff] %v10252_v15  ;;  %11341 = vst [vmem:[#allocation21_spill] sm:$0xff] %v10255_v44  ;;  %8163 = vmatprep.mubr.msk.bf16.mxu1 %vm415_vm1, %v8378_v50  ;;  %v4805_v47 = vshll.u32 %v4522_v33, 16  ;;  %v4811_v6 = vshll.u32 %v10245_v11, 16  ;;  %v4815_v41 = vshrl.u32 %v10245_v11, 16  ;;  %v7606_v12 = vcombine.low %v4766_v53, %v4776_v63  ;;  %v8003_v9 = vpop.f32.mrf.mxu0 }
 0x231   : > { %v4785_v2 = vrot.slane %v4784_v58, 4  ;;  %v4795_v1 = vrot.slane %v4794_v27, 4  ;;  %v4804_v38 = vrot.slane %v4802_v46, 4  ;;  %v4821_v35 = vshll.u32 %v10260_v18, 16  ;;  %v8379_v9 = vld [vmem:[#allocation2 + $0x84] sm:$0xff]  }
 0x232   : > { %v4807_v16 = vrot.slane %v4805_v47, 5  ;;  %v4813_v22 = vrot.slane %v4811_v6, 5  ;;  %v4817_v50 = vrot.slane %v4815_v41, 4  ;;  %8198 = vmatmul.mubr.msk.bf16.gmra.mxu0 %vm415_vm1, %v7606_v12  ;;  %v7961_v53 = vpop.f32.mrf.mxu1  ;;  %v4826_v58 = vshrl.u32 %v4525_v36, 16  ;;  %v10276_v46 = vpop.f32.mrf.mxu0 }
 0x233   : > { %v4790_v20 = vsel %vm8771_vm13, %v4785_v2, %v4789_v17  ;;  %v4800_v33 = vsel %vm8771_vm13, %v4795_v1, %v4799_v24  ;;  %v4829_v27 = vshll.u32 %v4525_v36, 16  ;;  %v4823_v41 = vrot.slane %v4821_v35, 5  ;;  %v8380_v24 = vld [vmem:[#allocation2 + $0x90] sm:$0xff]  }
 0x234   : > { %v7607_v63 = vcombine.low %v4790_v20, %v4800_v33  ;;  %v4808_v47 = vor.u32 %v4807_v16, %v4804_v38  ;;  %v4818_v6 = vor.u32 %v4817_v50, %v4813_v22  ;;  %v4828_v12 = vrot.slane %v4826_v58, 4  ;;  %v1958_v1 = vpop.f32.mrf.mxu1  ;;  %v8004_v53 = vpop.f32.mrf.mxu0  ;;  %v10287_v58 = vld [vmem:[#allocation2 + $0xb8] sm:$0xf] }
 0x235   : > { %v4831_v44 = vrot.slane %v4829_v27, 5  ;;  %v4835_v17 = vshll.u32 %v10267_v29, 16  ;;  %v4839_v2 = vshrl.u32 %v10267_v29, 16  ;;  %v4845_v38 = vshll.u32 %v10274_v21, 16  ;;  %11344 = vst [vmem:[#allocation24_spill] sm:$0xff] %v10287_v58 }
 0x236   : > { %8201 = vmatprep.mubr.msk.bf16.mxu0 %vm415_vm1, %v7607_v63  ;;  %v4809_v36 = vrot.slane %v4808_v47, 4  ;;  %v4819_v15 = vrot.slane %v4818_v6, 4  ;;  %v10284_v16 = vadd.f32 %v10199_v48, %v1958_v1  ;;  %v7962_v33 = vpop.f32.mrf.mxu1  ;;  %v4850_v27 = vshrl.u32 %v4528_v28, 16  ;;  %v10289_v53 = vpop.f32.mrf.mxu0  ;;  %v10295_v6 = vld [vmem:[#allocation2 + $0xbc] sm:$0x1] }
 0x237   : > { %8164 = vmatmul.mubr.msk.bf16.gmra.mxu1 %vm415_vm1, %v8379_v9  ;;  %v4832_v50 = vor.u32 %v4831_v44, %v4828_v12  ;;  %v4837_v35 = vrot.slane %v4835_v17, 5  ;;  %v4841_v20 = vrot.slane %v4839_v2, 4  ;;  %11345 = vst [vmem:[#allocation25_spill] sm:$0xff] %v10295_v6  ;;  %v4853_v48 = vshll.u32 %v4528_v28, 16  ;;  %v4531_v44 = vld [vmem:[#allocation2 + $0xc0] sm:$0xf] }
 0x238   : > { %11343 = vst [vmem:[#allocation23_spill] sm:$0xff] %v10284_v16  ;;  %8167 = vmatprep.mubr.msk.bf16.mxu1 %vm415_vm1, %v8380_v24  ;;  %v4814_v63 = vsel %vm8771_vm13, %v4809_v36, %v4813_v22  ;;  %v4824_v47 = vsel %vm8771_vm13, %v4819_v15, %v4823_v41  ;;  %v10297_v2 = vpop.f32.mrf.mxu1  ;;  %v4852_v24 = vrot.slane %v4850_v27, 4  ;;  %v8007_v1 = vpop.f32.mrf.mxu0  ;;  %v4859_v16 = vshll.u32 %v10287_v58, 16  ;;  %v10301_v22 = vld [vmem:[#allocation2 + $0xc4] sm:$0xf] }
 0x239   : > { %v7608_v9 = vcombine.low %v4814_v63, %v4824_v47  ;;  %v4833_v12 = vrot.slane %v4832_v50, 4  ;;  %v4842_v17 = vor.u32 %v4841_v20, %v4837_v35  ;;  %11346 = vst [vmem:[#allocation26_spill] sm:$0xff] %v10297_v2  ;;  %v4855_v33 = vrot.slane %v4853_v48, 5  ;;  %v8381_v48 = vld [vmem:[#allocation2 + $0x9c] sm:$0xff]   ;;  %v10307_v1 = vld [vmem:[#allocation2 + $0xc8] sm:$0x1] }
 0x23a   : > { %v4863_v39 = vshrl.u32 %v10287_v58, 16  ;;  %v4847_v41 = vrot.slane %v4845_v38, 5  ;;  %v4869_v28 = vshll.u32 %v10295_v6, 16  ;;  %v4874_v36 = vshrl.u32 %v4531_v44, 16  ;;  %v10305_v50 = vpop.f32.mrf.mxu0  ;;  %v8382_v6 = vld [vmem:[#allocation2 + $0xa8] sm:$0xff]  }
 0x23b   : > { %8202 = vmatmul.mubr.msk.bf16.gmra.mxu0 %vm415_vm1, %v7608_v9  ;;  %v4843_v15 = vrot.slane %v4842_v17, 4  ;;  %v4856_v20 = vor.u32 %v4855_v33, %v4852_v24  ;;  %v4861_v63 = vrot.slane %v4859_v16, 5  ;;  %v7965_v47 = vpop.f32.mrf.mxu1  ;;  %v4877_v2 = vshll.u32 %v4531_v44, 16 }
 0x23c   : > { %v4865_v27 = vrot.slane %v4863_v39, 4  ;;  %v4838_v60 = vsel %vm8771_vm13, %v4833_v12, %v4837_v35  ;;  %v4876_v38 = vrot.slane %v4874_v36, 4  ;;  %v4883_v17 = vshll.u32 %v10301_v22, 16  ;;  %v8008_v19 = vpop.f32.mrf.mxu0  ;;  %v5181_v47 = vld [vmem:[#allocation2 + $0x18] sm:$0xe] }
 0x23d   : > { %v4848_v9 = vsel %vm8771_vm13, %v4843_v15, %v4847_v41  ;;  %v4857_v24 = vrot.slane %v4856_v20, 4  ;;  %v4879_v39 = vrot.slane %v4877_v2, 5  ;;  %v1972_v33 = vpop.f32.mrf.mxu1  ;;  %v4887_v58 = vshrl.u32 %v10301_v22, 16  ;;  %v4534_v19 = vld [vmem:[#allocation2 + $0xcc] sm:$0xf] }
 0x23e   : > { %v7609_v23 = vcombine.low %v4838_v60, %v4848_v9  ;;  %v4866_v16 = vor.u32 %v4865_v27, %v4861_v63  ;;  %v4885_v44 = vrot.slane %v4883_v17, 5  ;;  %v4893_v35 = vshll.u32 %v10307_v1, 16  ;;  %v10321_v15 = vpop.f32.mrf.mxu0  ;;  %v10335_v17 = vld [vmem:[#allocation2 + $0xd0] sm:$0xf] }
 0x23f   : > { %8168 = vmatmul.mubr.msk.bf16.gmra.mxu1 %vm415_vm1, %v8381_v48  ;;  %v10319_v12 = vadd.f32 %v10238_v30, %v1972_v33  ;;  %v10325_v60 = vadd.f32 %v9799_v59, %v10033_v42  ;;  %v4871_v41 = vrot.slane %v4869_v28, 5  ;;  %v4880_v36 = vor.u32 %v4879_v39, %v4876_v38  ;;  %v7966_v20 = vpop.f32.mrf.mxu1  ;;  %v10341_v28 = vld [vmem:[#allocation2 + $0xd4] sm:$0x1]  ;;  %v8384_v33 = vld [vmem:[#allocation2 + $0xc0] sm:$0xff]  }
 0x240   : > { %8171 = vmatprep.mubr.msk.bf16.mxu1 %vm415_vm1, %v8382_v6  ;;  %8205 = vmatprep.mubr.msk.bf16.mxu0 %vm415_vm1, %v7609_v23  ;;  %v4867_v2 = vrot.slane %v4866_v16, 4  ;;  %v10330_v27 = vadd.f32 %v9936_v54, %v10068_v43  ;;  %v4862_v30 = vsel %vm8771_vm13, %v4857_v24, %v4861_v63  ;;  %v4889_v6 = vrot.slane %v4887_v58, 4  ;;  %v8047_v48 = vpop.f32.mrf.mxu0  ;;  %11348 = vst [vmem:[#allocation28_spill] sm:$0xff] %v10341_v28 }
 0x241   : > { %v5247_v9 = vrot.slane %v10052_v51, 5  ;;  %v10339_v42 = vpop.f32.mrf.mxu1  ;;  %v7629_v23 = vrot.slane %v5181_v47, 9  ;;  %v4898_v38 = vshrl.u32 %v4534_v19, 16  ;;  %v4901_v54 = vshll.u32 %v4534_v19, 16  ;;  %v8383_v51 = vld [vmem:[#allocation2 + $0xb4] sm:$0xff]  }
 0x242   : > { %v4872_v59 = vsel %vm8771_vm13, %v4867_v2, %v4871_v41  ;;  %11347 = vst [vmem:[#allocation27_spill] sm:$0xff] %v10339_v42  ;;  %v4881_v16 = vrot.slane %v4880_v36, 4  ;;  %v4890_v39 = vor.u32 %v4889_v6, %v4885_v44  ;;  %v4895_v63 = vrot.slane %v4893_v35, 5  ;;  %v10343_v58 = vpop.f32.mrf.mxu0 }
 0x243   : > { %v7610_v43 = vcombine.low %v4862_v30, %v4872_v59  ;;  %v5249_v20 = vrot.slane %v5247_v9, 4  ;;  %v5250_v48 = vrot.slane %v10057_v4, 5  ;;  %v4900_v2 = vrot.slane %v4898_v38, 4  ;;  %v5182_v30 = vld [vmem:[#allocation2 + $0x24] sm:$0xe] }
 0x244   : > { %v7969_v24 = vpop.f32.mrf.mxu1  ;;  %v4903_v41 = vrot.slane %v4901_v54, 5  ;;  %v4891_v47 = vrot.slane %v4890_v39, 4  ;;  %v4907_v42 = vshll.u32 %v10335_v17, 16  ;;  %v4911_v19 = vshrl.u32 %v10335_v17, 16  ;;  %v8048_v35 = vpop.f32.mrf.mxu0 }
 0x245   : > { %8206 = vmatmul.mubr.msk.bf16.gmra.mxu0 %vm415_vm1, %v7610_v43  ;;  %v4917_v36 = vshll.u32 %v10341_v28, 16  ;;  %v5248_v59 = vsel %vm9337_vm11, %v7629_v23, %v5247_v9  ;;  %v5251_v4 = vsel %vm9337_vm11, %v5249_v20, %v5250_v48  ;;  %v5254_v54 = vrot.slane %v10078_v32, 5  ;;  %v5183_v9 = vld [vmem:[#allocation2 + $0x30] sm:$0xe] }
 0x246   : > { %v1986_v6 = vpop.f32.mrf.mxu1  ;;  %v4904_v38 = vor.u32 %v4903_v41, %v4900_v2  ;;  %v4886_v43 = vsel %vm8771_vm13, %v4881_v16, %v4885_v44  ;;  %v4896_v39 = vsel %vm8771_vm13, %v4891_v47, %v4895_v63  ;;  %v10364_v35 = vpop.f32.mrf.mxu0  ;;  %v4913_v2 = vrot.slane %v4911_v19, 4  ;;  %v5184_v47 = vld [vmem:[#allocation2 + $0x3c] sm:$0xe] }
 0x247   : > { %8172 = vmatmul.mubr.msk.bf16.gmra.mxu1 %vm415_vm1, %v8383_v51  ;;  %v10362_v24 = vadd.f32 %v10276_v46, %v1986_v6  ;;  %v4909_v51 = vrot.slane %v4907_v42, 5  ;;  %v7611_v23 = vcombine.low %v4886_v43, %v4896_v39  ;;  %v7630_v32 = vrot.slane %v5182_v30, 9 }
 0x248   : > { %8175 = vmatprep.mubr.msk.bf16.mxu1 %vm415_vm1, %v8384_v33  ;;  %v7970_v20 = vpop.f32.mrf.mxu1  ;;  %v4905_v48 = vrot.slane %v4904_v38, 4  ;;  %v7645_v41 = vcombine.low %v5248_v59, %v5251_v4  ;;  %v4919_v28 = vrot.slane %v4917_v36, 5  ;;  %v8051_v44 = vpop.f32.mrf.mxu0  ;;  %v5256_v16 = vrot.slane %v5254_v54, 4  ;;  %v8385_v33 = vld [vmem:[#allocation2 + $0xcc] sm:$0xff]  }
 0x249   : > { %v5257_v63 = vrot.slane %v10081_v45, 5  ;;  %8209 = vmatprep.mubr.msk.bf16.mxu0 %vm415_vm1, %v7611_v23  ;;  %v4914_v42 = vor.u32 %v4913_v2, %v4909_v51  ;;  %v10370_v6 = vsel %vm9337_vm11, %v7630_v32, %v5254_v54  ;;  %v7631_v43 = vrot.slane %v5183_v9, 9  ;;  %v5185_v23 = vld [vmem:[#allocation2 + $0x48] sm:$0xe] }
 0x24a   : > { %v1989_v46 = vpop.f32.mrf.mxu1  ;;  %v5261_v19 = vrot.slane %v10100_v13, 5  ;;  %v4910_v36 = vsel %vm8771_vm13, %v4905_v48, %v4909_v51  ;;  %v10382_v59 = vpop.f32.mrf.mxu0  ;;  %v5268_v4 = vrot.slane %v10114_v56, 5  ;;  %v5264_v9 = vrot.slane %v10107_v55, 5 }
 0x24b   : > { %v10374_v30 = vadd.f32 %v10289_v53, %v1989_v46  ;;  %v10380_v45 = vsel %vm9337_vm11, %v5256_v16, %v5257_v63  ;;  %v4915_v54 = vrot.slane %v4914_v42, 4  ;;  %v7632_v13 = vrot.slane %v5184_v47, 9  ;;  %v5186_v63 = vld [vmem:[#allocation2 + $0x54] sm:$0xe] }
 0x24c   : > { %v7973_v38 = vpop.f32.mrf.mxu1  ;;  %v5263_v39 = vrot.slane %v5261_v19, 4  ;;  %v7646_v53 = vcombine.low %v10370_v6, %v10380_v45  ;;  %v5262_v51 = vsel %vm9337_vm11, %v7631_v43, %v5261_v19  ;;  %v8052_v20 = vpop.f32.mrf.mxu0  ;;  %v5270_v48 = vrot.slane %v5268_v4, 4 }
 0x24d   : > { %v5271_v2 = vrot.slane %v10125_v0, 5  ;;  %v4920_v32 = vsel %vm8771_vm13, %v4915_v54, %v4919_v28  ;;  %v10398_v44 = vsel %vm9337_vm11, %v7632_v13, %v5268_v4  ;;  %v5275_v16 = vrot.slane %v10127_v7, 5  ;;  %v5188_v38 = vld [vmem:[#allocation2 + $0x6c] sm:$0xe] }
 0x24e   : > { %v2000_v56 = vpop.f32.mrf.mxu1  ;;  %v5265_v55 = vsel %vm9337_vm11, %v5263_v39, %v5264_v9  ;;  %v7612_v47 = vcombine.low %v4910_v36, %v4920_v32  ;;  %v10405_v46 = vpop.f32.mrf.mxu0  ;;  %v7633_v28 = vrot.slane %v5185_v23, 9  ;;  %v7634_v36 = vrot.slane %v5186_v63, 9 }
 0x24f   : > { %8176 = vmatmul.mubr.msk.bf16.gmra.mxu1 %vm415_vm1, %v8385_v33  ;;  %v10403_v0 = vadd.f32 %v10305_v50, %v2000_v56  ;;  %v10409_v52 = vsel %vm9337_vm11, %v5270_v48, %v5271_v2  ;;  %v5187_v33 = vld [vmem:[#allocation2 + $0x60] sm:$0xe]  ;;  %v7647_v6 = vcombine.low %v5262_v51, %v5265_v55  ;;  %v5277_v43 = vrot.slane %v5275_v16, 4  ;;  %v5189_v48 = vld [vmem:[#allocation2 + $0x78] sm:$0xe] }
 0x250   : > { %8215 = vmatprep.mubr.msk.bf16.mxu1 %vm415_vm1, %v7645_v41  ;;  %v7974_v42 = vpop.f32.mrf.mxu1  ;;  %v7648_v7 = vcombine.low %v10398_v44, %v10409_v52  ;;  %v5278_v41 = vrot.slane %v10133_v49, 5  ;;  %8210 = vmatmul.mubr.msk.bf16.gmra.mxu0 %vm415_vm1, %v7612_v47  ;;  %v8055_v50 = vpop.f32.mrf.mxu0  ;;  %v10417_v19 = vsel %vm9337_vm11, %v7633_v28, %v5275_v16  ;;  %v5282_v45 = vrot.slane %v10142_v25, 5  ;;  %v5190_v47 = vld [vmem:[#allocation2 + $0x84] sm:$0xe] }
 0x251   : > { %v5289_v4 = vrot.slane %v10157_v14, 5  ;;  %v5285_v49 = vrot.slane %v10151_v34, 5  ;;  %v7635_v9 = vrot.slane %v5187_v33, 9  ;;  %v5296_v13 = vrot.slane %v10180_v37, 5  ;;  %v5191_v50 = vld [vmem:[#allocation2 + $0x90] sm:$0xe] }
 0x252   : > { %v2003_v54 = vpop.f32.mrf.mxu1  ;;  %v10423_v39 = vsel %vm9337_vm11, %v5277_v43, %v5278_v41  ;;  %v10430_v51 = vpop.f32.mrf.mxu0  ;;  %v5284_v14 = vrot.slane %v5282_v45, 4  ;;  %v5292_v20 = vrot.slane %v10168_v40, 5  ;;  %v10437_v56 = vsel %vm9337_vm11, %v7634_v36, %v5282_v45 }
 0x253   : > { %v10428_v23 = vadd.f32 %v10321_v15, %v2003_v54  ;;  %v7649_v25 = vcombine.low %v10417_v19, %v10423_v39  ;;  %v5291_v34 = vrot.slane %v5289_v4, 4  ;;  %v7636_v32 = vrot.slane %v5188_v38, 9 }
 0x254   : > { %v8013_v2 = vpop.f32.mrf.mxu1  ;;  %v5298_v37 = vrot.slane %v5296_v13, 4  ;;  %v8056_v55 = vpop.f32.mrf.mxu0  ;;  %v10441_v15 = vsel %vm9337_vm11, %v5284_v14, %v5285_v49  ;;  %v10445_v16 = vsel %vm9337_vm11, %v7635_v9, %v5289_v4  ;;  %v5299_v40 = vrot.slane %v10187_v57, 5  ;;  %v5192_v49 = vld [vmem:[#allocation2 + $0x9c] sm:$0xe] }
 0x255   : > { %v5303_v63 = vrot.slane %v10197_v26, 5  ;;  %v7650_v33 = vcombine.low %v10437_v56, %v10441_v15  ;;  %v10454_v42 = vsel %vm9337_vm11, %v5291_v34, %v5292_v20  ;;  %v10458_v43 = vsel %vm9337_vm11, %v7636_v32, %v5296_v13 }
 0x256   : > { %v2585_v28 = vpop.f32.mrf.mxu1  ;;  %v7637_v41 = vrot.slane %v5189_v48, 9  ;;  %v10464_v26 = vpop.f32.mrf.mxu0  ;;  %v10470_v36 = vsel %vm9337_vm11, %v5298_v37, %v5299_v40  ;;  %v5306_v45 = vrot.slane %v10203_v5, 5  ;;  %v5313_v14 = vrot.slane %v10223_v8, 5 }
 0x257   : > { %8216 = vmatmul.mubr.msk.bf16.vlgmr.msra.gmra.mxu1 %vm415_vm1, %v7646_v53  ;;  %v10462_v57 = vadd.f32 %v2585_v28, %v10325_v60  ;;  %v7651_v53 = vcombine.low %v10445_v16, %v10454_v42  ;;  %v7652_v38 = vcombine.low %v10458_v43, %v10470_v36  ;;  %v5305_v54 = vrot.slane %v5303_v63, 4 }
 0x258   : > { %8219 = vmatprep.mubr.msk.bf16.mxu1 %vm415_vm1, %v7647_v6  ;;  %v8014_v4 = vpop.f32.mrf.mxu1  ;;  %v7638_v6 = vrot.slane %v5190_v47, 9  ;;  %v5310_v60 = vrot.slane %v10216_v62, 5  ;;  %v8059_v9 = vpop.f32.mrf.mxu0  ;;  %v10478_v13 = vsel %vm9337_vm11, %v7637_v41, %v5303_v63  ;;  %v7639_v20 = vrot.slane %v5191_v50, 9 }
 0x259   : > { %v5317_v48 = vrot.slane %v10230_v31, 5  ;;  %v10484_v2 = vsel %vm9337_vm11, %v5305_v54, %v5306_v45  ;;  %v5320_v32 = vrot.slane %v10236_v61, 5  ;;  %v5324_v62 = vrot.slane %v10245_v11, 5  ;;  %v5193_v31 = vld [vmem:[#allocation2 + $0xa8] sm:$0xe] }
 0x25a   : > { %v2588_v5 = vpop.f32.mrf.mxu1  ;;  %v5312_v34 = vrot.slane %v5310_v60, 4  ;;  %v10489_v55 = vpop.f32.mrf.mxu0  ;;  %v7653_v8 = vcombine.low %v10478_v13, %v10484_v2  ;;  %v7640_v63 = vrot.slane %v5192_v49, 9  ;;  %v10495_v28 = vsel %vm9337_vm11, %v7638_v6, %v5310_v60  ;;  %v11357_v2 = vld [vmem:[#allocation23_spill] sm:$0xff] }
 0x25b   : > { %v2697_v37 = vadd.f32 %v2588_v5, %v10330_v27  ;;  %v5319_v40 = vrot.slane %v5317_v48, 4  ;;  %v5326_v11 = vrot.slane %v5324_v62, 4  ;;  %v5327_v27 = vrot.slane %v10260_v18, 5  ;;  %v11349_v5 = vld [vmem:[#allocation24_spill] sm:$0xff] }
 0x25c   : > { %v8017_v47 = vpop.f32.mrf.mxu1  ;;  %v10499_v61 = vsel %vm9337_vm11, %v5312_v34, %v5313_v14  ;;  %v8060_v41 = vpop.f32.mrf.mxu0  ;;  %v10506_v45 = vsel %vm9337_vm11, %v7639_v20, %v5317_v48  ;;  %v5331_v54 = vrot.slane %v10267_v29, 5  ;;  %v10521_v60 = vsel %vm9337_vm11, %v7640_v63, %v5324_v62  ;;  %v5194_v20 = vld [vmem:[#allocation2 + $0xb4] sm:$0xe]  ;;  %v11351_v62 = vld [vmem:[#allocation15_spill] sm:$0xff] }
 0x25d   : > { %v7654_v50 = vcombine.low %v10495_v28, %v10499_v61  ;;  %v10510_v4 = vsel %vm9337_vm11, %v5319_v40, %v5320_v32  ;;  %v10525_v49 = vsel %vm9337_vm11, %v5326_v11, %v5327_v27  ;;  %v7641_v9 = vrot.slane %v5193_v31, 9  ;;  %v11350_v32 = vld [vmem:[#allocation16_spill] sm:$0xff]  ;;  %v11352_v47 = vld [vmem:[#allocation25_spill] sm:$0xff] }
 0x25e   : > { %v2599_v18 = vpop.f32.mrf.mxu1  ;;  %v7655_v6 = vcombine.low %v10506_v45, %v10510_v4  ;;  %v2954_v44 = vpop.f32.mrf.mxu0  ;;  %v7656_v52 = vcombine.low %v10521_v60, %v10525_v49  ;;  %v5334_v14 = vrot.slane %v10274_v21, 5  ;;  %v5338_v34 = vrot.slane %v11349_v5, 5 }
 0x25f   : > { %8220 = vmatmul.mubr.msk.bf16.gmra.mxu1 %vm415_vm1, %v7648_v7  ;;  %v2698_v29 = vadd.f32 %v2599_v18, %v10178_v10  ;;  %v5333_v7 = vrot.slane %v5331_v54, 4  ;;  %v2196_v40 = vadd.f32 %v11351_v62, %v11350_v32  ;;  %v10540_v19 = vsel %vm9337_vm11, %v7641_v9, %v5331_v54  ;;  %v11354_v62 = vld [vmem:[#allocation18_spill] sm:$0xff] }
 0x260   : > { %8223 = vmatprep.mubr.msk.bf16.mxu1 %vm415_vm1, %v7649_v25  ;;  %v8018_v48 = vpop.f32.mrf.mxu1  ;;  %v8063_v63 = vpop.f32.mrf.mxu0  ;;  %v7642_v25 = vrot.slane %v5194_v20, 9  ;;  %v5340_v31 = vrot.slane %v5338_v34, 4  ;;  %v5341_v11 = vrot.slane %v11352_v47, 5  ;;  %v10559_v9 = vadd.f32 %v10343_v58, %v10462_v57 }
 0x261   : > { %v10544_v10 = vsel %vm9337_vm11, %v5333_v7, %v5334_v14  ;;  %v10562_v7 = vadd.f32 %v10364_v35, %v2697_v37  ;;  %v10567_v5 = vadd.f32 %v10382_v59, %v2698_v29  ;;  %v11353_v35 = vld [vmem:[#allocation17_spill] sm:$0xff]  ;;  %v5345_v28 = vrot.slane %v10301_v22, 5 }
 0x262   : > { %v2602_v39 = vpop.f32.mrf.mxu1  ;;  %v7657_v21 = vcombine.low %v10540_v19, %v10544_v10  ;;  %v2965_v41 = vpop.f32.mrf.mxu0  ;;  %v10551_v48 = vsel %vm9337_vm11, %v7642_v25, %v5338_v34  ;;  %v10555_v54 = vsel %vm9337_vm11, %v5340_v31, %v5341_v11  ;;  %v11356_v25 = vld [vmem:[#allocation21_spill] sm:$0xff]  ;;  %v5352_v22 = vrot.slane %v10335_v17, 5 }
 0x263   : > { %v2699_v27 = vadd.f32 %v2602_v39, %v2196_v40  ;;  %v7658_v20 = vcombine.low %v10551_v48, %v10555_v54  ;;  %vm11368_vm13 = vcmask 1044484  }
 0x264   : > { %v8021_v18 = vpop.f32.mrf.mxu1  ;;  %v8064_v14 = vpop.f32.mrf.mxu0  ;;  %vm11375_vm4 = vmmov %vm11368_vm13 }
 0x265   : > { %v10570_v34 = vadd.f32 %v10405_v46, %v2699_v27  ;;  %v11358_v27 = vld [vmem:[#allocation26_spill] sm:$0xff]  ;;  %v11359_v18 = vld [vmem:[#allocation19_spill] sm:$0xff]  ;;  %vm11377_vm12 = vmmov %vm11375_vm4 }
 0x266   : > { %v2613_v58 = vpop.f32.mrf.mxu1  ;;  %v2968_v37 = vpop.f32.mrf.mxu0  ;;  %v2238_v14 = vadd.f32 %v11359_v18, %v11358_v27 }
 0x267   : > { %8224 = vmatmul.mubr.msk.bf16.gmra.mxu1 %vm415_vm1, %v7650_v33  ;;  %v2700_v57 = vadd.f32 %v2613_v58, %v11353_v35 }
 0x268   : > { %8227 = vmatprep.mubr.msk.bf16.mxu1 %vm415_vm1, %v7651_v53  ;;  %v8022_v32 = vpop.f32.mrf.mxu1  ;;  %v8067_v59 = vpop.f32.mrf.mxu0 }
 0x269   : > { %v10582_v29 = vadd.f32 %v10430_v51, %v2700_v57  ;;  %v11355_v51 = vld [vmem:[#allocation20_spill] sm:$0xff]  ;;  %v5195_v59 = vld [vmem:[#allocation2 + $0xc0] sm:$0xe] }
 0x26a   : > { %v2616_v46 = vpop.f32.mrf.mxu1  ;;  %v2979_v56 = vpop.f32.mrf.mxu0 }
 0x26b   : > { %v2701_v40 = vadd.f32 %v2616_v46, %v11354_v62 }
 0x26c   : > { %v8025_v15 = vpop.f32.mrf.mxu1  ;;  %v8068_v33 = vpop.f32.mrf.mxu0 }
 0x26d   : > { %v10586_v63 = vadd.f32 %v10464_v26, %v2701_v40  ;;  %v5348_v40 = vrot.slane %v10307_v1, 5  ;;  %v11360_v15 = vld [vmem:[#allocation27_spill] sm:$0xff]  ;;  %v11361_v33 = vld [vmem:[#allocation22_spill] sm:$0xff] }
 0x26e   : > { %v2627_v16 = vpop.f32.mrf.mxu1  ;;  %v2982_v53 = vpop.f32.mrf.mxu0 }
 0x26f   : > { %8228 = vmatmul.mubr.msk.bf16.gmra.mxu1 %vm415_vm1, %v7652_v38  ;;  %v2702_v42 = vadd.f32 %v2627_v16, %v11355_v51  ;;  %v2252_v16 = vadd.f32 %v11361_v33, %v11360_v15  ;;  %v7643_v51 = vrot.slane %v5195_v59, 9 }
 0x270   : > { %8231 = vmatprep.mubr.msk.bf16.mxu1 %vm415_vm1, %v7653_v8  ;;  %v8026_v19 = vpop.f32.mrf.mxu1  ;;  %v8071_v10 = vpop.f32.mrf.mxu0 }
 0x271   : > { %v10598_v39 = vadd.f32 %v10489_v55, %v2702_v42  ;;  %v5354_v19 = vrot.slane %v5352_v22, 4  ;;  %v11362_v10 = vld [vmem:[#allocation28_spill] sm:$0xff]  ;;  %v5346_v1 = vsel %vm9337_vm11, %v7643_v51, %v5345_v28 }
 0x272   : > { %v2630_v26 = vpop.f32.mrf.mxu1  ;;  %v2993_v43 = vpop.f32.mrf.mxu0  ;;  %v5355_v17 = vrot.slane %v11362_v10, 5 }
 0x273   : > { %v2703_v31 = vadd.f32 %v2630_v26, %v11356_v25 }
 0x274   : > { %v8029_v36 = vpop.f32.mrf.mxu1  ;;  %v8072_v38 = vpop.f32.mrf.mxu0 }
 0x275   : > { %v10601_v47 = vadd.f32 %v2954_v44, %v2703_v31 }
 0x276   : > { %v2641_v13 = vpop.f32.mrf.mxu1  ;;  %v2996_v8 = vpop.f32.mrf.mxu0 }
 0x277   : > { %8232 = vmatmul.mubr.msk.bf16.gmra.mxu1 %vm415_vm1, %v7654_v50  ;;  %v2704_v55 = vadd.f32 %v2641_v13, %v11357_v2 }
 0x278   : > { %8235 = vmatprep.mubr.msk.bf16.mxu1 %vm415_vm1, %v7655_v6  ;;  %v8030_v11 = vpop.f32.mrf.mxu1  ;;  %v8075_v44 = vpop.f32.mrf.mxu0  ;;  %v5347_v6 = vrot.slane %v5345_v28, 4 }
 0x279   : > { %v10614_v58 = vadd.f32 %v2965_v41, %v2704_v55  ;;  %v5356_v55 = vsel %vm9337_vm11, %v5354_v19, %v5355_v17 }
 0x27a   : > { %v2644_v35 = vpop.f32.mrf.mxu1  ;;  %v3007_v50 = vpop.f32.mrf.mxu0 }
 0x27b   : > { %v2705_v61 = vadd.f32 %v2644_v35, %v2238_v14 }
 0x27c   : > { %v8033_v57 = vpop.f32.mrf.mxu1  ;;  %v8076_v32 = vpop.f32.mrf.mxu0 }
 0x27d   : > { %v10617_v45 = vadd.f32 %v2968_v37, %v2705_v61  ;;  %v5196_v37 = vld [vmem:[#allocation2 + $0xcc] sm:$0xe] }
 0x27e   : > { %v2655_v4 = vpop.f32.mrf.mxu1  ;;  %v3010_v46 = vpop.f32.mrf.mxu0  ;;  %v7644_v42 = vrot.slane %v5196_v37, 9 }
 0x27f   : > { %8236 = vmatmul.mubr.msk.bf16.gmra.mxu1 %vm415_vm1, %v7656_v52  ;;  %v2706_v41 = vadd.f32 %v2655_v4, %v10319_v12 }
 0x280   : > { %8239 = vmatprep.mubr.msk.bf16.mxu1 %vm415_vm1, %v7657_v21  ;;  %v8034_v62 = vpop.f32.mrf.mxu1  ;;  %v5349_v21 = vsel %vm9337_vm11, %v5347_v6, %v5348_v40  ;;  %v5353_v2 = vsel %vm9337_vm11, %v7644_v42, %v5352_v22 }
 0x281   : > { %v8115_v60 = vpop.f32.mrf.mxu0  ;;  %v10629_v49 = vadd.f32 %v2979_v56, %v2706_v41  ;;  %v7659_v31 = vcombine.low %v5346_v1, %v5349_v21  ;;  %v7660_v48 = vcombine.low %v5353_v2, %v5356_v55 }
 0x282   : > { %v2658_v52 = vpop.f32.mrf.mxu1 }
 0x283   : > { %v2707_v12 = vadd.f32 %v2658_v52, %v2252_v16  ;;  %v4037_v26 = vpop.f32.mrf.mxu0 }
 0x285   : > { %v8037_v25 = vpop.f32.mrf.mxu1  ;;  %v8116_v36 = vpop.f32.mrf.mxu0  ;;  %v10636_v38 = vadd.f32 %v2982_v53, %v2707_v12 }
 0x287   : > { %8240 = vmatmul.mubr.msk.bf16.gmra.mxu1 %vm415_vm1, %v7658_v20  ;;  %v2669_v56 = vpop.f32.mrf.mxu1  ;;  %v4040_v11 = vpop.f32.mrf.mxu0 }
 0x288   : > { %8243 = vmatprep.mubr.msk.bf16.mxu1 %vm415_vm1, %v7659_v31  ;;  %v2708_v13 = vadd.f32 %v2669_v56, %v10362_v24 }
 0x289   : > { %v8038_v27 = vpop.f32.mrf.mxu1 }
 0x28a   : > { %v8119_v53 = vpop.f32.mrf.mxu0  ;;  %v10648_v18 = vadd.f32 %v2993_v43, %v2708_v13 }
 0x28b   : > { %v2672_v14 = vpop.f32.mrf.mxu1 }
 0x28c   : > { %v2709_v54 = vadd.f32 %v2672_v14, %v10374_v30  ;;  %v4051_v20 = vpop.f32.mrf.mxu0 }
 0x28e   : > { %v8041_v44 = vpop.f32.mrf.mxu1  ;;  %v8120_v35 = vpop.f32.mrf.mxu0  ;;  %v10651_v28 = vadd.f32 %v2996_v8, %v2709_v54 }
 0x28f   : > { %8244 = vmatmul.mubr.msk.bf16.gmra.mxu1 %vm415_vm1, %v7660_v48 }
 0x290   : > { %v2683_v24 = vpop.f32.mrf.mxu1  ;;  %v4054_v61 = vpop.f32.mrf.mxu0 }
 0x291   : > { %v2710_v3 = vadd.f32 %v2683_v24, %v10403_v0 }
 0x292   : > { %v8042_v57 = vpop.f32.mrf.mxu1  ;;  %v8123_v32 = vpop.f32.mrf.mxu0 }
 0x293   : > { %v10655_v4 = vadd.f32 %v3007_v50, %v2710_v3  ;;  %v6528_v32 = vld [vmem:[%s11285_s9] sm:$0xf] }
 0x294   : > { %v2686_v43 = vpop.f32.mrf.mxu1  ;;  %v4065_v41 = vpop.f32.mrf.mxu0  ;;  %8277 = vmatprep.subr.msk.bf16.mxu0 %vm464_vm0, %v6528_v32 }
 0x295   : > { %v2711_v6 = vadd.f32 %v2686_v43, %v10428_v23 }
 0x296   : > { %v8081_v30 = vpop.f32.mrf.mxu1  ;;  %v8124_v59 = vpop.f32.mrf.mxu0 }
 0x297   : > { %v10658_v22 = vadd.f32 %v3010_v46, %v2711_v6 }
 0x298   : > { %v3601_v8 = vpop.f32.mrf.mxu1  ;;  %v4068_v40 = vpop.f32.mrf.mxu0 }
 0x299   : > { %v3712_v62 = vadd.f32 %v3601_v8, %v10559_v9 }
 0x29a   : > { %v8082_v37 = vpop.f32.mrf.mxu1  ;;  %v8127_v15 = vpop.f32.mrf.mxu0 }
 0x29b   : > { %v10661_v0 = vadd.f32 %v4037_v26, %v3712_v62 }
 0x29c   : > { %v3604_v33 = vpop.f32.mrf.mxu1  ;;  %v4079_v16 = vpop.f32.mrf.mxu0 }
 0x29d   : > { %v3713_v50 = vadd.f32 %v3604_v33, %v10562_v7 }
 0x29e   : > { %v8085_v60 = vpop.f32.mrf.mxu1  ;;  %v8128_v52 = vpop.f32.mrf.mxu0 }
 0x29f   : > { %v10664_v23 = vadd.f32 %v4040_v11, %v3713_v50 }
 0x2a0   : > { %v3615_v51 = vpop.f32.mrf.mxu1  ;;  %v4082_v21 = vpop.f32.mrf.mxu0 }
 0x2a1   : > { %v3714_v46 = vadd.f32 %v3615_v51, %v10567_v5 }
 0x2a2   : > { %v8086_v12 = vpop.f32.mrf.mxu1  ;;  %v8131_v42 = vpop.f32.mrf.mxu0 }
 0x2a3   : > { %v10667_v9 = vadd.f32 %v4051_v20, %v3714_v46 }
 0x2a4   : > { %v3618_v19 = vpop.f32.mrf.mxu1  ;;  %v4093_v17 = vpop.f32.mrf.mxu0 }
 0x2a5   : > { %v3715_v10 = vadd.f32 %v3618_v19, %v10570_v34 }
 0x2a6   : > { %v8089_v26 = vpop.f32.mrf.mxu1  ;;  %v8132_v25 = vpop.f32.mrf.mxu0 }
 0x2a7   : > { %v10670_v7 = vadd.f32 %v4054_v61, %v3715_v10 }
 0x2a8   : > { %v3629_v1 = vpop.f32.mrf.mxu1  ;;  %v4096_v36 = vpop.f32.mrf.mxu0 }
 0x2a9   : > { %v3716_v31 = vadd.f32 %v3629_v1, %v10582_v29 }
 0x2aa   : > { %v8090_v56 = vpop.f32.mrf.mxu1  ;;  %v8135_v13 = vpop.f32.mrf.mxu0 }
 0x2ab   : > { %v10673_v5 = vadd.f32 %v4065_v41, %v3716_v31 }
 0x2ac   : > { %v3632_v2 = vpop.f32.mrf.mxu1  ;;  %v4107_v11 = vpop.f32.mrf.mxu0 }
 0x2ad   : > { %v3717_v55 = vadd.f32 %v3632_v2, %v10586_v63 }
 0x2ae   : > { %v8093_v27 = vpop.f32.mrf.mxu1  ;;  %v8136_v53 = vpop.f32.mrf.mxu0 }
 0x2af   : > { %v10676_v34 = vadd.f32 %v4068_v40, %v3717_v55  ;;  %v8397_v55 = vld [vmem:[%s8586_s11 + $0x8] sm:$0xff] }
 0x2b0   : > { %v3643_v14 = vpop.f32.mrf.mxu1  ;;  %v4110_v54 = vpop.f32.mrf.mxu0 }
 0x2b1   : > { %v3718_v48 = vadd.f32 %v3643_v14, %v10598_v39  ;;  %v6463_v39 = vld [vmem:[%s11283_s7] sm:$0xf] }
 0x2b2   : > { %v8094_v20 = vpop.f32.mrf.mxu1  ;;  %v8139_v44 = vpop.f32.mrf.mxu0  ;;  %8278 = vmatprep.subr.msk.bf16.mxu1 %vm464_vm0, %v6463_v39  ;;  %v7117_v6 = vsel %vm464_vm0, %v6463_v39, 0 }
 0x2b3   : > { %v10679_v29 = vadd.f32 %v4079_v16, %v3718_v48  ;;  %8258 = vmatpush3.bf16.msra.mxu1 %v7117_v6 }
 0x2b4   : > { %v3646_v35 = vpop.f32.mrf.mxu1  ;;  %v4121_v3 = vpop.f32.mrf.mxu0 }
 0x2b5   : > { %v3719_v24 = vadd.f32 %v3646_v35, %v10601_v47  ;;  %v6793_v47 = vsel %vm464_vm0, %v6528_v32, 0  ;;  %v8398_v32 = vld [vmem:[%s8586_s11 + $0x20] sm:$0xff]  ;;  %vm11366_vm0 = vcmask 1043459  }
 0x2b6   : > { %v8097_v61 = vpop.f32.mrf.mxu1  ;;  %v8140_v57 = vpop.f32.mrf.mxu0  ;;  %8248 = vmatpush3.bf16.msra.mxu0 %v6793_v47  ;;  %v6097_v39 = vcombine.high %v8398_v32, %v8398_v32  ;;  %vm11374_vm5 = vmmov %vm11366_vm0 }
 0x2b7   : > { %v10682_v63 = vadd.f32 %v4082_v21, %v3719_v24  ;;  %vm11376_vm10 = vmmov %vm11366_vm0 }
 0x2b8   : > { %v3657_v43 = vpop.f32.mrf.mxu1  ;;  %v4124_v30 = vpop.f32.mrf.mxu0  ;;  %vm11379_vm11 = vmmov %vm11366_vm0 }
 0x2b9   : > { %v3720_v41 = vadd.f32 %v3657_v43, %v10614_v58 }
 0x2ba   : > { %v8098_v59 = vpop.f32.mrf.mxu1  ;;  %v8143_v8 = vpop.f32.mrf.mxu0 }
 0x2bb   : > { %v10695_v62 = vadd.f32 %v4093_v17, %v3720_v41 }
 0x2bc   : > { %v3660_v40 = vpop.f32.mrf.mxu1  ;;  %v4135_v15 = vpop.f32.mrf.mxu0 }
 0x2bd   : > { %v3721_v37 = vadd.f32 %v3660_v40, %v10617_v45 }
 0x2be   : > { %v8101_v33 = vpop.f32.mrf.mxu1  ;;  %v8144_v50 = vpop.f32.mrf.mxu0 }
 0x2bf   : > { %v10698_v16 = vadd.f32 %v4096_v36, %v3721_v37 }
 0x2c0   : > { %v3671_v60 = vpop.f32.mrf.mxu1  ;;  %v4138_v10 = vpop.f32.mrf.mxu0 }
 0x2c1   : > { %v3722_v52 = vadd.f32 %v3671_v60, %v10629_v49  ;;  %v8399_v60 = vld [vmem:[%s8586_s11 + $0x28] sm:$0xff] }
 0x2c2   : > { %v8102_v51 = vpop.f32.mrf.mxu1 }
 0x2c3   : > { %v10701_v58 = vadd.f32 %v4107_v11, %v3722_v52  ;;  %v6080_v11 = vcombine.high %v8397_v55, %v8397_v55 }
 0x2c4   : > { %v3674_v46 = vpop.f32.mrf.mxu1 }
 0x2c5   : > { %v3723_v21 = vadd.f32 %v3674_v46, %v10636_v38  ;;  %v8400_v46 = vld [vmem:[%s8586_s11 + $0x80] sm:$0xff] }
 0x2c6   : > { %v8105_v12 = vpop.f32.mrf.mxu1 }
 0x2c7   : > { %v10704_v42 = vadd.f32 %v4110_v54, %v3723_v21  ;;  %v6199_v21 = vcombine.high %v8400_v46, %v8400_v46 }
 0x2c8   : > { %v3685_v19 = vpop.f32.mrf.mxu1 }
 0x2c9   : > { %v3724_v45 = vadd.f32 %v3685_v19, %v10648_v18 }
 0x2ca   : > { %v8106_v17 = vpop.f32.mrf.mxu1 }
 0x2cb   : > { %v10707_v26 = vadd.f32 %v4121_v3, %v3724_v45  ;;  %v8183_v1 = vpop.f32.mrf.mxu0  ;;  %v11364_v3 = vld [vmem:[#allocation7_spill] sm:$0xff] }
 0x2cc   : > { %v3688_v25 = vpop.f32.mrf.mxu1  ;;  %v6114_v1 = vcombine.high %v8399_v60, %v8399_v60 }
 0x2cd   : > { %v3725_v49 = vadd.f32 %v3688_v25, %v10651_v28  ;;  %v5054_v31 = vpop.f32.mrf.mxu0  ;;  %v11363_v28 = vld [vmem:[#allocation6_spill] sm:$0xff] }
 0x2ce   : > { %v6094_v54 = vrot.slane %v6080_v11, %v11363_v28  ;;  %v6104_v43 = vrot.slane %v8398_v32, %v11363_v28  ;;  %v6121_v52 = vrot.slane %v8399_v60, %v11363_v28 }
 0x2cf   : > { %v10710_v36 = vadd.f32 %v4124_v30, %v3725_v49  ;;  %v8109_v56 = vpop.f32.mrf.mxu1  ;;  %v8184_v38 = vpop.f32.mrf.mxu0 }
 0x2d0   : > { %v6096_v57 = vcombine.high %v6094_v54, %v6094_v54  ;;  %v6470_v8 = vpack.c.bf16 %v6094_v54, %v6094_v54  ;;  %v6472_v55 = vpack.c.bf16 %v6104_v43, %v6104_v43 }
 0x2d1   : > { %v3699_v13 = vpop.f32.mrf.mxu1  ;;  %v5057_v53 = vpop.f32.mrf.mxu0 }
 0x2d2   : > { %v3726_v2 = vadd.f32 %v3699_v13, %v10655_v4  ;;  %v6095_v4 = vcombine.high %v11364_v3, %v11364_v3  ;;  %v6471_v37 = vpack.c.bf16 %v6096_v57, %v6096_v57  ;;  %v6129_v13 = vcombine.high %v6121_v52, %v6121_v52 }
 0x2d3   : > { %v8110_v18 = vpop.f32.mrf.mxu1 }
 0x2d4   : > { %v10714_v27 = vadd.f32 %v4135_v15, %v3726_v2  ;;  %v6469_v59 = vpack.c.bf16 %v6095_v4, %v6095_v4  ;;  %v6112_v15 = vcombine.high %v6104_v43, %v6104_v43  ;;  %v10742_v25 = vunpack.c.l.b16 %v6471_v37 }
 0x2d5   : > { %v3702_v14 = vpop.f32.mrf.mxu1  ;;  %v6213_v18 = vrot.slane %v6199_v21, %v11363_v28  ;;  %v10756_v4 = vrot.slane %v6114_v1, %v11363_v28  ;;  %v6476_v43 = vpack.c.bf16 %v6121_v52, %v6121_v52  ;;  %v8402_v21 = vld [vmem:[%s8586_s11 + $0xa0] sm:$0xff] }
 0x2d6   : > { %v3727_v48 = vadd.f32 %v3702_v14, %v10658_v22  ;;  %v10734_v45 = vunpack.c.l.b16 %v6469_v59  ;;  %v6675_v3 = vrot.slane %v10742_v25, 1 }
 0x2d7   : > { %v8149_v20 = vpop.f32.mrf.mxu1  ;;  %v6478_v60 = vpack.c.bf16 %v10756_v4, %v10756_v4 }
 0x2d8   : > { %v10718_v44 = vadd.f32 %v4138_v10, %v3727_v48  ;;  %v10736_v10 = vunpack.c.l.b16 %v6470_v8  ;;  %v6215_v8 = vcombine.high %v6213_v18, %v6213_v18 }
 0x2d9   : > { %v8187_v35 = vpop.f32.mrf.mxu0  ;;  %v4362_v24 = vpop.f32.mrf.mxu1 }
 0x2da   : > { %v4473_v61 = vadd.f32 %v4362_v24, %v10661_v0  ;;  %v6111_v0 = vrot.slane %v6097_v39, %v11363_v28  ;;  %v6672_v20 = vrot.slane %v10736_v10, 2 }
 0x2db   : > { %v5068_v47 = vpop.f32.mrf.mxu0  ;;  %v8150_v22 = vpop.f32.mrf.mxu1 }
 0x2dc   : > { %v10725_v6 = vadd.f32 %v5054_v31, %v4473_v61  ;;  %v6113_v49 = vcombine.high %v6111_v0, %v6111_v0  ;;  %v6473_v31 = vpack.c.bf16 %v6112_v15, %v6112_v15  ;;  %v6474_v11 = vpack.c.bf16 %v6111_v0, %v6111_v0 }
 0x2dd   : > { %v8188_v41 = vpop.f32.mrf.mxu0  ;;  %v4365_v30 = vpop.f32.mrf.mxu1  ;;  %v6498_v0 = vpack.c.bf16 %v6213_v18, %v6213_v18 }
 0x2de   : > { %v4474_v40 = vadd.f32 %v4365_v30, %v10664_v23  ;;  %v10739_v23 = vrot.slane %v8400_v46, %v11363_v28  ;;  %v6475_v61 = vpack.c.bf16 %v6113_v49, %v6113_v49  ;;  %v6602_v57 = vunpack.c.l.b16 %v6473_v31 }
 0x2df   : > { %v5071_v33 = vpop.f32.mrf.mxu0  ;;  %v8153_v50 = vpop.f32.mrf.mxu1  ;;  %v6601_v30 = vunpack.c.l.b16 %v6472_v55  ;;  %v10760_v59 = vunpack.c.l.b16 %v6474_v11 }
 0x2e0   : > { %v10731_v51 = vadd.f32 %v5057_v53, %v4474_v40  ;;  %v8401_v53 = vld [vmem:[%s8586_s11 + $0x88] sm:$0xff]  ;;  %v6214_v35 = vcombine.high %v10739_v23, %v10739_v23  ;;  %v10765_v52 = vunpack.c.l.b16 %v6475_v61  ;;  %v6678_v46 = vrot.slane %v6602_v57, 7 }
 0x2e1   : > { %v8191_v12 = vpop.f32.mrf.mxu0  ;;  %v4376_v19 = vpop.f32.mrf.mxu1  ;;  %v6223_v14 = vrot.slane %v8401_v53, %v11363_v28  ;;  %v6216_v22 = vcombine.high %v8401_v53, %v8401_v53 }
 0x2e2   : > { %v4475_v17 = vadd.f32 %v4376_v19, %v10667_v9  ;;  %v6669_v9 = vrot.slane %v10734_v45, 3  ;;  %v6497_v37 = vpack.c.bf16 %v6214_v35, %v6214_v35  ;;  %v6682_v35 = vrot.slane %v10765_v52, 5 }
 0x2e3   : > { %v5082_v56 = vpop.f32.mrf.mxu0  ;;  %v8154_v38 = vpop.f32.mrf.mxu1  ;;  %v6500_v15 = vpack.c.bf16 %v6223_v14, %v6223_v14  ;;  %v10771_v1 = vrot.slane %v6216_v22, %v11363_v28 }
 0x2e4   : > { %v10744_v2 = vadd.f32 %v5068_v47, %v4475_v17  ;;  %v6477_v47 = vpack.c.bf16 %v6129_v13, %v6129_v13  ;;  %v6605_v17 = vunpack.c.l.b16 %v6476_v43  ;;  %v6496_v38 = vpack.c.bf16 %v10739_v23, %v10739_v23 }
 0x2e5   : > { %v8192_v48 = vpop.f32.mrf.mxu0  ;;  %v4379_v54 = vpop.f32.mrf.mxu1  ;;  %v6499_v13 = vpack.c.bf16 %v6215_v8, %v6215_v8  ;;  %v10778_v53 = vunpack.c.l.b16 %v6497_v37  ;;  %v10805_v8 = vld [vmem:[%s8586_s11 + $0xa8] sm:$0xff] }
 0x2e6   : > { %v4476_v24 = vadd.f32 %v4379_v54, %v10670_v7  ;;  %v6231_v7 = vcombine.high %v6223_v14, %v6223_v14  ;;  %v10768_v49 = vunpack.c.l.b16 %v6477_v47  ;;  %v10780_v14 = vunpack.c.l.b16 %v6498_v0 }
 0x2e7   : > { %v5085_v32 = vpop.f32.mrf.mxu0  ;;  %v8157_v39 = vpop.f32.mrf.mxu1  ;;  %v10782_v48 = vunpack.c.l.b16 %v6500_v15  ;;  %v6502_v47 = vpack.c.bf16 %v10771_v1, %v10771_v1  ;;  %v10798_v22 = vunpack.c.l.b16 %v6496_v38  ;;  %v6720_v0 = vrot.slane %v10778_v53, 7 }
 0x2e8   : > { %v10758_v41 = vadd.f32 %v5071_v33, %v4476_v24  ;;  %v6233_v33 = vcombine.high %v8402_v21, %v8402_v21  ;;  %v6501_v55 = vpack.c.bf16 %v6231_v7, %v6231_v7  ;;  %v10788_v24 = vrot.slane %v8402_v21, %v11363_v28 }
 0x2e9   : > { %v4390_v40 = vpop.f32.mrf.mxu1  ;;  %v6684_v39 = vrot.slane %v6605_v17, 4  ;;  %v6686_v43 = vrot.slane %v10768_v49, 3  ;;  %v10809_v7 = vrot.slane %v10805_v8, %v11363_v28  ;;  %v6726_v15 = vrot.slane %v10782_v48, 4 }
 0x2ea   : > { %v4477_v50 = vadd.f32 %v4390_v40, %v10673_v5  ;;  %v8195_v12 = vpop.f32.mrf.mxu0  ;;  %v6680_v5 = vrot.slane %v10760_v59, 6  ;;  %v10791_v23 = vrot.slane %v6233_v33, %v11363_v28  ;;  %v10802_v59 = vunpack.c.l.b16 %v6501_v55  ;;  %v8404_v33 = vld [vmem:[%s8586_s11 + $0xc8] sm:$0xff] }
 0x2eb   : > { %v8158_v19 = vpop.f32.mrf.mxu1  ;;  %v6248_v52 = vcombine.high %v10788_v24, %v10788_v24  ;;  %v6250_v21 = vcombine.high %v10805_v8, %v10805_v8  ;;  %v6284_v12 = vcombine.high %v8404_v33, %v8404_v33  ;;  %v6130_v38 = vcombine.high %v10756_v4, %v10756_v4  ;;  %v11367_v33 = vld [vmem:[#allocation11_spill] sm:$0xff] }
 0x2ec   : > { %v10773_v31 = vadd.f32 %v5082_v56, %v4477_v50  ;;  %v5096_v11 = vpop.f32.mrf.mxu0  ;;  %v6679_v56 = vsel %vm6658_vm2, %v6678_v46, %v6601_v30  ;;  %v10800_v30 = vunpack.c.l.b16 %v6499_v13  ;;  %v6249_v46 = vcombine.high %v10791_v23, %v10791_v23 }
 0x2ed   : > { %v4393_v18 = vpop.f32.mrf.mxu1  ;;  %v6607_v13 = vunpack.c.l.b16 %v6478_v60  ;;  %v6681_v8 = vsel %vm6661_vm3, %v6680_v5, %v6679_v56  ;;  %v6479_v60 = vpack.c.bf16 %v6130_v38, %v6130_v38  ;;  %v6298_v5 = vrot.slane %v6284_v12, %v11363_v28 }
 0x2ee   : > { %v4478_v54 = vadd.f32 %v4393_v18, %v10676_v34  ;;  %v8196_v61 = vpop.f32.mrf.mxu0  ;;  %v6265_v18 = vcombine.high %v10809_v7, %v10809_v7  ;;  %v6506_v12 = vpack.c.bf16 %v10791_v23, %v10791_v23 }
 0x2ef   : > { %v8161_v57 = vpop.f32.mrf.mxu1 }
 0x2f0   : > { %v10796_v34 = vadd.f32 %v5085_v32, %v4478_v54  ;;  %v5099_v40 = vpop.f32.mrf.mxu0  ;;  %v6722_v32 = vrot.slane %v10780_v14, 6  ;;  %v8405_v54 = vld [vmem:[%s8586_s11 + $0xe8] sm:$0xff] }
 0x2f1   : > { %v4404_v37 = vpop.f32.mrf.mxu1  ;;  %v6318_v61 = vcombine.high %v8405_v54, %v8405_v54 }
 0x2f2   : > { %v4479_v50 = vadd.f32 %v4404_v37, %v10679_v29  ;;  %v8199_v17 = vpop.f32.mrf.mxu0  ;;  %v11365_v29 = vld [vmem:[#allocation8_spill] sm:$0xff] }
 0x2f3   : > { %v8162_v19 = vpop.f32.mrf.mxu1  ;;  %v6671_v55 = vsel %vm6670_vm6, %v6669_v9, %v11365_v29  ;;  %v6683_v9 = vsel %vm11366_vm0, %v6682_v35, %v6681_v8  ;;  %v6332_v35 = vrot.slane %v6318_v61, %v11363_v28 }
 0x2f4   : > { %v10822_v49 = vadd.f32 %v5096_v11, %v4479_v50  ;;  %v6674_v11 = vsel %vm6673_vm7, %v6672_v20, %v6671_v55  ;;  %v5110_v37 = vpop.f32.mrf.mxu0  ;;  %v6505_v50 = vpack.c.bf16 %v6248_v52, %v6248_v52  ;;  %v6299_v19 = vcombine.high %v11367_v33, %v11367_v33  ;;  %v11369_v52 = vld [vmem:[#allocation12_spill] sm:$0xff] }
 0x2f5   : > { %v4407_v57 = vpop.f32.mrf.mxu1  ;;  %v6677_v45 = vsel %vm6676_vm8, %v6675_v3, %v6674_v11  ;;  %v6685_v10 = vsel %vm11368_vm13, %v6684_v39, %v6683_v9  ;;  %v6688_v20 = vrot.slane %v6607_v13, 2  ;;  %v6504_v3 = vpack.c.bf16 %v10788_v24, %v10788_v24  ;;  %vm11380_vm13 = vmmov %vm11375_vm4 }
 0x2f6   : > { %v4480_v4 = vadd.f32 %v4407_v57, %v10682_v63  ;;  %v8200_v56 = vpop.f32.mrf.mxu0  ;;  %v6608_v63 = vunpack.c.l.b16 %v6479_v60  ;;  %v6687_v25 = vsel %vm6670_vm6, %v6686_v43, %v6685_v10  ;;  %v6333_v38 = vcombine.high %v11369_v52, %v11369_v52 }
 0x2f7   : > { %v8165_v17 = vpop.f32.mrf.mxu1  ;;  %v6689_v39 = vsel %vm6673_vm7, %v6688_v20, %v6687_v25  ;;  %v6507_v57 = vpack.c.bf16 %v6249_v46, %v6249_v46  ;;  %v6509_v24 = vpack.c.bf16 %v6265_v18, %v6265_v18  ;;  %v6634_v11 = vunpack.c.l.b16 %v6505_v50 }
 0x2f8   : > { %v10846_v29 = vadd.f32 %v5099_v40, %v4480_v4  ;;  %v6508_v40 = vpack.c.bf16 %v10809_v7, %v10809_v7  ;;  %v5113_v13 = vpop.f32.mrf.mxu0  ;;  %v6690_v54 = vrot.slane %v6608_v63, 1  ;;  %v6517_v61 = vpack.c.bf16 %v6299_v19, %v6299_v19 }
 0x2f9   : > { %v4418_v55 = vpop.f32.mrf.mxu1  ;;  %v6300_v4 = vcombine.high %v6298_v5, %v6298_v5  ;;  %v6518_v60 = vpack.c.bf16 %v6298_v5, %v6298_v5  ;;  %v6334_v23 = vcombine.high %v6332_v35, %v6332_v35  ;;  %v6525_v10 = vpack.c.bf16 %v6333_v38, %v6333_v38 }
 0x2fa   : > { %v4481_v43 = vadd.f32 %v4418_v55, %v10695_v62  ;;  %v6691_v17 = vsel %vm6676_vm8, %v6690_v54, %v6689_v39  ;;  %v6526_v20 = vpack.c.bf16 %v6332_v35, %v6332_v35  ;;  %v6728_v62 = vrot.slane %v10802_v59, 3 }
 0x2fb   : > { %v8166_v8 = vpop.f32.mrf.mxu1  ;;  %v8203_v9 = vpop.f32.mrf.mxu0  ;;  %v6776_v56 = vpack.c.b16 %v6691_v17, %v6677_v45  ;;  %v6264_v46 = vrot.slane %v6250_v21, %v11363_v28  ;;  %v6633_v18 = vunpack.c.l.b16 %v6504_v3  ;;  %v6635_v63 = vunpack.c.l.b16 %v6506_v12  ;;  %v11370_v21 = vld [vmem:[#allocation10_spill] sm:$0xff]  ;;  %v11371_v3 = vld [vmem:[#allocation9_spill] sm:$0xff] }
 0x2fc   : > { %v10860_v33 = vadd.f32 %v5110_v37, %v4481_v43  ;;  %v6636_v5 = vunpack.c.l.b16 %v6507_v57  ;;  %v10866_v25 = vunpack.c.l.b16 %v6508_v40  ;;  %v6646_v37 = vunpack.c.l.b16 %v6517_v61 }
 0x2fd   : > { %v4421_v7 = vpop.f32.mrf.mxu1  ;;  %v5124_v50 = vpop.f32.mrf.mxu0  ;;  %8249 = vmatprep.mubr.msk.bf16.mxu0 %vm415_vm1, %v6776_v56  ;;  %v10869_v38 = vunpack.c.l.b16 %v6509_v24  ;;  %v6734_v35 = vrot.slane %v6634_v11, 7  ;;  %v6519_v45 = vpack.c.bf16 %v6300_v4, %v6300_v4  ;;  %v11372_v43 = vpack.c.b16 %v11370_v21, %v11371_v3 }
 0x2fe   : > { %v4482_v19 = vadd.f32 %v4421_v7, %v10698_v16  ;;  %v6647_v16 = vunpack.c.l.b16 %v6518_v60  ;;  %v6527_v12 = vpack.c.bf16 %v6334_v23, %v6334_v23  ;;  %v6654_v40 = vunpack.c.l.b16 %v6525_v10 }
 0x2ff   : > { %v8169_v52 = vpop.f32.mrf.mxu1  ;;  %v8204_v55 = vpop.f32.mrf.mxu0  ;;  %8250 = vmatmul.mubr.msk.bf16.vlgmr.msra.gmra.mxu0 %vm415_vm1, %v11372_v43  ;;  %v10877_v54 = vunpack.c.l.b16 %v6526_v20  ;;  %v6721_v24 = vsel %vm6658_vm2, %v6720_v0, %v10798_v22  ;;  %v6724_v11 = vrot.slane %v10800_v30, 5  ;;  %v6736_v4 = vrot.slane %v6635_v63, 6 }
 0x300   : > { %v10871_v39 = vadd.f32 %v5113_v13, %v4482_v19  ;;  %v6510_v13 = vpack.c.bf16 %v6264_v46, %v6264_v46  ;;  %v6738_v9 = vrot.slane %v6636_v5, 5  ;;  %v6740_v60 = vrot.slane %v10866_v25, 4 }
 0x301   : > { %v4432_v57 = vpop.f32.mrf.mxu1  ;;  %v5127_v61 = vpop.f32.mrf.mxu0  ;;  %v6756_v17 = vrot.slane %v6646_v37, 3  ;;  %v6735_v10 = vsel %vm6658_vm2, %v6734_v35, %v6633_v18  ;;  %v6742_v20 = vrot.slane %v10869_v38, 3  ;;  %v6648_v7 = vunpack.c.l.b16 %v6519_v45  ;;  %v11373_v35 = vld [vmem:[#allocation13_spill] sm:$0xff] }
 0x302   : > { %v4483_v8 = vadd.f32 %v4432_v57, %v10701_v58  ;;  %v6758_v22 = vrot.slane %v6647_v16, 2  ;;  %v6656_v0 = vunpack.c.l.b16 %v6527_v12  ;;  %v6770_v30 = vrot.slane %v6654_v40, 3 }
 0x303   : > { %v8170_v23 = vpop.f32.mrf.mxu1  ;;  %v6772_v56 = vrot.slane %v10877_v54, 2  ;;  %v6232_v5 = vcombine.high %v10771_v1, %v10771_v1  ;;  %v6266_v25 = vcombine.high %v6264_v46, %v6264_v46  ;;  %v6631_v18 = vunpack.c.l.b16 %v6502_v47 }
 0x304   : > { %v10888_v53 = vadd.f32 %v5124_v50, %v4483_v8  ;;  %v6639_v50 = vunpack.c.l.b16 %v6510_v13  ;;  %v6723_v52 = vsel %vm6661_vm3, %v6722_v32, %v6721_v24  ;;  %v6737_v38 = vsel %vm6661_vm3, %v6736_v4, %v6735_v10 }
 0x305   : > { %v4435_v19 = vpop.f32.mrf.mxu1  ;;  %v8207_v58 = vpop.f32.mrf.mxu0  ;;  %v6757_v45 = vsel %vm6670_vm6, %v6756_v17, %v11373_v35  ;;  %v6503_v21 = vpack.c.bf16 %v6232_v5, %v6232_v5  ;;  %v6511_v46 = vpack.c.bf16 %v6266_v25, %v6266_v25  ;;  %v6725_v3 = vsel %vm11374_vm5, %v6724_v11, %v6723_v52 }
 0x306   : > { %v4484_v63 = vadd.f32 %v4435_v19, %v10704_v42  ;;  %v6727_v47 = vsel %vm11375_vm4, %v6726_v15, %v6725_v3  ;;  %v6730_v14 = vrot.slane %v6631_v18, 2  ;;  %v6739_v32 = vsel %vm11376_vm10, %v6738_v9, %v6737_v38 }
 0x307   : > { %v8173_v37 = vpop.f32.mrf.mxu1  ;;  %v5138_v42 = vpop.f32.mrf.mxu0  ;;  %v6744_v43 = vrot.slane %v6639_v50, 2  ;;  %v6632_v40 = vunpack.c.l.b16 %v6503_v21  ;;  %v6640_v54 = vunpack.c.l.b16 %v6511_v46  ;;  %v6729_v57 = vsel %vm6670_vm6, %v6728_v62, %v6727_v47  ;;  %v11378_v62 = vld [vmem:[#allocation14_spill] sm:$0xff]  ;;  %v10940_v21 = vld [vmem:[%s11281_s5] ss:$0 sm:$0xff] }
 0x308   : > { %v10903_v55 = vadd.f32 %v5127_v61, %v4484_v63  ;;  %v6731_v11 = vsel %vm6673_vm7, %v6730_v14, %v6729_v57  ;;  %v6741_v48 = vsel %vm11377_vm12, %v6740_v60, %v6739_v32  ;;  %v6759_v15 = vsel %vm6673_vm7, %v6758_v22, %v6757_v45  ;;  %v10946_v46 = vld [vmem:[%s11282_s6] ss:$0 sm:$0xff]  ;;  %vm11381_vm12 = vmmov %vm11379_vm11 }
 0x309   : > { %v4446_v1 = vpop.f32.mrf.mxu1  ;;  %v8208_v16 = vpop.f32.mrf.mxu0  ;;  %v6760_v13 = vrot.slane %v6648_v7, 1  ;;  %v6732_v8 = vrot.slane %v6632_v40, 1  ;;  %v6743_v4 = vsel %vm6670_vm6, %v6742_v20, %v6741_v48  ;;  %v6771_v23 = vsel %vm6670_vm6, %v6770_v30, %v11378_v62 }
 0x30a   : > { %v4485_v12 = vadd.f32 %v4446_v1, %v10707_v26  ;;  %v6746_v26 = vrot.slane %v6640_v54, 1  ;;  %v6745_v17 = vsel %vm6673_vm7, %v6744_v43, %v6743_v4  ;;  %v6774_v10 = vrot.slane %v6656_v0, 1 }
 0x30b   : > { %v8174_v24 = vpop.f32.mrf.mxu1  ;;  %v6761_v59 = vsel %vm6676_vm8, %v6760_v13, %v6759_v15  ;;  %v6733_v22 = vsel %vm6676_vm8, %v6732_v8, %v6731_v11  ;;  %v6773_v19 = vsel %vm6673_vm7, %v6772_v56, %v6771_v23  ;;  %v5141_v58 = vpop.f32.mrf.mxu0 }
 0x30c   : > { %v10917_v61 = vadd.f32 %v5138_v42, %v4485_v12  ;;  %v6747_v7 = vsel %vm6676_vm8, %v6746_v26, %v6745_v17  ;;  %v6775_v5 = vsel %vm6676_vm8, %v6774_v10, %v6773_v19 }
 0x30d   : > { %v4449_v9 = vpop.f32.mrf.mxu1  ;;  %v6778_v63 = vpack.c.b16 %v6747_v7, %v6733_v22  ;;  %v6779_v18 = vpack.c.b16 %v6775_v5, %v6761_v59 }
 0x30e   : > { %v4486_v60 = vadd.f32 %v4449_v9, %v10710_v36 }
 0x30f   : > { %v8177_v20 = vpop.f32.mrf.mxu1  ;;  %8253 = vmatprep.mubr.msk.bf16.mxu0 %vm415_vm1, %v6778_v63 }
 0x310   : > { %v10929_v25 = vadd.f32 %v5141_v58, %v4486_v60  ;;  %v8211_v36 = vpop.f32.mrf.mxu0  ;;  %8254 = vmatmul.mubr.msk.bf16.gmra.mxu0 %vm415_vm1, %v6779_v18 }
 0x311   : > { %v4460_v37 = vpop.f32.mrf.mxu1 }
 0x312   : > { %v4487_v0 = vadd.f32 %v4460_v37, %v10714_v27  ;;  %v5152_v50 = vpop.f32.mrf.mxu0 }
 0x313   : > { %v8178_v30 = vpop.f32.mrf.mxu1 }
 0x314   : > { %v10934_v52 = vadd.f32 %v5152_v50, %v4487_v0  ;;  %v8212_v35 = vpop.f32.mrf.mxu0 }
 0x315   : > { %v4463_v56 = vpop.f32.mrf.mxu1 }
 0x316   : > { %v4488_v38 = vadd.f32 %v4463_v56, %v10718_v44  ;;  %v5155_v12 = vpop.f32.mrf.mxu0 }
 0x317   : > { %v8217_v45 = vpop.f32.mrf.mxu1 }
 0x319   : > { %v5490_v42 = vpop.f32.mrf.mxu1 }
 0x31a   : > { %v5601_v27 = vadd.f32 %v5490_v42, %v10725_v6 }
 0x31b   : > { %v8218_v3 = vpop.f32.mrf.mxu1 }
 0x31c   : > { %v5624_v1 = vadd.f32 %v10940_v21, %v5601_v27 }
 0x31d   : > { %v5493_v47 = vpop.f32.mrf.mxu1 }
 0x31e   : > { %vm5640_vm15 = vcmp.ge.f32.partialorder %v5624_v1, 0.0  ;;  %v5663_v44 = vmul.f32 %v10946_v46, %v5624_v1  ;;  %v5602_v14 = vadd.f32 %v5493_v47, %v10731_v51  ;;  %v10956_v51 = vadd.f32 %v5155_v12, %v4488_v38 }
 0x31f   : > { %v8221_v32 = vpop.f32.mrf.mxu1 }
 0x320   : > { %v5679_v43 = vsel %vm5640_vm15, %v5624_v1, %v5663_v44  ;;  %v5625_v16 = vadd.f32 %v10940_v21, %v5602_v14  ;;  %vm11382_vm15 = vmmov %vm11380_vm13 }
 0x321   : > { %v5711_v6 = vcombine.high %v5679_v43, %v5679_v43  ;;  %v5718_v40 = vrot.slane %v5679_v43, %v11363_v28  ;;  %v5504_v54 = vpop.f32.mrf.mxu1 }
 0x322   : > { %vm5641_vm9 = vcmp.ge.f32.partialorder %v5625_v16, 0.0  ;;  %v5664_v57 = vmul.f32 %v10946_v46, %v5625_v16  ;;  %v5603_v24 = vadd.f32 %v5504_v54, %v10744_v2 }
 0x323   : > { %v5725_v11 = vrot.slane %v5711_v6, %v11363_v28  ;;  %v5726_v48 = vcombine.high %v5718_v40, %v5718_v40  ;;  %v6399_v15 = vpack.c.bf16 %v5718_v40, %v5718_v40  ;;  %v8222_v13 = vpop.f32.mrf.mxu1 }
 0x324   : > { %v5680_v8 = vsel %vm5641_vm9, %v5625_v16, %v5664_v57  ;;  %v5626_v4 = vadd.f32 %v10940_v21, %v5603_v24 }
 0x325   : > { %v5727_v26 = vcombine.high %v5725_v11, %v5725_v11  ;;  %v6400_v9 = vpack.c.bf16 %v5726_v48, %v5726_v48  ;;  %v6401_v17 = vpack.c.bf16 %v5725_v11, %v5725_v11  ;;  %v6924_v59 = vunpack.c.l.b16 %v6399_v15  ;;  %v5507_v62 = vpop.f32.mrf.mxu1 }
 0x326   : > { %v5728_v23 = vcombine.high %v5680_v8, %v5680_v8  ;;  %v5735_v10 = vrot.slane %v5680_v8, %v11363_v28  ;;  %vm5642_vm14 = vcmp.ge.f32.partialorder %v5626_v4, 0.0  ;;  %v5665_v2 = vmul.f32 %v10946_v46, %v5626_v4 }
 0x327   : > { %v6402_v60 = vpack.c.bf16 %v5727_v26, %v5727_v26  ;;  %v6925_v22 = vunpack.c.l.b16 %v6400_v9  ;;  %v6926_v7 = vunpack.c.l.b16 %v6401_v17  ;;  %v5604_v19 = vadd.f32 %v5507_v62, %v10758_v41  ;;  %v8225_v58 = vpop.f32.mrf.mxu1 }
 0x328   : > { %v5742_v20 = vrot.slane %v5728_v23, %v11363_v28  ;;  %v5743_v63 = vcombine.high %v5735_v10, %v5735_v10  ;;  %v6403_v5 = vpack.c.bf16 %v5735_v10, %v5735_v10  ;;  %v5681_v18 = vsel %vm5642_vm14, %v5626_v4, %v5665_v2 }
 0x329   : > { %v6927_v37 = vunpack.c.l.b16 %v6402_v60  ;;  %v6988_v0 = vrot.slane %v6925_v22, 7  ;;  %v6990_v36 = vrot.slane %v6926_v7, 6  ;;  %v5745_v30 = vcombine.high %v5681_v18, %v5681_v18  ;;  %v5518_v50 = vpop.f32.mrf.mxu1 }
 0x32a   : > { %v5744_v56 = vcombine.high %v5742_v20, %v5742_v20  ;;  %v6404_v38 = vpack.c.bf16 %v5743_v63, %v5743_v63  ;;  %v6405_v35 = vpack.c.bf16 %v5742_v20, %v5742_v20  ;;  %v6928_v45 = vunpack.c.l.b16 %v6403_v5 }
 0x32b   : > { %v6989_v42 = vsel %vm6658_vm2, %v6988_v0, %v6924_v59  ;;  %v6992_v27 = vrot.slane %v6927_v37, 5  ;;  %v5752_v41 = vrot.slane %v5681_v18, %v11363_v28  ;;  %v5759_v3 = vrot.slane %v5745_v30, %v11363_v28  ;;  %v8226_v1 = vpop.f32.mrf.mxu1 }
 0x32c   : > { %v6991_v47 = vsel %vm6661_vm3, %v6990_v36, %v6989_v42  ;;  %v6406_v44 = vpack.c.bf16 %v5744_v56, %v5744_v56  ;;  %v10967_v14 = vunpack.c.l.b16 %v6404_v38  ;;  %v10969_v32 = vunpack.c.l.b16 %v6405_v35 }
 0x32d   : > { %v6994_v43 = vrot.slane %v6928_v45, 4  ;;  %v5760_v16 = vcombine.high %v5752_v41, %v5752_v41  ;;  %v5761_v12 = vcombine.high %v5759_v3, %v5759_v3  ;;  %v6407_v6 = vpack.c.bf16 %v5752_v41, %v5752_v41  ;;  %v5521_v40 = vpop.f32.mrf.mxu1 }
 0x32e   : > { %v10971_v54 = vunpack.c.l.b16 %v6406_v44  ;;  %v6996_v57 = vrot.slane %v10967_v14, 3  ;;  %v6998_v24 = vrot.slane %v10969_v32, 2  ;;  %v6409_v11 = vpack.c.bf16 %v5759_v3, %v5759_v3 }
 0x32f   : > { %v6408_v48 = vpack.c.bf16 %v5760_v16, %v5760_v16  ;;  %v6410_v15 = vpack.c.bf16 %v5761_v12, %v5761_v12  ;;  %v6932_v13 = vunpack.c.l.b16 %v6407_v6  ;;  %v5627_v8 = vadd.f32 %v10940_v21, %v5604_v19  ;;  %v8229_v4 = vpop.f32.mrf.mxu1 }
 0x330   : > { %v6934_v26 = vunpack.c.l.b16 %v6409_v11  ;;  %v5605_v9 = vadd.f32 %v5518_v50, %v10773_v31  ;;  %v5606_v17 = vadd.f32 %v5521_v40, %v10796_v34  ;;  %v6993_v59 = vsel %vm11379_vm11, %v6992_v27, %v6991_v47 }
 0x331   : > { %v6933_v62 = vunpack.c.l.b16 %v6408_v48  ;;  %v10979_v23 = vunpack.c.l.b16 %v6410_v15  ;;  %vm5643_vm0 = vcmp.ge.f32.partialorder %v5627_v8, 0.0  ;;  %v5666_v10 = vmul.f32 %v10946_v46, %v5627_v8  ;;  %v5532_v2 = vpop.f32.mrf.mxu1 }
 0x332   : > { %v7004_v60 = vrot.slane %v6934_v26, 6  ;;  %v5628_v22 = vadd.f32 %v10940_v21, %v5605_v9  ;;  %v5629_v7 = vadd.f32 %v10940_v21, %v5606_v17  ;;  %v5607_v19 = vadd.f32 %v5532_v2, %v10822_v49 }
 0x333   : > { %v7002_v58 = vrot.slane %v6933_v62, 7  ;;  %v7006_v31 = vrot.slane %v10979_v23, 5  ;;  %v5682_v34 = vsel %vm5643_vm0, %v5627_v8, %v5666_v10  ;;  %v8230_v20 = vpop.f32.mrf.mxu1  ;;  %v10987_v63 = vsel %vm11380_vm13, %v6994_v43, %v6993_v59  ;;  %vm11383_vm0 = vmmov %vm11379_vm11 }
 0x334   : > { %v5762_v5 = vcombine.high %v5682_v34, %v5682_v34  ;;  %v5769_v18 = vrot.slane %v5682_v34, %v11363_v28  ;;  %vm5644_vm5 = vcmp.ge.f32.partialorder %v5628_v22, 0.0  ;;  %v5667_v37 = vmul.f32 %v10946_v46, %v5628_v22 }
 0x335   : > { %v7003_v0 = vsel %vm6658_vm2, %v7002_v58, %v6932_v13  ;;  %vm5645_vm4 = vcmp.ge.f32.partialorder %v5629_v7, 0.0  ;;  %v5668_v36 = vmul.f32 %v10946_v46, %v5629_v7  ;;  %v5630_v49 = vadd.f32 %v10940_v21, %v5607_v19  ;;  %v10994_v30 = vpop.f32.mrf.mxu1 }
 0x336   : > { %v10997_v50 = vsel %vm6661_vm3, %v7004_v60, %v7003_v0  ;;  %v5776_v56 = vrot.slane %v5762_v5, %v11363_v28  ;;  %v5777_v38 = vcombine.high %v5769_v18, %v5769_v18  ;;  %v6411_v35 = vpack.c.bf16 %v5769_v18, %v5769_v18 }
 0x337   : > { %v5683_v45 = vsel %vm5644_vm5, %v5628_v22, %v5667_v37  ;;  %v5684_v42 = vsel %vm5645_vm4, %v5629_v7, %v5668_v36  ;;  %vm5646_vm10 = vcmp.ge.f32.partialorder %v5630_v49, 0.0  ;;  %v5669_v27 = vmul.f32 %v10946_v46, %v5630_v49  ;;  %v8233_v41 = vpop.f32.mrf.mxu1  ;;  %vm11384_vm5 = vmmov %vm11380_vm13 }
 0x338   : > { %v5778_v3 = vcombine.high %v5776_v56, %v5776_v56  ;;  %v6412_v1 = vpack.c.bf16 %v5777_v38, %v5777_v38  ;;  %v6413_v47 = vpack.c.bf16 %v5776_v56, %v5776_v56  ;;  %v11001_v44 = vunpack.c.l.b16 %v6411_v35 }
 0x339   : > { %v5779_v43 = vcombine.high %v5683_v45, %v5683_v45  ;;  %v5786_v16 = vrot.slane %v5683_v45, %v11363_v28  ;;  %v5796_v12 = vcombine.high %v5684_v42, %v5684_v42  ;;  %v5803_v6 = vrot.slane %v5684_v42, %v11363_v28  ;;  %v5546_v40 = vpop.f32.mrf.mxu1 }
 0x33a   : > { %v6414_v11 = vpack.c.bf16 %v5778_v3, %v5778_v3  ;;  %v11005_v48 = vunpack.c.l.b16 %v6412_v1  ;;  %v11007_v15 = vunpack.c.l.b16 %v6413_v47  ;;  %v7008_v13 = vrot.slane %v11001_v44, 4 }
 0x33b   : > { %v5793_v8 = vrot.slane %v5779_v43, %v11363_v28  ;;  %v5794_v4 = vcombine.high %v5786_v16, %v5786_v16  ;;  %v6415_v26 = vpack.c.bf16 %v5786_v16, %v5786_v16  ;;  %v5810_v9 = vrot.slane %v5796_v12, %v11363_v28  ;;  %v8234_v17 = vpop.f32.mrf.mxu1 }
 0x33c   : > { %v11012_v59 = vunpack.c.l.b16 %v6414_v11  ;;  %v7010_v62 = vrot.slane %v11005_v48, 3  ;;  %v7012_v10 = vrot.slane %v11007_v15, 2  ;;  %v5811_v2 = vcombine.high %v5803_v6, %v5803_v6 }
 0x33d   : > { %v5795_v60 = vcombine.high %v5793_v8, %v5793_v8  ;;  %v6416_v22 = vpack.c.bf16 %v5794_v4, %v5794_v4  ;;  %v6417_v7 = vpack.c.bf16 %v5793_v8, %v5793_v8  ;;  %v6940_v19 = vunpack.c.l.b16 %v6415_v26  ;;  %v11016_v58 = vpop.f32.mrf.mxu1 }
 0x33e   : > { %v5812_v34 = vcombine.high %v5810_v9, %v5810_v9  ;;  %v6419_v20 = vpack.c.bf16 %v5803_v6, %v5803_v6  ;;  %v6420_v5 = vpack.c.bf16 %v5811_v2, %v5811_v2  ;;  %v6421_v18 = vpack.c.bf16 %v5810_v9, %v5810_v9 }
 0x33f   : > { %v6418_v37 = vpack.c.bf16 %v5795_v60, %v5795_v60  ;;  %v6941_v0 = vunpack.c.l.b16 %v6416_v22  ;;  %v6942_v36 = vunpack.c.l.b16 %v6417_v7  ;;  %v5685_v56 = vsel %vm5646_vm10, %v5630_v49, %v5669_v27  ;;  %v8237_v38 = vpop.f32.mrf.mxu1 }
 0x340   : > { %v6422_v35 = vpack.c.bf16 %v5812_v34, %v5812_v34  ;;  %v6944_v45 = vunpack.c.l.b16 %v6419_v20  ;;  %v6945_v42 = vunpack.c.l.b16 %v6420_v5  ;;  %v6946_v41 = vunpack.c.l.b16 %v6421_v18 }
 0x341   : > { %v6943_v3 = vunpack.c.l.b16 %v6418_v37  ;;  %v7016_v1 = vrot.slane %v6941_v0, 7  ;;  %v7018_v47 = vrot.slane %v6942_v36, 6  ;;  %v5813_v43 = vcombine.high %v5685_v56, %v5685_v56  ;;  %v11019_v16 = vpop.f32.mrf.mxu1 }
 0x342   : > { %v6947_v12 = vunpack.c.l.b16 %v6422_v35  ;;  %v7022_v6 = vrot.slane %v6944_v45, 4  ;;  %v7024_v11 = vrot.slane %v6945_v42, 3  ;;  %v7026_v8 = vrot.slane %v6946_v41, 2 }
 0x343   : > { %v7017_v4 = vsel %vm6658_vm2, %v7016_v1, %v6940_v19  ;;  %v7020_v26 = vrot.slane %v6943_v3, 5  ;;  %v5820_v49 = vrot.slane %v5685_v56, %v11363_v28  ;;  %v5827_v27 = vrot.slane %v5813_v43, %v11363_v28  ;;  %v8238_v9 = vpop.f32.mrf.mxu1 }
 0x344   : > { %v7019_v17 = vsel %vm6661_vm3, %v7018_v47, %v7017_v4  ;;  %v7028_v2 = vrot.slane %v6947_v12, 1  ;;  %v5608_v60 = vadd.f32 %v10994_v30, %v10846_v29  ;;  %v5609_v22 = vadd.f32 %v5546_v40, %v10860_v33 }
 0x345   : > { %v7021_v7 = vsel %vm11381_vm12, %v7020_v26, %v7019_v17  ;;  %v5828_v34 = vcombine.high %v5820_v49, %v5820_v49  ;;  %v5829_v20 = vcombine.high %v5827_v27, %v5827_v27  ;;  %v6423_v5 = vpack.c.bf16 %v5820_v49, %v5820_v49  ;;  %v11029_v19 = vpop.f32.mrf.mxu1  ;;  %vm11385_vm12 = vmmov %vm11383_vm0 }
 0x346   : > { %v7023_v18 = vsel %vm11382_vm15, %v7022_v6, %v7021_v7  ;;  %v6425_v37 = vpack.c.bf16 %v5827_v27, %v5827_v27  ;;  %v5631_v0 = vadd.f32 %v10940_v21, %v5608_v60  ;;  %v5632_v36 = vadd.f32 %v10940_v21, %v5609_v22 }
 0x347   : > { %v7025_v56 = vsel %vm6670_vm6, %v7024_v11, %v7023_v18  ;;  %v6424_v38 = vpack.c.bf16 %v5828_v34, %v5828_v34  ;;  %v6426_v29 = vpack.c.bf16 %v5829_v20, %v5829_v20  ;;  %v6948_v30 = vunpack.c.l.b16 %v6423_v5  ;;  %v8241_v33 = vpop.f32.mrf.mxu1 }
 0x348   : > { %v7027_v40 = vsel %vm6673_vm7, %v7026_v8, %v7025_v56  ;;  %v6950_v35 = vunpack.c.l.b16 %v6425_v37  ;;  %vm5647_vm9 = vcmp.ge.f32.partialorder %v5631_v0, 0.0  ;;  %v5670_v45 = vmul.f32 %v10946_v46, %v5631_v0 }
 0x349   : > { %v11038_v42 = vsel %vm6676_vm8, %v7028_v2, %v7027_v40  ;;  %v6949_v41 = vunpack.c.l.b16 %v6424_v38  ;;  %v6951_v3 = vunpack.c.l.b16 %v6426_v29  ;;  %vm5648_vm14 = vcmp.ge.f32.partialorder %v5632_v36, 0.0  ;;  %v11040_v1 = vpop.f32.mrf.mxu1 }
 0x34a   : > { %v7032_v47 = vrot.slane %v6950_v35, 6  ;;  %v5686_v43 = vsel %vm5647_vm9, %v5631_v0, %v5670_v45  ;;  %v5671_v12 = vmul.f32 %v10946_v46, %v5632_v36  ;;  %v6997_v6 = vsel %vm6670_vm6, %v6996_v57, %v10987_v63 }
 0x34b   : > { %v7030_v11 = vrot.slane %v6949_v41, 7  ;;  %v7034_v8 = vrot.slane %v6951_v3, 5  ;;  %v5830_v4 = vcombine.high %v5686_v43, %v5686_v43  ;;  %v5837_v26 = vrot.slane %v5686_v43, %v11363_v28  ;;  %v8242_v49 = vpop.f32.mrf.mxu1 }
 0x34c   : > { %v5687_v27 = vsel %vm5648_vm14, %v5632_v36, %v5671_v12  ;;  %v6999_v9 = vsel %vm6673_vm7, %v6998_v24, %v6997_v6  ;;  %v7000_v17 = vrot.slane %v10971_v54, 1  ;;  %v7007_v14 = vsel %vm11379_vm11, %v7006_v31, %v10997_v50 }
 0x34d   : > { %v7031_v57 = vsel %vm6658_vm2, %v7030_v11, %v6948_v30  ;;  %v5844_v63 = vrot.slane %v5830_v4, %v11363_v28  ;;  %v5845_v2 = vcombine.high %v5837_v26, %v5837_v26  ;;  %v6427_v60 = vpack.c.bf16 %v5837_v26, %v5837_v26  ;;  %v5577_v22 = vpop.f32.mrf.mxu1 }
 0x34e   : > { %v7033_v7 = vsel %vm6661_vm3, %v7032_v47, %v7031_v57  ;;  %v5847_v34 = vcombine.high %v5687_v27, %v5687_v27  ;;  %v5854_v32 = vrot.slane %v5687_v27, %v11363_v28  ;;  %v7001_v24 = vsel %vm6676_vm8, %v7000_v17, %v6999_v9 }
 0x34f   : > { %v5846_v54 = vcombine.high %v5844_v63, %v5844_v63  ;;  %v6428_v20 = vpack.c.bf16 %v5845_v2, %v5845_v2  ;;  %v6429_v5 = vpack.c.bf16 %v5844_v63, %v5844_v63  ;;  %v6952_v23 = vunpack.c.l.b16 %v6427_v60  ;;  %v8245_v18 = vpop.f32.mrf.mxu1 }
 0x350   : > { %v7035_v31 = vsel %vm11383_vm0, %v7034_v8, %v7033_v7  ;;  %v5861_v50 = vrot.slane %v5847_v34, %v11363_v28  ;;  %v5862_v37 = vcombine.high %v5854_v32, %v5854_v32  ;;  %v6431_v0 = vpack.c.bf16 %v5854_v32, %v5854_v32  ;;  %vm11386_vm0 = vmmov %vm11384_vm5 }
 0x351   : > { %v6430_v36 = vpack.c.bf16 %v5846_v54, %v5846_v54  ;;  %v6953_v56 = vunpack.c.l.b16 %v6428_v20  ;;  %v6954_v38 = vunpack.c.l.b16 %v6429_v5  ;;  %v7036_v29 = vrot.slane %v6952_v23, 4  ;;  %v5588_v30 = vpop.f32.mrf.mxu1 }
 0x352   : > { %v5863_v33 = vcombine.high %v5861_v50, %v5861_v50  ;;  %v6432_v40 = vpack.c.bf16 %v5862_v37, %v5862_v37  ;;  %v6433_v35 = vpack.c.bf16 %v5861_v50, %v5861_v50  ;;  %v6956_v45 = vunpack.c.l.b16 %v6431_v0 }
 0x353   : > { %v6955_v41 = vunpack.c.l.b16 %v6430_v36  ;;  %v7037_v3 = vsel %vm11380_vm13, %v7036_v29, %v7035_v31  ;;  %v7038_v47 = vrot.slane %v6953_v56, 3  ;;  %v7040_v43 = vrot.slane %v6954_v38, 2  ;;  %v8246_v12 = vpop.f32.mrf.mxu1 }
 0x354   : > { %v6434_v6 = vpack.c.bf16 %v5863_v33, %v5863_v33  ;;  %v6957_v11 = vunpack.c.l.b16 %v6432_v40  ;;  %v6958_v8 = vunpack.c.l.b16 %v6433_v35  ;;  %v7009_v4 = vsel %vm11384_vm5, %v7008_v13, %v7007_v14  ;;  %vm11387_vm5 = vmmov %vm11385_vm12 }
 0x355   : > { %v7039_v26 = vsel %vm6670_vm6, %v7038_v47, %v7037_v3  ;;  %v7042_v49 = vrot.slane %v6955_v41, 1  ;;  %v7011_v27 = vsel %vm6670_vm6, %v7010_v62, %v7009_v4  ;;  %v7014_v9 = vrot.slane %v11012_v59, 1 }
 0x356   : > { %v7041_v17 = vsel %vm6673_vm7, %v7040_v43, %v7039_v26  ;;  %v6959_v57 = vunpack.c.l.b16 %v6434_v6  ;;  %v7044_v63 = vrot.slane %v6957_v11, 7  ;;  %v7046_v2 = vrot.slane %v6958_v8, 6 }
 0x357   : > { %v7043_v60 = vsel %vm6676_vm8, %v7042_v49, %v7041_v17  ;;  %v7013_v44 = vsel %vm6673_vm7, %v7012_v10, %v7011_v27  ;;  %v5610_v13 = vadd.f32 %v11016_v58, %v10871_v39  ;;  %v5611_v48 = vadd.f32 %v11019_v16, %v10888_v53 }
 0x358   : > { %v7101_v62 = vpack.c.b16 %v7043_v60, %v11038_v42  ;;  %v7045_v59 = vsel %vm6658_vm2, %v7044_v63, %v6956_v45  ;;  %v7048_v14 = vrot.slane %v6959_v57, 5  ;;  %v7015_v7 = vsel %vm6676_vm8, %v7014_v9, %v7013_v44  ;;  %v5591_v42 = vpop.f32.mrf.mxu1 }
 0x359   : > { %v7047_v34 = vsel %vm6661_vm3, %v7046_v2, %v7045_v59  ;;  %v7100_v32 = vpack.c.b16 %v7015_v7, %v7001_v24  ;;  %v5633_v15 = vadd.f32 %v10940_v21, %v5610_v13  ;;  %v5634_v10 = vadd.f32 %v10940_v21, %v5611_v48 }
 0x35a   : > { %v5612_v39 = vadd.f32 %v11029_v19, %v10903_v55  ;;  %v5613_v53 = vadd.f32 %v11040_v1, %v10917_v61  ;;  %v5614_v58 = vadd.f32 %v5577_v22, %v10929_v25  ;;  %v5615_v16 = vadd.f32 %v5588_v30, %v10934_v52 }
 0x35b   : > { %8259 = vmatprep.mubr.msk.bf16.mxu1 %vm415_vm1, %v7100_v32  ;;  %vm5649_vm4 = vcmp.ge.f32.partialorder %v5633_v15, 0.0  ;;  %v5672_v24 = vmul.f32 %v10946_v46, %v5633_v15  ;;  %vm5650_vm10 = vcmp.ge.f32.partialorder %v5634_v10, 0.0  ;;  %v5673_v54 = vmul.f32 %v10946_v46, %v5634_v10 }
 0x35c   : > { %v5635_v20 = vadd.f32 %v10940_v21, %v5612_v39  ;;  %v5636_v55 = vadd.f32 %v10940_v21, %v5613_v53  ;;  %8260 = vmatmul.mubr.msk.bf16.vlgmr.msra.gmra.mxu1 %vm415_vm1, %v7101_v62  ;;  %v11100_v61 = vadd.f32 %v10940_v21, %v5614_v58  ;;  %v11103_v25 = vadd.f32 %v10940_v21, %v5615_v16 }
 0x35d   : > { %v5688_v52 = vsel %vm5649_vm4, %v5633_v15, %v5672_v24  ;;  %v5689_v19 = vsel %vm5650_vm10, %v5634_v10, %v5673_v54  ;;  %v11106_v1 = vadd.f32 %v5591_v42, %v10956_v51  ;;  %v11109_v22 = vsel %vm11385_vm12, %v7048_v14, %v7047_v34  ;;  %vm11388_vm4 = vmmov %vm11386_vm0 }
 0x35e   : > { %v5864_v5 = vcombine.high %v5688_v52, %v5688_v52  ;;  %v5871_v23 = vrot.slane %v5688_v52, %v11363_v28  ;;  %v5881_v18 = vcombine.high %v5689_v19, %v5689_v19  ;;  %v5888_v31 = vrot.slane %v5689_v19, %v11363_v28  ;;  %vm11389_vm10 = vmmov %vm11387_vm5 }
 0x35f   : > { %vm5651_vm15 = vcmp.ge.f32.partialorder %v5635_v20, 0.0  ;;  %v5674_v50 = vmul.f32 %v10946_v46, %v5635_v20  ;;  %vm5652_vm9 = vcmp.ge.f32.partialorder %v5636_v55, 0.0  ;;  %v5675_v37 = vmul.f32 %v10946_v46, %v5636_v55  ;;  %vm11390_vm12 = vmmov %vm11387_vm5 }
 0x360   : > { %v5878_v0 = vrot.slane %v5864_v5, %v11363_v28  ;;  %v5879_v36 = vcombine.high %v5871_v23, %v5871_v23  ;;  %v6435_v51 = vpack.c.bf16 %v5871_v23, %v5871_v23  ;;  %v5895_v56 = vrot.slane %v5881_v18, %v11363_v28 }
 0x361   : > { %v5896_v38 = vcombine.high %v5888_v31, %v5888_v31  ;;  %v6439_v29 = vpack.c.bf16 %v5888_v31, %v5888_v31  ;;  %v5690_v30 = vsel %vm5651_vm15, %v5635_v20, %v5674_v50  ;;  %v5691_v33 = vsel %vm5652_vm9, %v5636_v55, %v5675_v37 }
 0x362   : > { %v5880_v40 = vcombine.high %v5878_v0, %v5878_v0  ;;  %v6436_v35 = vpack.c.bf16 %v5879_v36, %v5879_v36  ;;  %v6437_v45 = vpack.c.bf16 %v5878_v0, %v5878_v0  ;;  %v6960_v41 = vunpack.c.l.b16 %v6435_v51 }
 0x363   : > { %v5897_v3 = vcombine.high %v5895_v56, %v5895_v56  ;;  %v6440_v47 = vpack.c.bf16 %v5896_v38, %v5896_v38  ;;  %v6441_v43 = vpack.c.bf16 %v5895_v56, %v5895_v56  ;;  %v6964_v12 = vunpack.c.l.b16 %v6439_v29 }
 0x364   : > { %v6438_v6 = vpack.c.bf16 %v5880_v40, %v5880_v40  ;;  %v6961_v11 = vunpack.c.l.b16 %v6436_v35  ;;  %v11117_v8 = vunpack.c.l.b16 %v6437_v45  ;;  %v7050_v4 = vrot.slane %v6960_v41, 4 }
 0x365   : > { %v6442_v26 = vpack.c.bf16 %v5897_v3, %v5897_v3  ;;  %v6965_v49 = vunpack.c.l.b16 %v6440_v47  ;;  %v6966_v27 = vunpack.c.l.b16 %v6441_v43  ;;  %v5898_v9 = vcombine.high %v5690_v30, %v5690_v30 }
 0x366   : > { %v11119_v17 = vunpack.c.l.b16 %v6438_v6  ;;  %v7052_v57 = vrot.slane %v6961_v11, 3  ;;  %v7054_v63 = vrot.slane %v11117_v8, 2  ;;  %v5905_v2 = vrot.slane %v5690_v30, %v11363_v28 }
 0x367   : > { %v11123_v60 = vunpack.c.l.b16 %v6442_v26  ;;  %v7058_v44 = vrot.slane %v6965_v49, 7  ;;  %v7060_v13 = vrot.slane %v6966_v27, 6  ;;  %v5912_v48 = vrot.slane %v5898_v9, %v11363_v28 }
 0x368   : > { %v5913_v62 = vcombine.high %v5905_v2, %v5905_v2  ;;  %v6443_v59 = vpack.c.bf16 %v5905_v2, %v5905_v2  ;;  %v5915_v14 = vcombine.high %v5691_v33, %v5691_v33  ;;  %v5922_v7 = vrot.slane %v5691_v33, %v11363_v28 }
 0x369   : > { %v7059_v34 = vsel %vm6658_vm2, %v7058_v44, %v6964_v12  ;;  %v7062_v32 = vrot.slane %v11123_v60, 5  ;;  %v5914_v15 = vcombine.high %v5912_v48, %v5912_v48  ;;  %v6445_v10 = vpack.c.bf16 %v5912_v48, %v5912_v48 }
 0x36a   : > { %v11130_v39 = vsel %vm6661_vm3, %v7060_v13, %v7059_v34  ;;  %v6444_v53 = vpack.c.bf16 %v5913_v62, %v5913_v62  ;;  %v11132_v58 = vunpack.c.l.b16 %v6443_v59  ;;  %v5929_v16 = vrot.slane %v5915_v14, %v11363_v28 }
 0x36b   : > { %v6446_v42 = vpack.c.bf16 %v5914_v15, %v5914_v15  ;;  %v11135_v24 = vunpack.c.l.b16 %v6445_v10  ;;  %v5930_v54 = vcombine.high %v5922_v7, %v5922_v7  ;;  %v6447_v20 = vpack.c.bf16 %v5922_v7, %v5922_v7 }
 0x36c   : > { %v11137_v55 = vunpack.c.l.b16 %v6444_v53  ;;  %v7064_v52 = vrot.slane %v11132_v58, 4  ;;  %v5931_v19 = vcombine.high %v5929_v16, %v5929_v16  ;;  %v6449_v5 = vpack.c.bf16 %v5929_v16, %v5929_v16 }
 0x36d   : > { %v11140_v23 = vunpack.c.l.b16 %v6446_v42  ;;  %v7068_v18 = vrot.slane %v11135_v24, 2  ;;  %v6448_v31 = vpack.c.bf16 %v5930_v54, %v5930_v54  ;;  %v6972_v50 = vunpack.c.l.b16 %v6447_v20 }
 0x36e   : > { %v7066_v37 = vrot.slane %v11137_v55, 3  ;;  %v6450_v0 = vpack.c.bf16 %v5931_v19, %v5931_v19  ;;  %v6974_v36 = vunpack.c.l.b16 %v6449_v5  ;;  %vm5653_vm14 = vcmp.ge.f32.partialorder %v11100_v61, 0.0 }
 0x36f   : > { %v6973_v51 = vunpack.c.l.b16 %v6448_v31  ;;  %v5676_v56 = vmul.f32 %v10946_v46, %v11100_v61  ;;  %vm5654_vm11 = vcmp.ge.f32.partialorder %v11103_v25, 0.0  ;;  %v5677_v38 = vmul.f32 %v10946_v46, %v11103_v25 }
 0x370   : > { %v6975_v29 = vunpack.c.l.b16 %v6450_v0  ;;  %v7074_v30 = vrot.slane %v6974_v36, 6  ;;  %v5639_v33 = vadd.f32 %v10940_v21, %v11106_v1  ;;  %v7051_v40 = vsel %vm11386_vm0, %v7050_v4, %v11109_v22 }
 0x371   : > { %v7072_v35 = vrot.slane %v6973_v51, 7  ;;  %v5692_v45 = vsel %vm5653_vm14, %v11100_v61, %v5676_v56  ;;  %v5693_v41 = vsel %vm5654_vm11, %v11103_v25, %v5677_v38  ;;  %v7053_v3 = vsel %vm6670_vm6, %v7052_v57, %v7051_v40 }
 0x372   : > { %v7076_v47 = vrot.slane %v6975_v29, 5  ;;  %v5932_v43 = vcombine.high %v5692_v45, %v5692_v45  ;;  %v5939_v12 = vrot.slane %v5692_v45, %v11363_v28  ;;  %v5949_v6 = vcombine.high %v5693_v41, %v5693_v41 }
 0x373   : > { %v7073_v11 = vsel %vm6658_vm2, %v7072_v35, %v6972_v50  ;;  %v5956_v26 = vrot.slane %v5693_v41, %v11363_v28  ;;  %vm5655_vm13 = vcmp.ge.f32.partialorder %v5639_v33, 0.0  ;;  %v5678_v21 = vmul.f32 %v10946_v46, %v5639_v33 }
 0x374   : > { %v7075_v1 = vsel %vm6661_vm3, %v7074_v30, %v7073_v11  ;;  %v5946_v61 = vrot.slane %v5932_v43, %v11363_v28  ;;  %v5947_v22 = vcombine.high %v5939_v12, %v5939_v12  ;;  %v6451_v25 = vpack.c.bf16 %v5939_v12, %v5939_v12 }
 0x375   : > { %v7077_v4 = vsel %vm11387_vm5, %v7076_v47, %v7075_v1  ;;  %v5963_v49 = vrot.slane %v5949_v6, %v11363_v28  ;;  %v5964_v27 = vcombine.high %v5956_v26, %v5956_v26  ;;  %v6455_v9 = vpack.c.bf16 %v5956_v26, %v5956_v26 }
 0x376   : > { %v5948_v57 = vcombine.high %v5946_v61, %v5946_v61  ;;  %v6452_v2 = vpack.c.bf16 %v5947_v22, %v5947_v22  ;;  %v6453_v44 = vpack.c.bf16 %v5946_v61, %v5946_v61  ;;  %v6976_v13 = vunpack.c.l.b16 %v6451_v25 }
 0x377   : > { %v5965_v48 = vcombine.high %v5963_v49, %v5963_v49  ;;  %v6456_v62 = vpack.c.bf16 %v5964_v27, %v5964_v27  ;;  %v6457_v59 = vpack.c.bf16 %v5963_v49, %v5963_v49  ;;  %v6980_v46 = vunpack.c.l.b16 %v6455_v9 }
 0x378   : > { %v6454_v14 = vpack.c.bf16 %v5948_v57, %v5948_v57  ;;  %v6977_v7 = vunpack.c.l.b16 %v6452_v2  ;;  %v6978_v34 = vunpack.c.l.b16 %v6453_v44  ;;  %v7078_v15 = vrot.slane %v6976_v13, 4  ;;  %v7687_v44 = vld [vmem:[%s11284_s8] ss:$0 sm:$0xff] }
 0x379   : > { %v6458_v10 = vpack.c.bf16 %v5965_v48, %v5965_v48  ;;  %v6981_v53 = vunpack.c.l.b16 %v6456_v62  ;;  %v6982_v16 = vunpack.c.l.b16 %v6457_v59  ;;  %v5694_v42 = vsel %vm5655_vm13, %v5639_v33, %v5678_v21 }
 0x37a   : > { %v6979_v54 = vunpack.c.l.b16 %v6454_v14  ;;  %v7079_v20 = vsel %vm11388_vm4, %v7078_v15, %v7077_v4  ;;  %v7080_v19 = vrot.slane %v6977_v7, 3  ;;  %v7082_v5 = vrot.slane %v6978_v34, 2 }
 0x37b   : > { %v6983_v31 = vunpack.c.l.b16 %v6458_v10  ;;  %v7086_v50 = vrot.slane %v6981_v53, 7  ;;  %v7088_v0 = vrot.slane %v6982_v16, 6  ;;  %v5966_v36 = vcombine.high %v5694_v42, %v5694_v42 }
 0x37c   : > { %v7081_v51 = vsel %vm6670_vm6, %v7080_v19, %v7079_v20  ;;  %v7084_v56 = vrot.slane %v6979_v54, 1  ;;  %v5973_v38 = vrot.slane %v5694_v42, %v11363_v28  ;;  %v7055_v29 = vsel %vm6673_vm7, %v7054_v63, %v7053_v3 }
 0x37d   : > { %v7087_v30 = vsel %vm6658_vm2, %v7086_v50, %v6980_v46  ;;  %v7090_v33 = vrot.slane %v6983_v31, 5  ;;  %v5980_v40 = vrot.slane %v5966_v36, %v11363_v28  ;;  %v7056_v35 = vrot.slane %v11119_v17, 1  ;;  %vm11391_vm2 = vmmov %vm11386_vm0 }
 0x37e   : > { %v7089_v45 = vsel %vm6661_vm3, %v7088_v0, %v7087_v30  ;;  %v5981_v41 = vcombine.high %v5973_v38, %v5973_v38  ;;  %v6459_v47 = vpack.c.bf16 %v5973_v38, %v5973_v38  ;;  %v7063_v43 = vsel %vm11389_vm10, %v7062_v32, %v11130_v39  ;;  %vm11392_vm3 = vmmov %vm11386_vm0 }
 0x37f   : > { %v5982_v12 = vcombine.high %v5980_v40, %v5980_v40  ;;  %v6461_v8 = vpack.c.bf16 %v5980_v40, %v5980_v40  ;;  %v7091_v63 = vsel %vm11390_vm12, %v7090_v33, %v7089_v45  ;;  %v7057_v3 = vsel %vm6676_vm8, %v7056_v35, %v7055_v29 }
 0x380   : > { %v6460_v6 = vpack.c.bf16 %v5981_v41, %v5981_v41  ;;  %v6984_v11 = vunpack.c.l.b16 %v6459_v47  ;;  %v7065_v28 = vsel %vm11391_vm2, %v7064_v52, %v7063_v43  ;;  %v7070_v17 = vrot.slane %v11140_v23, 1 }
 0x381   : > { %v6462_v26 = vpack.c.bf16 %v5982_v12, %v5982_v12  ;;  %v6986_v21 = vunpack.c.l.b16 %v6461_v8  ;;  %v7067_v60 = vsel %vm6670_vm6, %v7066_v37, %v7065_v28  ;;  %v7083_v32 = vsel %vm6673_vm7, %v7082_v5, %v7081_v51 }
 0x382   : > { %v6985_v39 = vunpack.c.l.b16 %v6460_v6  ;;  %v7092_v1 = vrot.slane %v6984_v11, 4  ;;  %v7069_v61 = vsel %vm6673_vm7, %v7068_v18, %v7067_v60  ;;  %v7085_v58 = vsel %vm6676_vm8, %v7084_v56, %v7083_v32 }
 0x383   : > { %v6987_v52 = vunpack.c.l.b16 %v6462_v26  ;;  %v7096_v23 = vrot.slane %v6986_v21, 2  ;;  %v7071_v22 = vsel %vm6676_vm8, %v7070_v17, %v7069_v61 }
 0x384   : > { %v7093_v55 = vsel %vm11392_vm3, %v7092_v1, %v7091_v63  ;;  %v7094_v25 = vrot.slane %v6985_v39, 3  ;;  %v7102_v37 = vpack.c.b16 %v7071_v22, %v7057_v3 }
 0x385   : > { %v7098_v4 = vrot.slane %v6987_v52, 1 }
 0x386   : > { %v7095_v49 = vsel %vm6670_vm6, %v7094_v25, %v7093_v55  ;;  %8263 = vmatprep.mubr.msk.bf16.mxu1 %vm415_vm1, %v7102_v37  ;;  %vm7199_vm6 = vcmask 261120  }
 0x387   : > { %v7097_v24 = vsel %vm6673_vm7, %v7096_v23, %v7095_v49 }
 0x388   : > { %v7099_v18 = vsel %vm6676_vm8, %v7098_v4, %v7097_v24 }
 0x389   : > { %v7103_v27 = vpack.c.b16 %v7099_v18, %v7085_v58 }
 0x38b   : > { %8264 = vmatmul.mubr.msk.bf16.gmra.mxu1 %vm415_vm1, %v7103_v27 }
 0x3bf   : > { %v8251_v9 = vpop.f32.mrf.mxu0 }
 0x3c1   : > { %v6829_v57 = vpop.f32.mrf.mxu0 }
 0x3c3   : > { %v8252_v13 = vpop.f32.mrf.mxu0 }
 0x3c5   : > { %v6832_v7 = vpop.f32.mrf.mxu0 }
 0x3d0   : > { %v8255_v54 = vpop.f32.mrf.mxu0 }
 0x3d2   : > { %v6845_v20 = vpop.f32.mrf.mxu0 }
 0x3d4   : > { %v8256_v31 = vpop.f32.mrf.mxu0 }
 0x3d6   : > { %v6848_v29 = vpop.f32.mrf.mxu0 }
 0x41c   : > { %v8261_v2 = vpop.f32.mrf.mxu1 }
 0x41d   : > { %v7162_v48 = vadd.f32 %v8261_v2, %v8251_v9 }
 0x41e   : > { %v7153_v62 = vpop.f32.mrf.mxu1 }
 0x41f   : > { %v7193_v59 = vadd.f32 %v7687_v44, %v7162_v48  ;;  %v7154_v46 = vadd.f32 %v7153_v62, %v6829_v57 }
 0x420   : > { %v8262_v14 = vpop.f32.mrf.mxu1 }
 0x421   : > { %7202 = vst.msk [vmem:[%s11207_s18 + $0x10] sm:$0xff] %vm7199_vm6, %v7193_v59  ;;  %v7191_v34 = vadd.f32 %v7687_v44, %v7154_v46  ;;  %v7165_v15 = vadd.f32 %v8262_v14, %v8252_v13 }
 0x422   : > { %v7156_v10 = vpop.f32.mrf.mxu1 }
 0x423   : > { %7200 = vst.msk [vmem:[%s11207_s18] sm:$0xff] %vm7199_vm6, %v7191_v34  ;;  %v7194_v53 = vadd.f32 %v7687_v44, %v7165_v15  ;;  %v7157_v16 = vadd.f32 %v7156_v10, %v6832_v7 }
 0x425   : > { %7203 = vst.msk [vmem:[%s11207_s18 + $0x18] sm:$0xff] %vm7199_vm6, %v7194_v53  ;;  %v7192_v42 = vadd.f32 %v7687_v44, %v7157_v16 }
 0x427   : > { %7201 = vst.msk [vmem:[%s11207_s18 + $0x8] sm:$0xff] %vm7199_vm6, %v7192_v42 }
 0x44b   : > { %v8265_v19 = vpop.f32.mrf.mxu1 }
 0x44c   : > { %v7178_v5 = vadd.f32 %v8265_v19, %v8255_v54 }
 0x44d   : > { %v7169_v50 = vpop.f32.mrf.mxu1 }
 0x44e   : > { %v7197_v0 = vadd.f32 %v7687_v44, %v7178_v5  ;;  %v7170_v36 = vadd.f32 %v7169_v50, %v6845_v20 }
 0x44f   : > { %v8266_v51 = vpop.f32.mrf.mxu1 }
 0x450   : > { %7206 = vst.msk [vmem:[%s11207_s18 + $0x30] sm:$0xff] %vm7199_vm6, %v7197_v0  ;;  %v7195_v56 = vadd.f32 %v7687_v44, %v7170_v36  ;;  %v7181_v38 = vadd.f32 %v8266_v51, %v8256_v31 }
 0x451   : > { %v7172_v30 = vpop.f32.mrf.mxu1 }
 0x452   : > { %7204 = vst.msk [vmem:[%s11207_s18 + $0x20] sm:$0xff] %vm7199_vm6, %v7195_v56  ;;  %v7198_v33 = vadd.f32 %v7687_v44, %v7181_v38  ;;  %v7173_v40 = vadd.f32 %v7172_v30, %v6848_v29 }
 0x454   : > { %7207 = vst.msk [vmem:[%s11207_s18 + $0x38] sm:$0xff] %vm7199_vm6, %v7198_v33  ;;  %v7196_v35 = vadd.f32 %v7687_v44, %v7173_v40 }
 0x456   : > { %7205 = vst.msk [vmem:[%s11207_s18 + $0x28] sm:$0xff] %vm7199_vm6, %v7196_v35 }
 0x457   : > { %8419 = shalt.err (!%p8416_p3)
}
 0x458   : > { %s8420_s28 = scalar_lea.hbm %s11226_s26, 1024  ;;  %s8424_s11 = scalar_lea.hbm %s11286_s10, 2048 }
 0x459   : > { %p8421_p4 = scmp.ne.s32.totalorder %s11226_s26, %s8420_s28  ;;  %p8425_p9 = scmp.lt.s32.totalorder %s11226_s26, %s11286_s10 }
 0x45a   : > { %p8426_p10 = scmp.lt.s32.totalorder %s8424_s11, %s8420_s28 }
 0x45b   : > { %p8422_p7 = pnand %p8421_p4, %p8566_p5 }
 0x45c   : > { %p8427_p11 = por %p8426_p10, %p8425_p9 }
 0x45d   : > { %p8423_p8 = pneg %p8422_p7 }
 0x45f   : > { %p8428_p12 = pnand %p8427_p11, %p8423_p8 }
 0x461   : > { %8431 = shalt.err (!%p8428_p12)
}
 0x462   : > { %s8471_s27 = smov 128   ;;  %s8472_s30 = smov 8  }
 0x463   : > { %8279 = dma.vmem_to_hbm [thread:$0]  (%p8566_p5), %s11228_s21, 1024, %s11226_s26, %s11236_s17, %s8471_s27, %s8471_s27, %s8472_s30  }
 0x464 PF: > { %p8285_p13 = scmp.ge.s32.totalorder %s8466_s16, 2  ;;  %s7237_s12 = sand.u32 1, %s8454_s13  }
 0x465   : > { %s7238_s28 = scalar_lea.sflag [#allocation4], %s7237_s12 }
 0x466   : > { %p8282_p0 = pnand %p8285_p13, %p8570_p6 }
 0x468   : > { %p8283_p1 = pneg %p8282_p0 }
 0x46a   : > { %8449 = dma.done.wait (%p8283_p1), %s7238_s28, 1024  }
 0x46b   : > { %8451 = vsyncadd (%p8283_p1), %s7238_s28, 4294966272  ;;  %p20_p2 = scmp.ge.s32.totalorder %s8553_s19, 4   ;;  %s11393_s13 = smov %s8458_s14 }
 0x46c   : > { %s11394_s14 = smov %s8462_s15  ;;  %s11395_s15 = smov %s8564_s22 }
 0x46d   : > { %s11396_s16 = smov %s8553_s19  ;;  %22 = sbr.rel (!%p20_p2) target bundleno = 3 (0x3), region = 97 }
 0x472   :  { %7243 = vsyncpa [#allocation4], 1 }
 0x473   :  { %7245 = vsyncpa [#allocation4 + $0x1], 1 }

</bundles_post_ra>
